<compile_context>
chip_gen: v7x
topology: tpu7x:2x2x1
jax: 0.10.0
libtpu: 0.0.40
codegen_flags: <defaults>
</compile_context>

<pallas_src>
import functools

import jax
import jax.numpy as jnp
from jax.experimental import pallas as pl
from jax.experimental.pallas import tpu as pltpu


def _compiler_params(dimension_semantics):
    """CompilerParams with a generation-aware VMEM limit (best effort)."""
    kwargs = dict(dimension_semantics=dimension_semantics)
    try:
        cap = int(pltpu.get_tpu_info().vmem_capacity_bytes)
        # ~3/4 of physical VMEM, capped: ~96-100 MiB on v5e/v6e (128 MiB physical),
        # ~48 MiB on v7x (64 MiB physical per TensorCore).
        kwargs["vmem_limit_bytes"] = int(min(cap * 3 // 4, 100 * 1024 * 1024))
    except Exception:
        pass  # fall back to the scoped defaults
    return pltpu.CompilerParams(**kwargs)


# ------------------- Fused conv + BN-partial-stats Pallas kernel -------------------

def _conv_bn_kernel(*refs, taps, n_phase, Ho, Wo, Cout):
    """One grid step = one image.

    refs = (*phase_refs, w_ref, y_ref, stats_ref, pat_ref)
      phase_refs[p]: (1, Hs, Ws, Cin) bf16   stride-phase p of the padded input
      w_ref:     (kh*kw*Cin, Cout) bf16      all taps concatenated along K
      y_ref:     (1, Ho*Wo, Cout)  bf16      conv output
      stats_ref: (1, 2, Cout)      f32       per-image [sum, sum-of-squares]
      pat_ref:   (Ho*Wo, kh*kw*Cin) bf16     VMEM patch staging (never touches HBM)
    """
    phase_refs = refs[:n_phase]
    w_ref, y_ref, stats_ref, pat_ref = refs[n_phase:]
    M = Ho * Wo
    cin = phase_refs[0].shape[-1]

    # Stage the kh*kw shifted windows side by side along K so the whole conv becomes
    # ONE full-contraction MXU matmul (instead of kh*kw K=Cin dots + VPU adds).
    for t, (p_idx, i0, j0) in enumerate(taps):
        patch = phase_refs[p_idx][0, i0:i0 + Ho, j0:j0 + Wo, :]      # (Ho,Wo,Cin) bf16
        # (Ho,Wo,Cin)->(Ho*Wo,Cin) merge via f32 (layout-trivial for Wo % 8 == 0);
        # a direct bf16 merge needs Wo % 16 == 0, not guaranteed for the stride-2 path.
        patch = patch.astype(jnp.float32).reshape(M, cin).astype(jnp.bfloat16)
        pat_ref[:, t * cin:(t + 1) * cin] = patch

    acc = jnp.dot(pat_ref[...], w_ref[...], preferred_element_type=jnp.float32)

    y_ref[...] = acc.astype(y_ref.dtype).reshape(1, M, Cout)         # bf16 writeback
    # BN batch statistics fused into the conv epilogue (f32 accumulator is in VMEM).
    stats_ref[:, 0:1, :] = jnp.sum(acc, axis=0, keepdims=True).reshape(1, 1, Cout)
    stats_ref[:, 1:2, :] = jnp.sum(acc * acc, axis=0, keepdims=True).reshape(1, 1, Cout)


def conv2d_bn_stats(x_bf16, w, stride, pad):
    """NHWC conv (PyTorch OIHW weights, no bias) + per-image BN partial sums.

    x_bf16: (N, H, W, Cin) bf16.  Returns (y, stats, dims) with y: (N, Ho*Wo, Cout)
    bf16 and stats: (N, 2, Cout) f32 holding per-image [sum, sum-of-squares].
    """
    N, H, W, Cin = x_bf16.shape
    Cout, Cin2, kh, kw = w.shape
    assert Cin2 == Cin
    s = int(stride)
    Ho = (H + 2 * pad - kh) // s + 1
    Wo = (W + 2 * pad - kw) // s + 1
    assert Wo % 8 == 0, "output width must be a multiple of 8 for the in-kernel merge"

    # Halo padding; padded extents rounded up to a multiple of the stride so the
    # phase decomposition below is exact.
    Hp = max(H + 2 * pad, (Ho - 1) * s + kh)
    Wp = max(W + 2 * pad, (Wo - 1) * s + kw)
    Hp = -(-Hp // s) * s
    Wp = -(-Wp // s) * s
    xp = jnp.pad(x_bf16, ((0, 0), (pad, Hp - H - pad), (pad, Wp - W - pad), (0, 0)))

    # Stride-phase decomposition: the s*s strided sub-grids are a DISJOINT
    # re-partition of the padded input (same bytes, no patch duplication), so the
    # kernel only issues contiguous unit-stride slices.
    if s == 1:
        phases, phase_pos = [xp], {0: 0}
    else:
        needed = sorted({(i % s) * s + (j % s) for i in range(kh) for j in range(kw)})
        phases, phase_pos = [], {}
        for pos, p in enumerate(needed):
            phases.append(xp[:, p // s::s, p % s::s, :])
            phase_pos[p] = pos
    Hs, Ws = phases[0].shape[1], phases[0].shape[2]

    # Tap table (phase index, row offset, col offset), ordered to match the
    # (kh, kw, Cin) -> K flattening of the weights below.
    taps = tuple((phase_pos[(i % s) * s + (j % s)], i // s, j // s)
                 for i in range(kh) for j in range(kw))

    K = kh * kw * Cin
    w2 = jnp.transpose(w, (2, 3, 1, 0)).reshape(K, Cout).astype(jnp.bfloat16)

    kern = functools.partial(_conv_bn_kernel, taps=taps, n_phase=len(phases),
                             Ho=Ho, Wo=Wo, Cout=Cout)
    phase_spec = pl.BlockSpec((1, Hs, Ws, Cin), lambda n: (n, 0, 0, 0))
    y, stats = pl.pallas_call(
        kern,
        out_shape=(jax.ShapeDtypeStruct((N, Ho * Wo, Cout), jnp.bfloat16),
                   jax.ShapeDtypeStruct((N, 2, Cout), jnp.float32)),
        grid_spec=pltpu.PrefetchScalarGridSpec(
            num_scalar_prefetch=0,
            grid=(N,),
            in_specs=[phase_spec] * len(phases)
                     + [pl.BlockSpec((K, Cout), lambda n: (0, 0))],
            out_specs=[pl.BlockSpec((1, Ho * Wo, Cout), lambda n: (n, 0, 0)),
                       pl.BlockSpec((1, 2, Cout), lambda n: (n, 0, 0))],
            scratch_shapes=[pltpu.VMEM((Ho * Wo, K), jnp.bfloat16)]),
        compiler_params=_compiler_params(("parallel",)),
    )(*phases, w2)
    return y, stats, (N, Ho, Wo, Cout)


# ------------- Lane-dense BN-affine (+residual) (+ReLU) elementwise kernel -------------

def _affine_kernel(x_ref, s_ref, b_ref, o_ref, *, relu):
    y = x_ref[...].astype(jnp.float32) * s_ref[...] + b_ref[...]
    if relu:
        y = jnp.maximum(y, 0.0)
    o_ref[...] = y.astype(o_ref.dtype)


def _affine_res_kernel(x_ref, s_ref, b_ref, r_ref, o_ref, *, relu):
    y = (x_ref[...].astype(jnp.float32) * s_ref[...] + b_ref[...]
         + r_ref[...].astype(jnp.float32))
    if relu:
        y = jnp.maximum(y, 0.0)
    o_ref[...] = y.astype(o_ref.dtype)


def bn_affine_act(y, stats, count, gamma, beta, residual=None, relu=True,
                  out_dtype=jnp.float32, eps=1e-5, max_rows=1024):
    """Training-mode BatchNorm (stats from the fused conv partial sums) + affine
    (+ residual) (+ ReLU) as a lane-dense Pallas elementwise kernel.

    y: (N, M, C); stats: (N, 2, C) f32 = per-image [sum, sumsq]; residual: (N, M, C)
    or None.  Returns (N, M, C) in out_dtype.
    """
    N, M, C = y.shape
    mean = jnp.sum(stats[:, 0, :], axis=0) / count
    ex2 = jnp.sum(stats[:, 1, :], axis=0) / count
    # TODO(synk): one-pass E[x^2]-E[x]^2 can cancel for large-|mean| activations; fine
    # at init-time scales, switch to a centered two-pass variance for trained nets.
    var = jnp.maximum(ex2 - mean * mean, 0.0)
    scale = gamma / jnp.sqrt(var + eps)
    bias = beta - mean * scale

    x2 = y.reshape(N * M, C)
    r2 = None if residual is None else residual.reshape(N * M, C)
    rows, lanes, s_v, b_v = N * M, C, scale, bias
    if C < 128 and 128 % C == 0 and (N * M * C) % 128 == 0:
        # Lane-dense folding: the flatten is order-preserving (free bitcast in XLA),
        # scale/bias are tiled so stores are full-width vst instead of masked stores.
        lanes = 128
        rows = N * M * C // lanes
        x2 = x2.reshape(rows, lanes)
        if r2 is not None:
            r2 = r2.reshape(rows, lanes)
        s_v = jnp.tile(scale, lanes // C)
        b_v = jnp.tile(bias, lanes // C)
    s_v = s_v.reshape(1, lanes).astype(jnp.float32)
    b_v = b_v.reshape(1, lanes).astype(jnp.float32)

    tm = rows if rows <= max_rows else max_rows
    rows_p = -(-rows // tm) * tm
    if rows_p != rows:
        x2 = jnp.pad(x2, ((0, rows_p - rows), (0, 0)))
        if r2 is not None:
            r2 = jnp.pad(r2, ((0, rows_p - rows), (0, 0)))

    x_spec = pl.BlockSpec((tm, lanes), lambda i: (i, 0))
    p_spec = pl.BlockSpec((1, lanes), lambda i: (0, 0))
    if r2 is None:
        kern = functools.partial(_affine_kernel, relu=relu)
        in_specs = [x_spec, p_spec, p_spec]
        args = (x2, s_v, b_v)
    else:
        kern = functools.partial(_affine_res_kernel, relu=relu)
        in_specs = [x_spec, p_spec, p_spec, x_spec]
        args = (x2, s_v, b_v, r2)

    out = pl.pallas_call(
        kern,
        out_shape=jax.ShapeDtypeStruct((rows_p, lanes), out_dtype),
        grid_spec=pltpu.PrefetchScalarGridSpec(
            num_scalar_prefetch=0,
            grid=(rows_p // tm,),
            in_specs=in_specs,
            out_specs=x_spec),
        compiler_params=_compiler_params(("parallel",)),
    )(*args)
    return out[:rows].reshape(N, M, C)


# ------------------------------------ Parameters ------------------------------------

def _init_conv(key, cout, cin, k):
    fan_in = cin * k * k
    return jax.random.normal(key, (cout, cin, k, k), jnp.float32) * jnp.sqrt(2.0 / fan_in)


def _init_bn(c):
    return {"gamma": jnp.ones((c,), jnp.float32), "beta": jnp.zeros((c,), jnp.float32)}


def init_basic_block(key, in_planes, planes, stride=1):
    k1, k2, k3 = jax.random.split(key, 3)
    p = {"conv1": _init_conv(k1, planes, in_planes, 3), "bn1": _init_bn(planes),
         "conv2": _init_conv(k2, planes, planes, 3), "bn2": _init_bn(planes),
         "stride": int(stride)}
    if stride != 1 or in_planes != planes:
        p["conv_sc"] = _init_conv(k3, planes, in_planes, 1)
        p["bn_sc"] = _init_bn(planes)
    return p


# -------------------------------------- Forward --------------------------------------

def basic_block_forward(params, x_nchw):
    """Pallas forward of the PyTorch BasicBlock (NCHW in, NCHW out)."""
    stride = params["stride"]
    x = jnp.transpose(x_nchw, (0, 2, 3, 1)).astype(jnp.float32)     # NHWC internally
    xb = x.astype(jnp.bfloat16)   # cast once; reused by conv1, shortcut conv, residual
    N, H, W, Cin = x.shape

    # conv1 -> bn1 -> relu     (bf16 intermediate chained to conv2)
    y1, st1, (N1, Ho1, Wo1, C1) = conv2d_bn_stats(xb, params["conv1"], stride, 1)
    h1 = bn_affine_act(y1, st1, N1 * Ho1 * Wo1,
                       params["bn1"]["gamma"], params["bn1"]["beta"],
                       relu=True, out_dtype=jnp.bfloat16)
    h1 = h1.reshape(N1, Ho1, Wo1, C1)                               # free flatten

    # conv2 (bn2 is applied below, fused with residual add + relu)
    y2, st2, (N2, Ho2, Wo2, C2) = conv2d_bn_stats(h1, params["conv2"], 1, 1)

    # shortcut
    if "conv_sc" in params:
        ys, sts, (Ns, Hos, Wos, Cs) = conv2d_bn_stats(xb, params["conv_sc"], stride, 0)
        sc = bn_affine_act(ys, sts, Ns * Hos * Wos,
                           params["bn_sc"]["gamma"], params["bn_sc"]["beta"],
                           relu=False, out_dtype=jnp.bfloat16)
    else:
        sc = xb.reshape(N, H * W, Cin)

    out = bn_affine_act(y2, st2, N2 * Ho2 * Wo2,
                        params["bn2"]["gamma"], params["bn2"]["beta"],
                        residual=sc, relu=True, out_dtype=jnp.float32)
    out = out.reshape(N2, Ho2, Wo2, C2)
    return jnp.transpose(out, (0, 3, 1, 2))                         # back to NCHW


# ------------------------- Plain-JAX reference (sanity check) -------------------------

def reference_forward(params, x_nchw):
    x = jnp.transpose(x_nchw, (0, 2, 3, 1)).astype(jnp.float32)

    def conv(h, w, s, p):
        return jax.lax.conv_general_dilated(
            h, jnp.transpose(w, (2, 3, 1, 0)), (s, s), [(p, p), (p, p)],
            dimension_numbers=("NHWC", "HWIO", "NHWC"),
            precision=jax.lax.Precision.HIGHEST)

    def bn(h, g, b, eps=1e-5):
        m = jnp.mean(h, axis=(0, 1, 2))
        v = jnp.var(h, axis=(0, 1, 2))
        return (h - m) / jnp.sqrt(v + eps) * g + b

    s = params["stride"]
    out = jax.nn.relu(bn(conv(x, params["conv1"], s, 1),
                         params["bn1"]["gamma"], params["bn1"]["beta"]))
    out = bn(conv(out, params["conv2"], 1, 1),
             params["bn2"]["gamma"], params["bn2"]["beta"])
    if "conv_sc" in params:
        sc = bn(conv(x, params["conv_sc"], s, 0),
                params["bn_sc"]["gamma"], params["bn_sc"]["beta"])
    else:
        sc = x
    out = jax.nn.relu(out + sc)
    return jnp.transpose(out, (0, 3, 1, 2))


# ---------------------------------------- Main ----------------------------------------

if __name__ == "__main__":
    key = jax.random.PRNGKey(0)
    kp_a, kp_b, kx = jax.random.split(key, 3)

    # Config A: in_planes == planes, stride 1  -> identity shortcut.
    params_a = init_basic_block(kp_a, in_planes=32, planes=32, stride=1)
    # Config B: in_planes != planes, stride 2  -> 1x1-conv + BN projection shortcut.
    params_b = init_basic_block(kp_b, in_planes=32, planes=64, stride=2)

    # Small input consistent with the module: NCHW, batch=2, 32 channels, 16x16.
    x = jax.random.normal(kx, (2, 32, 16, 16), jnp.float32)

    fwd_a = jax.jit(lambda inp: basic_block_forward(params_a, inp))
    fwd_b = jax.jit(lambda inp: basic_block_forward(params_b, inp))
    out_a = jax.block_until_ready(fwd_a(x))
    out_b = jax.block_until_ready(fwd_b(x))
    assert out_a.shape == (2, 32, 16, 16) and out_a.dtype == jnp.float32
    assert out_b.shape == (2, 64, 8, 8) and out_b.dtype == jnp.float32

    # Sanity check against the plain-JAX reference.  Tolerance is deliberately loose
    # (bf16 MXU operands + bf16 chained intermediates vs. an f32 HIGHEST reference).
    ref_a = jax.jit(lambda inp: reference_forward(params_a, inp))(x)
    ref_b = jax.jit(lambda inp: reference_forward(params_b, inp))(x)
    err_a = float(jnp.max(jnp.abs(out_a - ref_a)))
    err_b = float(jnp.max(jnp.abs(out_b - ref_b)))
    assert err_a < 0.25 and err_b < 0.25, (err_a, err_b)

    print("KERNEL_OK")
</pallas_src>

<mosaic_0001>
module attributes {stable_mosaic.version = 11 : i64} {
  func.func @_conv_bn_kernel(%arg0: i32, %arg1: memref<1x18x18x32xbf16, #tpu.memory_space<vmem>>, %arg2: memref<288x32xbf16, #tpu.memory_space<vmem>>, %arg3: memref<1x256x32xbf16, #tpu.memory_space<vmem>>, %arg4: memref<1x2x32xf32, #tpu.memory_space<vmem>>, %arg5: memref<256x288xbf16, #tpu.memory_space<vmem>>) attributes {dimension_semantics = [#tpu.dimension_semantics<parallel>], iteration_bounds = array<i64: 2>, scalar_prefetch = 0 : i64, scratch_operands = 1 : i64, tpu.core_type = #tpu.core_type<tc>, window_params = [{transform_indices = @transform_0, window_bounds = array<i64: 1, 18, 18, 32>}, {pipeline_mode = #tpu.pipeline_mode<synchronous>, transform_indices = @transform_1, window_bounds = array<i64: 288, 32>}, {transform_indices = @transform_2, window_bounds = array<i64: 1, 256, 32>}, {transform_indices = @transform_3, window_bounds = array<i64: 1, 2, 32>}]} {
    %c0 = arith.constant 0 : index
    %c0_0 = arith.constant 0 : index
    %c0_1 = arith.constant 0 : index
    %c0_2 = arith.constant 0 : index
    %0 = vector.load %arg1[%c0, %c0_0, %c0_1, %c0_2] : memref<1x18x18x32xbf16, #tpu.memory_space<vmem>>, vector<1x16x16x32xbf16>
    %1 = vector.shape_cast %0 : vector<1x16x16x32xbf16> to vector<16x16x32xbf16>
    %2 = arith.extf %1 : vector<16x16x32xbf16> to vector<16x16x32xf32>
    %3 = vector.shape_cast %2 : vector<16x16x32xf32> to vector<256x32xf32>
    %4 = arith.truncf %3 : vector<256x32xf32> to vector<256x32xbf16>
    %c0_3 = arith.constant 0 : index
    %c0_4 = arith.constant 0 : index
    %5 = vector.load %arg5[%c0_3, %c0_4] : memref<256x288xbf16, #tpu.memory_space<vmem>>, vector<256x32xbf16>
    tpu.vector_store %arg5[%c0_3, %c0_4], %4 {strides = array<i32>} : memref<256x288xbf16, #tpu.memory_space<vmem>>, vector<256x32xbf16>,
    %c0_5 = arith.constant 0 : index
    %c0_6 = arith.constant 0 : index
    %c1 = arith.constant 1 : index
    %c0_7 = arith.constant 0 : index
    %6 = vector.load %arg1[%c0_5, %c0_6, %c1, %c0_7] : memref<1x18x18x32xbf16, #tpu.memory_space<vmem>>, vector<1x16x16x32xbf16>
    %7 = vector.shape_cast %6 : vector<1x16x16x32xbf16> to vector<16x16x32xbf16>
    %8 = arith.extf %7 : vector<16x16x32xbf16> to vector<16x16x32xf32>
    %9 = vector.shape_cast %8 : vector<16x16x32xf32> to vector<256x32xf32>
    %10 = arith.truncf %9 : vector<256x32xf32> to vector<256x32xbf16>
    %c0_8 = arith.constant 0 : index
    %c32 = arith.constant 32 : index
    %11 = vector.load %arg5[%c0_8, %c32] : memref<256x288xbf16, #tpu.memory_space<vmem>>, vector<256x32xbf16>
    tpu.vector_store %arg5[%c0_8, %c32], %10 {strides = array<i32>} : memref<256x288xbf16, #tpu.memory_space<vmem>>, vector<256x32xbf16>,
    %c0_9 = arith.constant 0 : index
    %c0_10 = arith.constant 0 : index
    %c2 = arith.constant 2 : index
    %c0_11 = arith.constant 0 : index
    %12 = vector.load %arg1[%c0_9, %c0_10, %c2, %c0_11] : memref<1x18x18x32xbf16, #tpu.memory_space<vmem>>, vector<1x16x16x32xbf16>
    %13 = vector.shape_cast %12 : vector<1x16x16x32xbf16> to vector<16x16x32xbf16>
    %14 = arith.extf %13 : vector<16x16x32xbf16> to vector<16x16x32xf32>
    %15 = vector.shape_cast %14 : vector<16x16x32xf32> to vector<256x32xf32>
    %16 = arith.truncf %15 : vector<256x32xf32> to vector<256x32xbf16>
    %c0_12 = arith.constant 0 : index
    %c64 = arith.constant 64 : index
    %17 = vector.load %arg5[%c0_12, %c64] : memref<256x288xbf16, #tpu.memory_space<vmem>>, vector<256x32xbf16>
    tpu.vector_store %arg5[%c0_12, %c64], %16 {strides = array<i32>} : memref<256x288xbf16, #tpu.memory_space<vmem>>, vector<256x32xbf16>,
    %c0_13 = arith.constant 0 : index
    %c1_14 = arith.constant 1 : index
    %c0_15 = arith.constant 0 : index
    %c0_16 = arith.constant 0 : index
    %18 = vector.load %arg1[%c0_13, %c1_14, %c0_15, %c0_16] : memref<1x18x18x32xbf16, #tpu.memory_space<vmem>>, vector<1x16x16x32xbf16>
    %19 = vector.shape_cast %18 : vector<1x16x16x32xbf16> to vector<16x16x32xbf16>
    %20 = arith.extf %19 : vector<16x16x32xbf16> to vector<16x16x32xf32>
    %21 = vector.shape_cast %20 : vector<16x16x32xf32> to vector<256x32xf32>
    %22 = arith.truncf %21 : vector<256x32xf32> to vector<256x32xbf16>
    %c0_17 = arith.constant 0 : index
    %c96 = arith.constant 96 : index
    %23 = vector.load %arg5[%c0_17, %c96] : memref<256x288xbf16, #tpu.memory_space<vmem>>, vector<256x32xbf16>
    tpu.vector_store %arg5[%c0_17, %c96], %22 {strides = array<i32>} : memref<256x288xbf16, #tpu.memory_space<vmem>>, vector<256x32xbf16>,
    %c0_18 = arith.constant 0 : index
    %c1_19 = arith.constant 1 : index
    %c1_20 = arith.constant 1 : index
    %c0_21 = arith.constant 0 : index
    %24 = vector.load %arg1[%c0_18, %c1_19, %c1_20, %c0_21] : memref<1x18x18x32xbf16, #tpu.memory_space<vmem>>, vector<1x16x16x32xbf16>
    %25 = vector.shape_cast %24 : vector<1x16x16x32xbf16> to vector<16x16x32xbf16>
    %26 = arith.extf %25 : vector<16x16x32xbf16> to vector<16x16x32xf32>
    %27 = vector.shape_cast %26 : vector<16x16x32xf32> to vector<256x32xf32>
    %28 = arith.truncf %27 : vector<256x32xf32> to vector<256x32xbf16>
    %c0_22 = arith.constant 0 : index
    %c128 = arith.constant 128 : index
    %29 = vector.load %arg5[%c0_22, %c128] : memref<256x288xbf16, #tpu.memory_space<vmem>>, vector<256x32xbf16>
    tpu.vector_store %arg5[%c0_22, %c128], %28 {strides = array<i32>} : memref<256x288xbf16, #tpu.memory_space<vmem>>, vector<256x32xbf16>,
    %c0_23 = arith.constant 0 : index
    %c1_24 = arith.constant 1 : index
    %c2_25 = arith.constant 2 : index
    %c0_26 = arith.constant 0 : index
    %30 = vector.load %arg1[%c0_23, %c1_24, %c2_25, %c0_26] : memref<1x18x18x32xbf16, #tpu.memory_space<vmem>>, vector<1x16x16x32xbf16>
    %31 = vector.shape_cast %30 : vector<1x16x16x32xbf16> to vector<16x16x32xbf16>
    %32 = arith.extf %31 : vector<16x16x32xbf16> to vector<16x16x32xf32>
    %33 = vector.shape_cast %32 : vector<16x16x32xf32> to vector<256x32xf32>
    %34 = arith.truncf %33 : vector<256x32xf32> to vector<256x32xbf16>
    %c0_27 = arith.constant 0 : index
    %c160 = arith.constant 160 : index
    %35 = vector.load %arg5[%c0_27, %c160] : memref<256x288xbf16, #tpu.memory_space<vmem>>, vector<256x32xbf16>
    tpu.vector_store %arg5[%c0_27, %c160], %34 {strides = array<i32>} : memref<256x288xbf16, #tpu.memory_space<vmem>>, vector<256x32xbf16>,
    %c0_28 = arith.constant 0 : index
    %c2_29 = arith.constant 2 : index
    %c0_30 = arith.constant 0 : index
    %c0_31 = arith.constant 0 : index
    %36 = vector.load %arg1[%c0_28, %c2_29, %c0_30, %c0_31] : memref<1x18x18x32xbf16, #tpu.memory_space<vmem>>, vector<1x16x16x32xbf16>
    %37 = vector.shape_cast %36 : vector<1x16x16x32xbf16> to vector<16x16x32xbf16>
    %38 = arith.extf %37 : vector<16x16x32xbf16> to vector<16x16x32xf32>
    %39 = vector.shape_cast %38 : vector<16x16x32xf32> to vector<256x32xf32>
    %40 = arith.truncf %39 : vector<256x32xf32> to vector<256x32xbf16>
    %c0_32 = arith.constant 0 : index
    %c192 = arith.constant 192 : index
    %41 = vector.load %arg5[%c0_32, %c192] : memref<256x288xbf16, #tpu.memory_space<vmem>>, vector<256x32xbf16>
    tpu.vector_store %arg5[%c0_32, %c192], %40 {strides = array<i32>} : memref<256x288xbf16, #tpu.memory_space<vmem>>, vector<256x32xbf16>,
    %c0_33 = arith.constant 0 : index
    %c2_34 = arith.constant 2 : index
    %c1_35 = arith.constant 1 : index
    %c0_36 = arith.constant 0 : index
    %42 = vector.load %arg1[%c0_33, %c2_34, %c1_35, %c0_36] : memref<1x18x18x32xbf16, #tpu.memory_space<vmem>>, vector<1x16x16x32xbf16>
    %43 = vector.shape_cast %42 : vector<1x16x16x32xbf16> to vector<16x16x32xbf16>
    %44 = arith.extf %43 : vector<16x16x32xbf16> to vector<16x16x32xf32>
    %45 = vector.shape_cast %44 : vector<16x16x32xf32> to vector<256x32xf32>
    %46 = arith.truncf %45 : vector<256x32xf32> to vector<256x32xbf16>
    %c0_37 = arith.constant 0 : index
    %c224 = arith.constant 224 : index
    %47 = vector.load %arg5[%c0_37, %c224] : memref<256x288xbf16, #tpu.memory_space<vmem>>, vector<256x32xbf16>
    tpu.vector_store %arg5[%c0_37, %c224], %46 {strides = array<i32>} : memref<256x288xbf16, #tpu.memory_space<vmem>>, vector<256x32xbf16>,
    %c0_38 = arith.constant 0 : index
    %c2_39 = arith.constant 2 : index
    %c2_40 = arith.constant 2 : index
    %c0_41 = arith.constant 0 : index
    %48 = vector.load %arg1[%c0_38, %c2_39, %c2_40, %c0_41] : memref<1x18x18x32xbf16, #tpu.memory_space<vmem>>, vector<1x16x16x32xbf16>
    %49 = vector.shape_cast %48 : vector<1x16x16x32xbf16> to vector<16x16x32xbf16>
    %50 = arith.extf %49 : vector<16x16x32xbf16> to vector<16x16x32xf32>
    %51 = vector.shape_cast %50 : vector<16x16x32xf32> to vector<256x32xf32>
    %52 = arith.truncf %51 : vector<256x32xf32> to vector<256x32xbf16>
    %c0_42 = arith.constant 0 : index
    %c256 = arith.constant 256 : index
    %53 = vector.load %arg5[%c0_42, %c256] : memref<256x288xbf16, #tpu.memory_space<vmem>>, vector<256x32xbf16>
    tpu.vector_store %arg5[%c0_42, %c256], %52 {strides = array<i32>} : memref<256x288xbf16, #tpu.memory_space<vmem>>, vector<256x32xbf16>,
    %c0_43 = arith.constant 0 : index
    %c0_44 = arith.constant 0 : index
    %54 = vector.load %arg5[%c0_43, %c0_44] : memref<256x288xbf16, #tpu.memory_space<vmem>>, vector<256x288xbf16>
    %c0_45 = arith.constant 0 : index
    %c0_46 = arith.constant 0 : index
    %55 = vector.load %arg2[%c0_45, %c0_46] : memref<288x32xbf16, #tpu.memory_space<vmem>>, vector<288x32xbf16>
    %cst = arith.constant dense<0.000000e+00> : vector<256x32xf32>
    %56 = tpu.matmul %54, %55, %cst {dimension_numbers = #tpu.dot_dimension_numbers<[1], [0], [0], [1], [0, 0, 1, 1], [], []>} : vector<256x288xbf16>, vector<288x32xbf16>, vector<256x32xf32> -> vector<256x32xf32>
    %57 = arith.truncf %56 : vector<256x32xf32> to vector<256x32xbf16>
    %58 = vector.shape_cast %57 : vector<256x32xbf16> to vector<1x256x32xbf16>
    %c0_47 = arith.constant 0 : index
    %c0_48 = arith.constant 0 : index
    %c0_49 = arith.constant 0 : index
    %59 = vector.load %arg3[%c0_47, %c0_48, %c0_49] : memref<1x256x32xbf16, #tpu.memory_space<vmem>>, vector<1x256x32xbf16>
    tpu.vector_store %arg3[%c0_47, %c0_48, %c0_49], %58 {strides = array<i32>} : memref<1x256x32xbf16, #tpu.memory_space<vmem>>, vector<1x256x32xbf16>,
    %cst_50 = arith.constant dense<0.000000e+00> : vector<32xf32>
    %60 = vector.multi_reduction <add>, %56, %cst_50 [0] : vector<256x32xf32> to vector<32xf32>
    %61 = vector.shape_cast %60 : vector<32xf32> to vector<1x32xf32>
    %62 = vector.shape_cast %61 : vector<1x32xf32> to vector<1x1x32xf32>
    %c0_51 = arith.constant 0 : index
    %c0_52 = arith.constant 0 : index
    %c0_53 = arith.constant 0 : index
    %63 = vector.load %arg4[%c0_51, %c0_52, %c0_53] : memref<1x2x32xf32, #tpu.memory_space<vmem>>, vector<1x1x32xf32>
    tpu.vector_store %arg4[%c0_51, %c0_52, %c0_53], %62 {strides = array<i32>} : memref<1x2x32xf32, #tpu.memory_space<vmem>>, vector<1x1x32xf32>,
    %64 = arith.mulf %56, %56 : vector<256x32xf32>
    %cst_54 = arith.constant dense<0.000000e+00> : vector<32xf32>
    %65 = vector.multi_reduction <add>, %64, %cst_54 [0] : vector<256x32xf32> to vector<32xf32>
    %66 = vector.shape_cast %65 : vector<32xf32> to vector<1x32xf32>
    %67 = vector.shape_cast %66 : vector<1x32xf32> to vector<1x1x32xf32>
    %c0_55 = arith.constant 0 : index
    %c1_56 = arith.constant 1 : index
    %c0_57 = arith.constant 0 : index
    %68 = vector.load %arg4[%c0_55, %c1_56, %c0_57] : memref<1x2x32xf32, #tpu.memory_space<vmem>>, vector<1x1x32xf32>
    tpu.vector_store %arg4[%c0_55, %c1_56, %c0_57], %67 {strides = array<i32>} : memref<1x2x32xf32, #tpu.memory_space<vmem>>, vector<1x1x32xf32>,
    return
  }
  func.func @transform_0(%arg0: i32) -> (i32, i32, i32, i32) {
    %c0_i32 = arith.constant 0 : i32
    %c0_i32_0 = arith.constant 0 : i32
    %c0_i32_1 = arith.constant 0 : i32
    %c0_i32_2 = arith.constant 0 : i32
    return %arg0, %c0_i32, %c0_i32_0, %c0_i32_1 : i32, i32, i32, i32
  }
  func.func @transform_1(%arg0: i32) -> (i32, i32) {
    %c0_i32 = arith.constant 0 : i32
    %c0_i32_0 = arith.constant 0 : i32
    %c0_i32_1 = arith.constant 0 : i32
    return %c0_i32, %c0_i32_0 : i32, i32
  }
  func.func @transform_2(%arg0: i32) -> (i32, i32, i32) {
    %c0_i32 = arith.constant 0 : i32
    %c0_i32_0 = arith.constant 0 : i32
    %c0_i32_1 = arith.constant 0 : i32
    return %arg0, %c0_i32, %c0_i32_0 : i32, i32, i32
  }
  func.func @transform_3(%arg0: i32) -> (i32, i32, i32) {
    %c0_i32 = arith.constant 0 : i32
    %c0_i32_0 = arith.constant 0 : i32
    %c0_i32_1 = arith.constant 0 : i32
    return %arg0, %c0_i32, %c0_i32_0 : i32, i32, i32
  }
}

module attributes {stable_mosaic.version = 11 : i64} {
  func.func @_affine_kernel(%arg0: i32, %arg1: memref<128x128xbf16, #tpu.memory_space<vmem>>, %arg2: memref<1x128xf32, #tpu.memory_space<vmem>>, %arg3: memref<1x128xf32, #tpu.memory_space<vmem>>, %arg4: memref<128x128xbf16, #tpu.memory_space<vmem>>) attributes {dimension_semantics = [#tpu.dimension_semantics<parallel>], iteration_bounds = array<i64: 1>, scalar_prefetch = 0 : i64, scratch_operands = 0 : i64, tpu.core_type = #tpu.core_type<tc>, window_params = [{transform_indices = @transform_0, window_bounds = array<i64: 128, 128>}, {pipeline_mode = #tpu.pipeline_mode<synchronous>, transform_indices = @transform_1, window_bounds = array<i64: 1, 128>}, {pipeline_mode = #tpu.pipeline_mode<synchronous>, transform_indices = @transform_2, window_bounds = array<i64: 1, 128>}, {transform_indices = @transform_3, window_bounds = array<i64: 128, 128>}]} {
    %c0 = arith.constant 0 : index
    %c0_0 = arith.constant 0 : index
    %0 = vector.load %arg1[%c0, %c0_0] : memref<128x128xbf16, #tpu.memory_space<vmem>>, vector<128x128xbf16>
    %1 = arith.extf %0 : vector<128x128xbf16> to vector<128x128xf32>
    %c0_1 = arith.constant 0 : index
    %c0_2 = arith.constant 0 : index
    %2 = vector.load %arg2[%c0_1, %c0_2] : memref<1x128xf32, #tpu.memory_space<vmem>>, vector<1x128xf32>
    %3 = vector.broadcast %2 : vector<1x128xf32> to vector<128x128xf32>
    %4 = arith.mulf %1, %3 : vector<128x128xf32>
    %c0_3 = arith.constant 0 : index
    %c0_4 = arith.constant 0 : index
    %5 = vector.load %arg3[%c0_3, %c0_4] : memref<1x128xf32, #tpu.memory_space<vmem>>, vector<1x128xf32>
    %6 = vector.broadcast %5 : vector<1x128xf32> to vector<128x128xf32>
    %7 = arith.addf %4, %6 : vector<128x128xf32>
    %cst = arith.constant 0.000000e+00 : f32
    %8 = vector.broadcast %cst : f32 to vector<128x128xf32>
    %9 = arith.maximumf %7, %8 : vector<128x128xf32>
    %10 = arith.truncf %9 : vector<128x128xf32> to vector<128x128xbf16>
    %c0_5 = arith.constant 0 : index
    %c0_6 = arith.constant 0 : index
    %11 = vector.load %arg4[%c0_5, %c0_6] : memref<128x128xbf16, #tpu.memory_space<vmem>>, vector<128x128xbf16>
    tpu.vector_store %arg4[%c0_5, %c0_6], %10 {strides = array<i32>} : memref<128x128xbf16, #tpu.memory_space<vmem>>, vector<128x128xbf16>,
    return
  }
  func.func @transform_0(%arg0: i32) -> (i32, i32) {
    %c0_i32 = arith.constant 0 : i32
    %c0_i32_0 = arith.constant 0 : i32
    return %arg0, %c0_i32 : i32, i32
  }
  func.func @transform_1(%arg0: i32) -> (i32, i32) {
    %c0_i32 = arith.constant 0 : i32
    %c0_i32_0 = arith.constant 0 : i32
    %c0_i32_1 = arith.constant 0 : i32
    return %c0_i32, %c0_i32_0 : i32, i32
  }
  func.func @transform_2(%arg0: i32) -> (i32, i32) {
    %c0_i32 = arith.constant 0 : i32
    %c0_i32_0 = arith.constant 0 : i32
    %c0_i32_1 = arith.constant 0 : i32
    return %c0_i32, %c0_i32_0 : i32, i32
  }
  func.func @transform_3(%arg0: i32) -> (i32, i32) {
    %c0_i32 = arith.constant 0 : i32
    %c0_i32_0 = arith.constant 0 : i32
    return %arg0, %c0_i32 : i32, i32
  }
}

module attributes {stable_mosaic.version = 11 : i64} {
  func.func @_affine_res_kernel(%arg0: i32, %arg1: memref<128x128xbf16, #tpu.memory_space<vmem>>, %arg2: memref<1x128xf32, #tpu.memory_space<vmem>>, %arg3: memref<1x128xf32, #tpu.memory_space<vmem>>, %arg4: memref<128x128xbf16, #tpu.memory_space<vmem>>, %arg5: memref<128x128xf32, #tpu.memory_space<vmem>>) attributes {dimension_semantics = [#tpu.dimension_semantics<parallel>], iteration_bounds = array<i64: 1>, scalar_prefetch = 0 : i64, scratch_operands = 0 : i64, tpu.core_type = #tpu.core_type<tc>, window_params = [{transform_indices = @transform_0, window_bounds = array<i64: 128, 128>}, {pipeline_mode = #tpu.pipeline_mode<synchronous>, transform_indices = @transform_1, window_bounds = array<i64: 1, 128>}, {pipeline_mode = #tpu.pipeline_mode<synchronous>, transform_indices = @transform_2, window_bounds = array<i64: 1, 128>}, {transform_indices = @transform_3, window_bounds = array<i64: 128, 128>}, {transform_indices = @transform_4, window_bounds = array<i64: 128, 128>}]} {
    %c0 = arith.constant 0 : index
    %c0_0 = arith.constant 0 : index
    %0 = vector.load %arg1[%c0, %c0_0] : memref<128x128xbf16, #tpu.memory_space<vmem>>, vector<128x128xbf16>
    %1 = arith.extf %0 : vector<128x128xbf16> to vector<128x128xf32>
    %c0_1 = arith.constant 0 : index
    %c0_2 = arith.constant 0 : index
    %2 = vector.load %arg2[%c0_1, %c0_2] : memref<1x128xf32, #tpu.memory_space<vmem>>, vector<1x128xf32>
    %3 = vector.broadcast %2 : vector<1x128xf32> to vector<128x128xf32>
    %4 = arith.mulf %1, %3 : vector<128x128xf32>
    %c0_3 = arith.constant 0 : index
    %c0_4 = arith.constant 0 : index
    %5 = vector.load %arg3[%c0_3, %c0_4] : memref<1x128xf32, #tpu.memory_space<vmem>>, vector<1x128xf32>
    %6 = vector.broadcast %5 : vector<1x128xf32> to vector<128x128xf32>
    %7 = arith.addf %4, %6 : vector<128x128xf32>
    %c0_5 = arith.constant 0 : index
    %c0_6 = arith.constant 0 : index
    %8 = vector.load %arg4[%c0_5, %c0_6] : memref<128x128xbf16, #tpu.memory_space<vmem>>, vector<128x128xbf16>
    %9 = arith.extf %8 : vector<128x128xbf16> to vector<128x128xf32>
    %10 = arith.addf %7, %9 : vector<128x128xf32>
    %cst = arith.constant 0.000000e+00 : f32
    %11 = vector.broadcast %cst : f32 to vector<128x128xf32>
    %12 = arith.maximumf %10, %11 : vector<128x128xf32>
    %c0_7 = arith.constant 0 : index
    %c0_8 = arith.constant 0 : index
    %13 = vector.load %arg5[%c0_7, %c0_8] : memref<128x128xf32, #tpu.memory_space<vmem>>, vector<128x128xf32>
    tpu.vector_store %arg5[%c0_7, %c0_8], %12 {strides = array<i32>} : memref<128x128xf32, #tpu.memory_space<vmem>>, vector<128x128xf32>,
    return
  }
  func.func @transform_0(%arg0: i32) -> (i32, i32) {
    %c0_i32 = arith.constant 0 : i32
    %c0_i32_0 = arith.constant 0 : i32
    return %arg0, %c0_i32 : i32, i32
  }
  func.func @transform_1(%arg0: i32) -> (i32, i32) {
    %c0_i32 = arith.constant 0 : i32
    %c0_i32_0 = arith.constant 0 : i32
    %c0_i32_1 = arith.constant 0 : i32
    return %c0_i32, %c0_i32_0 : i32, i32
  }
  func.func @transform_2(%arg0: i32) -> (i32, i32) {
    %c0_i32 = arith.constant 0 : i32
    %c0_i32_0 = arith.constant 0 : i32
    %c0_i32_1 = arith.constant 0 : i32
    return %c0_i32, %c0_i32_0 : i32, i32
  }
  func.func @transform_3(%arg0: i32) -> (i32, i32) {
    %c0_i32 = arith.constant 0 : i32
    %c0_i32_0 = arith.constant 0 : i32
    return %arg0, %c0_i32 : i32, i32
  }
  func.func @transform_4(%arg0: i32) -> (i32, i32) {
    %c0_i32 = arith.constant 0 : i32
    %c0_i32_0 = arith.constant 0 : i32
    return %arg0, %c0_i32 : i32, i32
  }
}

</mosaic_0001>

<bundles_post_ra>
// kernel: tile.27
= control target key start
LH: loop header
LB: loop body
LE: loop exit
PB: predicated region body
PF: predicated region fallthrough
CT: control target
= control target key end

     0   :  { %s22_s0 = inlined_call_operand.vmem [shape: f32[32], index: 0, kind: input, shape index: {}]   ;;  %s23_s1 = inlined_call_operand.vmem [shape: f32[4,32], index: 1, kind: output, shape index: {}]  }
   0x1   :  { %v4_v0 = vld [vmem:[%s22_s0] ss:$0 sm:$0xff] }
   0x2   :  { %5 = vst [vmem:[%s23_s1] sm:$0xf] %v4_v0 }

// kernel: tile.29
= control target key start
LH: loop header
LB: loop body
LE: loop exit
PB: predicated region body
PF: predicated region fallthrough
CT: control target
= control target key end

     0   :  { %vm7_vm0 = vcmask 261120   ;;  %s37_s8 = smov 32   ;;  %s38_s9 = smov 64   ;;  %vm13_vm1 = vcmask 1048320   ;;  %vm19_vm2 = vcmask 785920   ;;  %vm25_vm3 = vcmask 523520   ;;  %s55_s0 = inlined_call_operand.vmem [shape: f32[4,32], index: 0, kind: input, shape index: {}]   ;;  %s56_s1 = inlined_call_operand.vmem [shape: f32[1,128], index: 1, kind: output, shape index: {}]  }
   0x1   :  { %v4_v0 = vld [vmem:[%s55_s0] sm:$0xf]  ;;  %s36_s0 = smov 96  }
   0x2   :  { %5 = vst [vmem:[#allocation1] sm:$0xf] %v4_v0 }
   0x9   :  { %v10_v1 = vld [vmem:[#allocation1 + $0x3] sm:$0x1]   ;;  %v22_v2 = vld [vmem:[#allocation1 + $0x1] sm:$0x1]   ;;  %v6_v3 = vld [vmem:[#allocation1] sm:$0x1]  }
   0xa   :  { %11 = vrot.lane.b32.xlu0 %v10_v1, %s36_s0  ;;  %23 = vrot.lane.b32.xlu1 %v22_v2, %s37_s8  ;;  %v16_v4 = vld [vmem:[#allocation1 + $0x2] sm:$0x1]   ;;  %8 = vst.msk [vmem:[#allocation0] sm:$0x1] %vm7_vm0, %v6_v3  }
   0xe   :  { %17 = vrot.lane.b32.xlu0 %v16_v4, %s38_s9 }
  0x7c   :  { %v12_v5 = vpop.permute.xlu0 %11   ;;  %v24_v6 = vpop.permute.xlu1 %23  }
  0x7d   :  { %14 = vst.msk [vmem:[#allocation0] sm:$0x1] %vm13_vm1, %v12_v5  }
  0x80   :  { %v18_v7 = vpop.permute.xlu0 %17  }
  0x81   :  { %20 = vst.msk [vmem:[#allocation0] sm:$0x1] %vm19_vm2, %v18_v7  }
  0x82   :  { %26 = vst.msk [vmem:[#allocation0] sm:$0x1] %vm25_vm3, %v24_v6  }
  0x89   :  { %v30_v8 = vld [vmem:[#allocation0] sm:$0x1] }
  0x8a   :  { %32 = vst [vmem:[%s56_s1] sm:$0x1] %v30_v8 }

// kernel: _lambda_.5
= control target key start
LH: loop header
LB: loop body
LE: loop exit
PB: predicated region body
PF: predicated region fallthrough
CT: control target
= control target key end

     0   :  { %s422_s0 = inlined_call_operand.vmem [shape: bf16[128,128], index: 0, kind: input, shape index: {}]   ;;  %s423_s1 = inlined_call_operand.vmem [shape: f32[1,128], index: 1, kind: input, shape index: {}]   ;;  %s424_s2 = inlined_call_operand.vmem [shape: f32[1,128], index: 2, kind: input, shape index: {}]   ;;  %s425_s3 = inlined_call_operand.vmem [shape: bf16[128,128], index: 3, kind: output, shape index: {}]  }
   0x1   :  { %v227_v0 = vld [vmem:[%s422_s0] sm:$0xff]   ;;  %v298_v4 = vld [vmem:[%s422_s0 + $0x8] sm:$0xff]   ;;  %v299_v5 = vld [vmem:[%s422_s0 + $0x10] sm:$0xff]  }
   0x2   :  { %v338_v1 = vld [vmem:[%s423_s1] ss:$0 sm:$0xff]  ;;  %v228_v2 = vunpack.c.l.bf16 %v227_v0  ;;  %v229_v3 = vunpack.c.h.bf16 %v227_v0  ;;  %v300_v6 = vld [vmem:[%s422_s0 + $0x18] sm:$0xff]   ;;  %v232_v8 = vunpack.c.l.bf16 %v298_v4  ;;  %v233_v9 = vunpack.c.h.bf16 %v298_v4  ;;  %v302_v33 = vld [vmem:[%s422_s0 + $0x28] sm:$0xff]  }
   0x3   :  { %v352_v7 = vld [vmem:[%s424_s2] ss:$0 sm:$0xff]  ;;  %v236_v10 = vunpack.c.l.bf16 %v299_v5  ;;  %v237_v11 = vunpack.c.h.bf16 %v299_v5  ;;  %v240_v14 = vunpack.c.l.bf16 %v300_v6  ;;  %v241_v15 = vunpack.c.h.bf16 %v300_v6  ;;  %v303_v38 = vld [vmem:[%s422_s0 + $0x30] sm:$0xff]   ;;  %v304_v43 = vld [vmem:[%s422_s0 + $0x38] sm:$0xff]  }
   0x4   :  { %v53_v12 = vmul.f32 %v228_v2, %v338_v1  ;;  %v54_v13 = vmul.f32 %v229_v3, %v338_v1  ;;  %v55_v16 = vmul.f32 %v232_v8, %v338_v1  ;;  %v56_v17 = vmul.f32 %v233_v9, %v338_v1  ;;  %v301_v28 = vld [vmem:[%s422_s0 + $0x20] sm:$0xff]  }
   0x5   :  { %v57_v18 = vmul.f32 %v236_v10, %v338_v1  ;;  %v58_v19 = vmul.f32 %v237_v11, %v338_v1  ;;  %v59_v22 = vmul.f32 %v240_v14, %v338_v1  ;;  %v60_v23 = vmul.f32 %v241_v15, %v338_v1 }
   0x6   :  { %v76_v20 = vadd.f32 %v352_v7, %v53_v12  ;;  %v77_v21 = vadd.f32 %v352_v7, %v54_v13  ;;  %v78_v24 = vadd.f32 %v352_v7, %v55_v16  ;;  %v79_v25 = vadd.f32 %v352_v7, %v56_v17 }
   0x7   :  { %v80_v26 = vadd.f32 %v352_v7, %v57_v18  ;;  %v81_v27 = vadd.f32 %v352_v7, %v58_v19  ;;  %v82_v31 = vadd.f32 %v352_v7, %v59_v22  ;;  %v83_v32 = vadd.f32 %v352_v7, %v60_v23 }
   0x8   :  { %v92_v29 = vmax.f32 %v76_v20, 0.0  ;;  %v93_v30 = vmax.f32 %v77_v21, 0.0  ;;  %v94_v34 = vmax.f32 %v78_v24, 0.0  ;;  %v95_v35 = vmax.f32 %v79_v25, 0.0 }
   0x9   :  { %v96_v36 = vmax.f32 %v80_v26, 0.0  ;;  %v97_v37 = vmax.f32 %v81_v27, 0.0  ;;  %v98_v40 = vmax.f32 %v82_v31, 0.0  ;;  %v99_v41 = vmax.f32 %v83_v32, 0.0 }
   0xa   :  { %v261_v39 = vpack.c.bf16 %v93_v30, %v92_v29  ;;  %v244_v42 = vunpack.c.l.bf16 %v301_v28  ;;  %v266_v44 = vpack.c.bf16 %v95_v35, %v94_v34  ;;  %v245_v46 = vunpack.c.h.bf16 %v301_v28 }
   0xb   :  { %v271_v45 = vpack.c.bf16 %v97_v37, %v96_v36  ;;  %v248_v47 = vunpack.c.l.bf16 %v302_v33  ;;  %v276_v48 = vpack.c.bf16 %v99_v41, %v98_v40  ;;  %v249_v50 = vunpack.c.h.bf16 %v302_v33 }
   0xc   :  { %262 = vst [vmem:[%s425_s3] sm:$0xff] %v261_v39   ;;  %v61_v49 = vmul.f32 %v244_v42, %v338_v1  ;;  %v252_v51 = vunpack.c.l.bf16 %v303_v38  ;;  %305 = vst [vmem:[%s425_s3 + $0x8] sm:$0xff] %v266_v44   ;;  %v62_v52 = vmul.f32 %v245_v46, %v338_v1  ;;  %v253_v54 = vunpack.c.h.bf16 %v303_v38 }
   0xd   :  { %306 = vst [vmem:[%s425_s3 + $0x10] sm:$0xff] %v271_v45   ;;  %v63_v53 = vmul.f32 %v248_v47, %v338_v1  ;;  %v256_v55 = vunpack.c.l.bf16 %v304_v43  ;;  %307 = vst [vmem:[%s425_s3 + $0x18] sm:$0xff] %v276_v48   ;;  %v64_v57 = vmul.f32 %v249_v50, %v338_v1  ;;  %v257_v59 = vunpack.c.h.bf16 %v304_v43 }
   0xe   :  { %v84_v56 = vadd.f32 %v352_v7, %v61_v49  ;;  %v65_v58 = vmul.f32 %v252_v51, %v338_v1  ;;  %v85_v60 = vadd.f32 %v352_v7, %v62_v52  ;;  %v66_v62 = vmul.f32 %v253_v54, %v338_v1 }
   0xf   :  { %v86_v61 = vadd.f32 %v352_v7, %v63_v53  ;;  %v67_v63 = vmul.f32 %v256_v55, %v338_v1  ;;  %v87_v2 = vadd.f32 %v352_v7, %v64_v57  ;;  %v68_v4 = vmul.f32 %v257_v59, %v338_v1 }
  0x10   :  { %v100_v0 = vmax.f32 %v84_v56, 0.0  ;;  %v88_v3 = vadd.f32 %v352_v7, %v65_v58  ;;  %v101_v5 = vmax.f32 %v85_v60, 0.0  ;;  %v89_v8 = vadd.f32 %v352_v7, %v66_v62 }
  0x11   :  { %v102_v6 = vmax.f32 %v86_v61, 0.0  ;;  %v90_v9 = vadd.f32 %v352_v7, %v67_v63  ;;  %v103_v10 = vmax.f32 %v87_v2, 0.0  ;;  %v91_v12 = vadd.f32 %v352_v7, %v68_v4 }
  0x12   :  { %v104_v11 = vmax.f32 %v88_v3, 0.0  ;;  %v281_v13 = vpack.c.bf16 %v101_v5, %v100_v0  ;;  %v105_v14 = vmax.f32 %v89_v8, 0.0 }
  0x13   :  { %v106_v15 = vmax.f32 %v90_v9, 0.0  ;;  %v286_v16 = vpack.c.bf16 %v103_v10, %v102_v6  ;;  %v107_v17 = vmax.f32 %v91_v12, 0.0 }
  0x14   :  { %308 = vst [vmem:[%s425_s3 + $0x20] sm:$0xff] %v281_v13   ;;  %v291_v1 = vpack.c.bf16 %v105_v14, %v104_v11 }
  0x15   :  { %309 = vst [vmem:[%s425_s3 + $0x28] sm:$0xff] %v286_v16   ;;  %v296_v18 = vpack.c.bf16 %v107_v17, %v106_v15 }
  0x16   :  { %310 = vst [vmem:[%s425_s3 + $0x30] sm:$0xff] %v291_v1  }
  0x17   :  { %311 = vst [vmem:[%s425_s3 + $0x38] sm:$0xff] %v296_v18  }

// kernel: _lambda_.7
= control target key start
LH: loop header
LB: loop body
LE: loop exit
PB: predicated region body
PF: predicated region fallthrough
CT: control target
= control target key end

     0   :  { %s422_s0 = inlined_call_operand.vmem [shape: bf16[128,128], index: 0, kind: input, shape index: {}]   ;;  %s423_s1 = inlined_call_operand.vmem [shape: f32[1,128], index: 1, kind: input, shape index: {}]   ;;  %s424_s2 = inlined_call_operand.vmem [shape: f32[1,128], index: 2, kind: input, shape index: {}]   ;;  %s425_s3 = inlined_call_operand.vmem [shape: bf16[128,128], index: 3, kind: input, shape index: {}]   ;;  %s426_s4 = inlined_call_operand.vmem [shape: f32[128,128], index: 4, kind: output, shape index: {}]  }
   0x1   :  { %v182_v0 = vld [vmem:[%s422_s0] sm:$0xff]   ;;  %v245_v5 = vld [vmem:[%s422_s0 + $0x8] sm:$0xff]   ;;  %v246_v12 = vld [vmem:[%s422_s0 + $0x10] sm:$0xff]  }
   0x2   :  { %v290_v1 = vld [vmem:[%s423_s1] ss:$0 sm:$0xff]  ;;  %v183_v2 = vunpack.c.l.bf16 %v182_v0  ;;  %v184_v4 = vunpack.c.h.bf16 %v182_v0  ;;  %v252_v6 = vld [vmem:[%s425_s3 + $0x8] sm:$0xff]   ;;  %v187_v10 = vunpack.c.l.bf16 %v245_v5  ;;  %v253_v13 = vld [vmem:[%s425_s3 + $0x10] sm:$0xff]   ;;  %v188_v16 = vunpack.c.h.bf16 %v245_v5 }
   0x3   :  { %v214_v3 = vld [vmem:[%s425_s3] sm:$0xff]   ;;  %v219_v11 = vunpack.c.l.bf16 %v252_v6  ;;  %v220_v17 = vunpack.c.h.bf16 %v252_v6  ;;  %v247_v18 = vld [vmem:[%s422_s0 + $0x18] sm:$0xff]   ;;  %v191_v20 = vunpack.c.l.bf16 %v246_v12  ;;  %v223_v21 = vunpack.c.l.bf16 %v253_v13  ;;  %v249_v54 = vld [vmem:[%s422_s0 + $0x28] sm:$0xff]  }
   0x4   :  { %v304_v7 = vld [vmem:[%s424_s2] ss:$0 sm:$0xff]  ;;  %v215_v8 = vunpack.c.l.bf16 %v214_v3  ;;  %v216_v9 = vunpack.c.h.bf16 %v214_v3  ;;  %v56_v14 = vmul.f32 %v183_v2, %v290_v1  ;;  %v57_v15 = vmul.f32 %v184_v4, %v290_v1  ;;  %v254_v23 = vld [vmem:[%s425_s3 + $0x18] sm:$0xff]   ;;  %v256_v55 = vld [vmem:[%s425_s3 + $0x28] sm:$0xff]  }
   0x5   :  { %v58_v19 = vmul.f32 %v187_v10, %v290_v1  ;;  %v192_v22 = vunpack.c.h.bf16 %v246_v12  ;;  %v59_v26 = vmul.f32 %v188_v16, %v290_v1  ;;  %v224_v27 = vunpack.c.h.bf16 %v253_v13  ;;  %v248_v40 = vld [vmem:[%s422_s0 + $0x20] sm:$0xff]   ;;  %v250_v0 = vld [vmem:[%s422_s0 + $0x30] sm:$0xff]   ;;  %v251_v16 = vld [vmem:[%s422_s0 + $0x38] sm:$0xff]  }
   0x6   :  { %v79_v24 = vadd.f32 %v304_v7, %v56_v14  ;;  %v80_v25 = vadd.f32 %v304_v7, %v57_v15  ;;  %v60_v29 = vmul.f32 %v191_v20, %v290_v1  ;;  %v195_v31 = vunpack.c.l.bf16 %v247_v18  ;;  %v255_v45 = vld [vmem:[%s425_s3 + $0x20] sm:$0xff]   ;;  %v257_v2 = vld [vmem:[%s425_s3 + $0x30] sm:$0xff]  }
   0x7   :  { %v81_v28 = vadd.f32 %v304_v7, %v58_v19  ;;  %v61_v30 = vmul.f32 %v192_v22, %v290_v1  ;;  %v82_v34 = vadd.f32 %v304_v7, %v59_v26  ;;  %v227_v35 = vunpack.c.l.bf16 %v254_v23 }
   0x8   :  { %v127_v32 = vadd.f32 %v215_v8, %v79_v24  ;;  %v128_v33 = vadd.f32 %v216_v9, %v80_v25  ;;  %v83_v37 = vadd.f32 %v304_v7, %v60_v29  ;;  %v62_v39 = vmul.f32 %v195_v31, %v290_v1 }
   0x9   :  { %v129_v36 = vadd.f32 %v219_v11, %v81_v28  ;;  %v84_v38 = vadd.f32 %v304_v7, %v61_v30  ;;  %v130_v43 = vadd.f32 %v220_v17, %v82_v34  ;;  %v196_v44 = vunpack.c.h.bf16 %v247_v18 }
   0xa   :  { %v143_v41 = vmax.f32 %v127_v32, 0.0  ;;  %v144_v42 = vmax.f32 %v128_v33, 0.0  ;;  %v131_v47 = vadd.f32 %v223_v21, %v83_v37  ;;  %v85_v49 = vadd.f32 %v304_v7, %v62_v39  ;;  %v258_v21 = vld [vmem:[%s425_s3 + $0x38] sm:$0xff]  }
   0xb   :  { %v145_v46 = vmax.f32 %v129_v36, 0.0  ;;  %v132_v48 = vadd.f32 %v224_v27, %v84_v38  ;;  %v146_v50 = vmax.f32 %v130_v43, 0.0  ;;  %v63_v51 = vmul.f32 %v196_v44, %v290_v1 }
   0xc   :  { %159 = vst [vmem:[%s426_s4] sm:$0xff] %v143_v41  ;;  %160 = vst [vmem:[%s426_s4 + $0x8] sm:$0xff] %v144_v42  ;;  %v228_v52 = vunpack.c.h.bf16 %v254_v23  ;;  %v199_v53 = vunpack.c.l.bf16 %v248_v40  ;;  %v147_v56 = vmax.f32 %v131_v47, 0.0  ;;  %v133_v58 = vadd.f32 %v227_v35, %v85_v49 }
   0xd   :  { %161 = vst [vmem:[%s426_s4 + $0x10] sm:$0xff] %v145_v46  ;;  %v148_v57 = vmax.f32 %v132_v48, 0.0  ;;  %v231_v59 = vunpack.c.l.bf16 %v255_v45  ;;  %162 = vst [vmem:[%s426_s4 + $0x18] sm:$0xff] %v146_v50  ;;  %v86_v60 = vadd.f32 %v304_v7, %v63_v51  ;;  %v200_v62 = vunpack.c.h.bf16 %v248_v40 }
   0xe   :  { %v64_v61 = vmul.f32 %v199_v53, %v290_v1  ;;  %v232_v63 = vunpack.c.h.bf16 %v255_v45  ;;  %163 = vst [vmem:[%s426_s4 + $0x20] sm:$0xff] %v147_v56  ;;  %v149_v3 = vmax.f32 %v133_v58, 0.0  ;;  %v203_v4 = vunpack.c.l.bf16 %v249_v54 }
   0xf   :  { %164 = vst [vmem:[%s426_s4 + $0x28] sm:$0xff] %v148_v57  ;;  %v235_v5 = vunpack.c.l.bf16 %v256_v55  ;;  %v204_v6 = vunpack.c.h.bf16 %v249_v54  ;;  %v134_v8 = vadd.f32 %v228_v52, %v86_v60  ;;  %v65_v10 = vmul.f32 %v200_v62, %v290_v1 }
  0x10   :  { %v87_v9 = vadd.f32 %v304_v7, %v64_v61  ;;  %v236_v11 = vunpack.c.h.bf16 %v256_v55  ;;  %165 = vst [vmem:[%s426_s4 + $0x30] sm:$0xff] %v149_v3  ;;  %v66_v12 = vmul.f32 %v203_v4, %v290_v1  ;;  %v207_v14 = vunpack.c.l.bf16 %v250_v0 }
  0x11   :  { %v67_v13 = vmul.f32 %v204_v6, %v290_v1  ;;  %v239_v15 = vunpack.c.l.bf16 %v257_v2  ;;  %v150_v17 = vmax.f32 %v134_v8, 0.0  ;;  %v88_v19 = vadd.f32 %v304_v7, %v65_v10 }
  0x12   :  { %v135_v18 = vadd.f32 %v231_v59, %v87_v9  ;;  %v208_v20 = vunpack.c.h.bf16 %v250_v0  ;;  %v89_v22 = vadd.f32 %v304_v7, %v66_v12  ;;  %v68_v24 = vmul.f32 %v207_v14, %v290_v1 }
  0x13   :  { %v90_v23 = vadd.f32 %v304_v7, %v67_v13  ;;  %v240_v25 = vunpack.c.h.bf16 %v257_v2  ;;  %166 = vst [vmem:[%s426_s4 + $0x38] sm:$0xff] %v150_v17  ;;  %v136_v27 = vadd.f32 %v232_v63, %v88_v19  ;;  %v211_v29 = vunpack.c.l.bf16 %v251_v16 }
  0x14   :  { %v151_v26 = vmax.f32 %v135_v18, 0.0  ;;  %v69_v28 = vmul.f32 %v208_v20, %v290_v1  ;;  %v137_v30 = vadd.f32 %v235_v5, %v89_v22  ;;  %v91_v32 = vadd.f32 %v304_v7, %v68_v24 }
  0x15   :  { %v138_v31 = vadd.f32 %v236_v11, %v90_v23  ;;  %v243_v33 = vunpack.c.l.bf16 %v258_v21  ;;  %v152_v34 = vmax.f32 %v136_v27, 0.0  ;;  %v70_v36 = vmul.f32 %v211_v29, %v290_v1 }
  0x16   :  { %167 = vst [vmem:[%s426_s4 + $0x40] sm:$0xff] %v151_v26  ;;  %v92_v35 = vadd.f32 %v304_v7, %v69_v28  ;;  %v212_v37 = vunpack.c.h.bf16 %v251_v16  ;;  %v153_v38 = vmax.f32 %v137_v30, 0.0  ;;  %v139_v40 = vadd.f32 %v239_v15, %v91_v32 }
  0x17   :  { %v154_v39 = vmax.f32 %v138_v31, 0.0  ;;  %168 = vst [vmem:[%s426_s4 + $0x48] sm:$0xff] %v152_v34  ;;  %v93_v42 = vadd.f32 %v304_v7, %v70_v36  ;;  %v244_v44 = vunpack.c.h.bf16 %v258_v21 }
  0x18   :  { %v140_v41 = vadd.f32 %v240_v25, %v92_v35  ;;  %v71_v43 = vmul.f32 %v212_v37, %v290_v1  ;;  %169 = vst [vmem:[%s426_s4 + $0x50] sm:$0xff] %v153_v38  ;;  %v155_v45 = vmax.f32 %v139_v40, 0.0 }
  0x19   :  { %170 = vst [vmem:[%s426_s4 + $0x58] sm:$0xff] %v154_v39  ;;  %v141_v47 = vadd.f32 %v243_v33, %v93_v42 }
  0x1a   :  { %v156_v46 = vmax.f32 %v140_v41, 0.0  ;;  %v94_v48 = vadd.f32 %v304_v7, %v71_v43  ;;  %171 = vst [vmem:[%s426_s4 + $0x60] sm:$0xff] %v155_v45 }
  0x1b   :  { %v157_v1 = vmax.f32 %v141_v47, 0.0 }
  0x1c   :  { %172 = vst [vmem:[%s426_s4 + $0x68] sm:$0xff] %v156_v46  ;;  %v142_v49 = vadd.f32 %v244_v44, %v94_v48 }
  0x1d   :  { %173 = vst [vmem:[%s426_s4 + $0x70] sm:$0xff] %v157_v1 }
  0x1e   :  { %v158_v50 = vmax.f32 %v142_v49, 0.0 }
  0x20   :  { %174 = vst [vmem:[%s426_s4 + $0x78] sm:$0xff] %v158_v50 }

// kernel: _lambda_.4
= control target key start
LH: loop header
LB: loop body
LE: loop exit
PB: predicated region body
PF: predicated region fallthrough
CT: control target
= control target key end

     0   :  { %s4397_s12 = smov 0   ;;  %s6007_s0 = inlined_call_operand.vmem [shape: bf16[2,18,18,32], index: 0, kind: input, shape index: {}]   ;;  %s6008_s1 = inlined_call_operand.vmem [shape: bf16[288,32], index: 1, kind: input, shape index: {}]   ;;  %s6009_s2 = inlined_call_operand.vmem [shape: bf16[2,256,32], index: 2, kind: output, shape index: {0}]   ;;  %s6010_s3 = inlined_call_operand.vmem [shape: f32[2,2,32], index: 3, kind: output, shape index: {1}]  }
   0x1 LB: > { %s3573_s13 = sadd.s32 4294967295, %s4372_s12   ;;  %p3577_p0 = scmp.ge.s32.totalorder %s4372_s12, 1  ;;  %s4372_s12 = sphi %s4397_s12, %s14_s12  }
   0x2   : > { %p140_p1 = scmp.lt.s32.totalorder %s4372_s12, 3 }
   0x4   : > { %p141_p2 = pnand %p3577_p0, %p140_p1 }
   0x5   : > { %p168_p3 = scmp.lt.s32.totalorder (!%p141_p2), %s3573_s13, 1  ;;  %v4316_v0 = vld [vmem:[%s6008_s1 + $0x40] sm:$0xff] (!%p141_p2)   ;;  %v4320_v2 = vld [vmem:[%s6008_s1 + $0x48] sm:$0xff] (!%p141_p2)   ;;  %v4322_v4 = vld [vmem:[%s6008_s1 + $0x50] sm:$0xff] (!%p141_p2)   ;;  %vm778_vm0 = vcmask (!%p141_p2), 1045504   ;;  %vm424_vm1 = vcmask (!%p141_p2), 1046528  }
   0x6   : > { %144 = sbr.rel (%p141_p2) target bundleno = 593 (0x251), region = 28  ;;  %v4318_v1 = vld [vmem:[%s6008_s1] sm:$0xff] (!%p141_p2)   ;;  %4106 = vmatprep.subr.bf16.mxu0 (!%p141_p2), %v4316_v0  ;;  %4272 = vmatprep.subr.bf16.mxu1 (!%p141_p2), %v4316_v0  ;;  %v4321_v3 = vld [vmem:[%s6008_s1 + $0x8] sm:$0xff] (!%p141_p2)   ;;  %v4323_v5 = vld [vmem:[%s6008_s1 + $0x10] sm:$0xff] (!%p141_p2)   ;;  %s4374_s30 = smov (!%p141_p2), 64   ;;  %vm263_vm2 = vcmask (!%p141_p2), 261120  }
   0x7   : > { %4107 = vmatpush3.bf16.msra.mxu0 (!%p141_p2), %v4318_v1  ;;  %4280 = vmatpush3.bf16.msra.mxu1 (!%p141_p2), %v4318_v1  ;;  %s4375_s4 = smov (!%p141_p2), 96   ;;  %s4376_s5 = smov (!%p141_p2), 32   ;;  %vm617_vm3 = vcmask (!%p141_p2), 523520   ;;  %vm971_vm4 = vcmask (!%p141_p2), 785920   ;;  %vm1133_vm5 = vcmask (!%p141_p2), 1048320   ;;  %vm3281_vm6 = vcmask (!%p141_p2), 257024  }
   0x8   : > { %4108 = vmatprep.subr.bf16.mxu0 (!%p141_p2), %v4320_v2  ;;  %4273 = vmatprep.subr.bf16.mxu1 (!%p141_p2), %v4320_v2  ;;  %vm3383_vm7 = vcmask (!%p141_p2), 253952  }
   0xb   : > { %4109 = vmatpush3.bf16.msra.mxu0 (!%p141_p2), %v4321_v3  ;;  %4281 = vmatpush3.bf16.msra.mxu1 (!%p141_p2), %v4321_v3 }
   0xc   : > { %4110 = vmatprep.subr.bf16.mxu0 (!%p141_p2), %v4322_v4  ;;  %4274 = vmatprep.subr.bf16.mxu1 (!%p141_p2), %v4322_v4 }
   0xd   : > { %s6015_s13 = smov (!%p168_p3, %s3573_s13), 1 }
   0xe   : > { %s4288_s20 = smul.u32 216, %s6015_s13  ;;  %s3581_s9 = sshll.u32 %s6015_s13, 1 }
   0xf   : > { %4111 = vmatpush3.bf16.msra.mxu0 %v4323_v5  ;;  %4282 = vmatpush3.bf16.msra.mxu1 %v4323_v5  ;;  %s181_s14 = scalar_lea.vmem %s6010_s3, %s3581_s9 }
  0x10   : > { %s4426_s27 = scalar_lea.vmem %s6007_s0, %s4288_s20 }
  0x11   : > { %v4300_v6 = vld [vmem:[%s4426_s27 + $0x18] sm:$0xff]   ;;  %v4301_v7 = vld [vmem:[%s4426_s27 + $0xc] sm:$0xff]   ;;  %v3696_v10 = vld [vmem:[%s4426_s27 + $0x14] sm:$0x1] }
  0x12   : > { %1887 = vrot.lane.b32.xlu1 %v4300_v6, %s4374_s30  ;;  %v3694_v8 = vld [vmem:[%s4426_s27 + $0xc] sm:$0xe]  ;;  %v1488_v13 = vunpack.c.l.bf16 %v3696_v10  ;;  %v634_v14 = vld [vmem:[%s4426_s27] sm:$0xe]  ;;  %v635_v15 = vld [vmem:[%s4426_s27 + $0x4] ss:$12 sps:$4 sm:$0xff]  }
  0x13   : > { %v3695_v9 = vld [vmem:[%s4426_s27 + $0xc] sm:$0xff]   ;;  %v1486_v11 = vunpack.c.l.bf16 %v3694_v8  ;;  %v636_v16 = vld [vmem:[%s4426_s27 + $0x8] sm:$0x1]  ;;  %v682_v18 = vunpack.c.l.bf16 %v634_v14  ;;  %v683_v19 = vunpack.c.l.bf16 %v635_v15  ;;  %v3988_v21 = vld [vmem:[%s4426_s27] sm:$0xff]   ;;  %v332_v23 = vunpack.c.h.bf16 %v635_v15 }
  0x14   : > { %v1487_v12 = vunpack.c.h.bf16 %v3695_v9  ;;  %v331_v17 = vunpack.c.l.bf16 %v3695_v9  ;;  %v684_v20 = vunpack.c.l.bf16 %v636_v16  ;;  %v282_v22 = vld [vmem:[%s4426_s27 + $0x8] sm:$0x1]  ;;  %v1585_v26 = vrot.slane %v1488_v13, 2  ;;  %v285_v32 = vld [vmem:[%s4426_s27 + $0x14] sm:$0x1]  ;;  %v4098_v37 = vld [vmem:[%s4426_s27 + $0x18] sm:$0xff]  }
  0x15   : > { %v1582_v24 = vrot.slane %v1486_v11, 2  ;;  %v3989_v27 = vunpack.c.l.bf16 %v3988_v21  ;;  %v779_v28 = vrot.slane %v682_v18, 2  ;;  %v780_v29 = vrot.slane %v683_v19, 2  ;;  %v3792_v38 = vld [vmem:[%s4426_s27 + $0x20] sm:$0x1]  ;;  %v4088_v4 = vld [vmem:[%s4426_s27 + $0x90] sm:$0xff]  }
  0x16   : > { %v1583_v25 = vrot.slane %v1487_v12, 2  ;;  %1085 = vrot.lane.b32.xlu1 %v4301_v7, %s4375_s4  ;;  %v782_v30 = vrot.slane %v684_v20, 2  ;;  %v3990_v31 = vunpack.c.h.bf16 %v3988_v21  ;;  %v330_v35 = vunpack.c.l.bf16 %v282_v22  ;;  %v637_v39 = vld [vmem:[%s4426_s27 + $0xc] sm:$0xe]  ;;  %v638_v44 = vld [vmem:[%s4426_s27 + $0x10] ss:$12 sps:$4 sm:$0xff]  }
  0x17   : > { %v425_v36 = vrot.slane %v3989_v27, 1  ;;  %v781_v41 = vsel %vm778_vm0, %v779_v28, %v780_v29  ;;  %v639_v45 = vld [vmem:[%s4426_s27 + $0x14] sm:$0x1]  ;;  %v333_v48 = vunpack.c.l.bf16 %v285_v32  ;;  %v430_v49 = vrot.slane %v331_v17, 1  ;;  %v3697_v58 = vld [vmem:[%s4426_s27 + $0x18] sm:$0xe] }
  0x18   : > { %v1584_v33 = vsel %vm778_vm0, %v1582_v24, %v1583_v25  ;;  %v1586_v34 = vsel %vm778_vm0, %v1583_v25, %v1585_v26  ;;  %v783_v42 = vsel %vm778_vm0, %v780_v29, %v782_v30  ;;  %v426_v43 = vrot.slane %v3990_v31, 1  ;;  %v3699_v3 = vld [vmem:[%s4426_s27 + $0x20] sm:$0x1]  ;;  %v318_v9 = vld [vmem:[%s4426_s27 + $0x98] sm:$0x1]  ;;  %v3793_v18 = vld [vmem:[%s4426_s27 + $0x24] sm:$0xff]  }
  0x19   : > { %v1694_v40 = vpack.c.bf16 %v1586_v34, %v1584_v33  ;;  %v891_v46 = vpack.c.bf16 %v783_v42, %v781_v41  ;;  %v428_v47 = vrot.slane %v330_v35, 1  ;;  %v431_v51 = vrot.slane %v332_v23, 1  ;;  %v3795_v23 = vld [vmem:[%s4426_s27 + $0x2c] sm:$0x1]  ;;  %v670_v24 = vld [vmem:[%s4426_s27 + $0x90] sm:$0xe] }
  0x1a   : > { %v427_v50 = vsel %vm424_vm1, %v425_v36, %v426_v43  ;;  %v4053_v52 = vunpack.c.l.bf16 %v4098_v37  ;;  %v4054_v53 = vunpack.c.h.bf16 %v4098_v37  ;;  %v433_v55 = vrot.slane %v333_v48, 1  ;;  %v4481_v29 = vld [vmem:[%s4426_s27 + $0x1c] ss:$120 sps:$4 sm:$0xff]   ;;  %v672_v30 = vld [vmem:[%s4426_s27 + $0x98] sm:$0x1] }
  0x1b   : > { %1726 = vrot.lane.b32.xlu0 %v1694_v40, %s4376_s5  ;;  %923 = vrot.lane.b32.xlu1 %v891_v46, %s4374_s30  ;;  %v429_v54 = vsel %vm424_vm1, %v426_v43, %v428_v47  ;;  %v2001_v56 = vunpack.c.l.bf16 %v3792_v38  ;;  %v685_v57 = vunpack.c.l.bf16 %v637_v39  ;;  %v432_v60 = vsel %vm424_vm1, %v430_v49, %v431_v51  ;;  %v3730_v35 = vld [vmem:[%s4426_s27 + $0x9c] sm:$0xe] }
  0x1c   : > { %v537_v59 = vpack.c.bf16 %v429_v54, %v427_v50  ;;  %v2095_v61 = vrot.slane %v4053_v52, 1  ;;  %v4459_v62 = vrot.slane %v4054_v53, 1  ;;  %v434_v63 = vsel %vm424_vm1, %v431_v51, %v433_v55  ;;  %v4302_v37 = vld [vmem:[%s4426_s27 + $0x18] sm:$0xff]   ;;  %v3732_v50 = vld [vmem:[%s4426_s27 + $0xa4] sm:$0x1]  ;;  %v4104_v51 = vld [vmem:[%s4426_s27 + $0xa8] sm:$0xff]  }
  0x1d   : > { %v2098_v0 = vrot.slane %v2001_v56, 1  ;;  %v686_v1 = vunpack.c.l.bf16 %v638_v44  ;;  %v687_v2 = vunpack.c.l.bf16 %v639_v45  ;;  %v538_v5 = vpack.c.bf16 %v434_v63, %v432_v60  ;;  %v4491_v45 = vld [vmem:[%s4426_s27 + $0x9c] sm:$0xff]   ;;  %v4303_v52 = vld [vmem:[%s4426_s27 + $0x24] sm:$0xff]  }
  0x1e   : > { %v4467_v6 = vsel %vm424_vm1, %v2095_v61, %v4459_v62  ;;  %v784_v7 = vrot.slane %v685_v57, 2  ;;  %v1489_v8 = vunpack.c.l.bf16 %v3697_v58  ;;  %v1490_v13 = vunpack.c.h.bf16 %v638_v44  ;;  %v3828_v61 = vld [vmem:[%s4426_s27 + $0xb0] sm:$0x1]  ;;  %v3700_v63 = vld [vmem:[%s4426_s27 + $0x24] sm:$0xe] }
  0x1f   : > { %569 = vrot.lane.b32.xlu0 %v537_v59, %s4376_s5  ;;  %v2099_v10 = vsel %vm424_vm1, %v4459_v62, %v2098_v0  ;;  %v785_v11 = vrot.slane %v686_v1, 2  ;;  %v787_v12 = vrot.slane %v687_v2, 2  ;;  %571 = vrot.lane.b32.xlu1 %v538_v5, %s4376_s5  ;;  %v1491_v15 = vunpack.c.l.bf16 %v3699_v3  ;;  %v3702_v5 = vld [vmem:[%s4426_s27 + $0x2c] sm:$0x1] }
  0x20   : > { %v2207_v14 = vpack.c.bf16 %v2099_v10, %v4467_v6  ;;  %v1587_v16 = vrot.slane %v1489_v8, 2  ;;  %v4013_v17 = vunpack.c.l.bf16 %v4088_v4  ;;  %v1588_v21 = vrot.slane %v1490_v13, 2 }
  0x21   : > { %v786_v19 = vsel %vm778_vm0, %v784_v7, %v785_v11  ;;  %v788_v20 = vsel %vm778_vm0, %v785_v11, %v787_v12  ;;  %v4014_v22 = vunpack.c.h.bf16 %v4088_v4  ;;  %v1590_v26 = vrot.slane %v1491_v15, 2  ;;  %v4506_v4 = vld [vmem:[%s4426_s27 + $0x24] sm:$0xff]   ;;  %v640_v7 = vld [vmem:[%s4426_s27 + $0x18] sm:$0xe] }
  0x22   : > { %v892_v25 = vpack.c.bf16 %v788_v20, %v786_v19  ;;  %v366_v27 = vunpack.c.l.bf16 %v318_v9  ;;  %v485_v28 = vrot.slane %v4013_v17, 1  ;;  %v1589_v31 = vsel %vm778_vm0, %v1587_v16, %v1588_v21  ;;  %v642_v20 = vld [vmem:[%s4426_s27 + $0x20] sm:$0x1] }
  0x23   : > { %2239 = vrot.lane.b32.xlu0 %v2207_v14, %s4375_s4  ;;  %v486_v32 = vrot.slane %v4014_v22, 1  ;;  %v2002_v33 = vunpack.c.l.bf16 %v3793_v18  ;;  %v2003_v34 = vunpack.c.h.bf16 %v3793_v18  ;;  %v1591_v36 = vsel %vm778_vm0, %v1588_v21, %v1590_v26 }
  0x24   : > { %925 = vrot.lane.b32.xlu1 %v892_v25, %s4374_s30  ;;  %v488_v38 = vrot.slane %v366_v27, 1  ;;  %v2004_v39 = vunpack.c.l.bf16 %v3795_v23  ;;  %v718_v40 = vunpack.c.l.bf16 %v670_v24  ;;  %v1695_v41 = vpack.c.bf16 %v1591_v36, %v1589_v31  ;;  %v288_v25 = vld [vmem:[%s4426_s27 + $0x20] sm:$0x1]  ;;  %v321_v36 = vld [vmem:[%s4426_s27 + $0xa4] sm:$0x1] }
  0x25   : > { %v487_v42 = vsel %vm424_vm1, %v485_v28, %v486_v32  ;;  %v2100_v43 = vrot.slane %v2002_v33, 1  ;;  %v2101_v44 = vrot.slane %v2003_v34, 1  ;;  %v719_v48 = vunpack.c.h.bf16 %v4481_v29  ;;  %v4526_v31 = vld [vmem:[%s4426_s27 + $0xa0] ss:$12 sps:$4 sm:$0xff]  }
  0x26   : > { %v489_v46 = vsel %vm424_vm1, %v486_v32, %v488_v38  ;;  %v2103_v47 = vrot.slane %v2004_v39, 1  ;;  %v720_v49 = vunpack.c.l.bf16 %v672_v30  ;;  %v839_v55 = vrot.slane %v718_v40, 2 }
  0x27   : > { %1728 = vrot.lane.b32.xlu0 %v1695_v41, %s4376_s5  ;;  %v549_v53 = vpack.c.bf16 %v489_v46, %v487_v42  ;;  %v2102_v54 = vsel %vm424_vm1, %v2100_v43, %v2101_v44  ;;  %v1522_v56 = vunpack.c.l.bf16 %v3730_v35  ;;  %v840_v58 = vrot.slane %v719_v48, 2  ;;  %v4099_v41 = vld [vmem:[%s4426_s27 + $0x30] sm:$0xff]   ;;  %v4304_v46 = vld [vmem:[%s4426_s27 + $0xa8] sm:$0xff]  }
  0x28   : > { %1087 = vrot.lane.b32.xlu1 %v4302_v37, %s4375_s4  ;;  %v2104_v57 = vsel %vm424_vm1, %v2101_v44, %v2103_v47  ;;  %v842_v59 = vrot.slane %v720_v49, 2  ;;  %v1523_v60 = vunpack.c.h.bf16 %v4491_v45  ;;  %v1524_v1 = vunpack.c.l.bf16 %v3732_v50 }
  0x29   : > { %v2208_v0 = vpack.c.bf16 %v2104_v57, %v2102_v54  ;;  %v1642_v2 = vrot.slane %v1522_v56, 2  ;;  %v4077_v3 = vunpack.c.l.bf16 %v4104_v51  ;;  %v841_v8 = vsel %vm778_vm0, %v839_v55, %v840_v58  ;;  %v673_v57 = vld [vmem:[%s4426_s27 + $0x9c] sm:$0xe] }
  0x2a   : > { %v843_v9 = vsel %vm778_vm0, %v840_v58, %v842_v59  ;;  %v1643_v10 = vrot.slane %v1523_v60, 2  ;;  %v4078_v11 = vunpack.c.h.bf16 %v4104_v51  ;;  %v1645_v13 = vrot.slane %v1524_v1, 2  ;;  %v3798_v51 = vld [vmem:[%s4426_s27 + $0x38] sm:$0x1] }
  0x2b   : > { %1889 = vrot.lane.b32.xlu0 %v4303_v52, %s4374_s30  ;;  %v903_v12 = vpack.c.bf16 %v843_v9, %v841_v8  ;;  %v2037_v14 = vunpack.c.l.bf16 %v3828_v61  ;;  %v2155_v15 = vrot.slane %v4077_v3, 1  ;;  %v1492_v18 = vunpack.c.l.bf16 %v3700_v63  ;;  %v4305_v52 = vld [vmem:[%s4426_s27 + $0x9c] sm:$0xff]   ;;  %v675_v63 = vld [vmem:[%s4426_s27 + $0xa4] sm:$0x1] }
  0x2c   : > { %593 = vrot.lane.b32.xlu1 %v549_v53, %s4376_s5  ;;  %v1644_v16 = vsel %vm778_vm0, %v1642_v2, %v1643_v10  ;;  %v4515_v17 = vrot.slane %v4078_v11, 1  ;;  %v1493_v19 = vunpack.c.h.bf16 %v4506_v4  ;;  %v1646_v21 = vsel %vm778_vm0, %v1643_v10, %v1645_v13  ;;  %v3735_v10 = vld [vmem:[%s4426_s27 + $0xb0] sm:$0x1] }
  0x2d   : > { %v2158_v22 = vrot.slane %v2037_v14, 1  ;;  %v1494_v23 = vunpack.c.l.bf16 %v3702_v5  ;;  %v688_v24 = vunpack.c.l.bf16 %v640_v7  ;;  %v1706_v26 = vpack.c.bf16 %v1646_v21, %v1644_v16 }
  0x2e   : > { %v4523_v27 = vsel %vm424_vm1, %v2155_v15, %v4515_v17  ;;  %v1592_v28 = vrot.slane %v1492_v18, 2  ;;  %v1593_v30 = vrot.slane %v1493_v19, 2  ;;  %v689_v34 = vunpack.c.l.bf16 %v4481_v29  ;;  %v3829_v19 = vld [vmem:[%s4426_s27 + $0xb4] sm:$0xff]  }
  0x2f   : > { %2241 = vrot.lane.b32.xlu0 %v2208_v0, %s4375_s4  ;;  %v2159_v32 = vsel %vm424_vm1, %v4515_v17, %v2158_v22  ;;  %v1595_v33 = vrot.slane %v1494_v23, 2  ;;  %v690_v35 = vunpack.c.l.bf16 %v642_v20  ;;  %v789_v39 = vrot.slane %v688_v24, 2  ;;  %v3733_v0 = vld [vmem:[%s4426_s27 + $0xa8] sm:$0xe]  ;;  %v3831_v20 = vld [vmem:[%s4426_s27 + $0xbc] sm:$0x1] }
  0x30   : > { %947 = vrot.lane.b32.xlu1 %v903_v12, %s4374_s30  ;;  %v2219_v37 = vpack.c.bf16 %v2159_v32, %v4523_v27  ;;  %v1594_v38 = vsel %vm778_vm0, %v1592_v28, %v1593_v30  ;;  %v336_v40 = vunpack.c.l.bf16 %v288_v25  ;;  %v790_v43 = vrot.slane %v689_v34, 2  ;;  %v3703_v25 = vld [vmem:[%s4426_s27 + $0x30] sm:$0xe] }
  0x31   : > { %v1596_v42 = vsel %vm778_vm0, %v1593_v30, %v1595_v33  ;;  %v792_v44 = vrot.slane %v690_v35, 2  ;;  %v367_v29 = vunpack.c.l.bf16 %v4491_v45  ;;  %v368_v49 = vunpack.c.l.bf16 %v4526_v31  ;;  %v4548_v45 = vld [vmem:[%s4426_s27 + $0x34] ss:$108 sps:$4 sm:$0xff]  }
  0x32   : > { %v1696_v47 = vpack.c.bf16 %v1596_v42, %v1594_v38  ;;  %v438_v48 = vrot.slane %v336_v40, 1  ;;  %v369_v50 = vunpack.c.l.bf16 %v321_v36  ;;  %v791_v53 = vsel %vm778_vm0, %v789_v39, %v790_v43  ;;  %v3705_v36 = vld [vmem:[%s4426_s27 + $0x38] sm:$0x1]  ;;  %v643_v42 = vld [vmem:[%s4426_s27 + $0x24] sm:$0xe] }
  0x33   : > { %1750 = vrot.lane.b32.xlu0 %v1706_v26, %s4376_s5  ;;  %v793_v54 = vsel %vm778_vm0, %v790_v43, %v792_v44  ;;  %v490_v55 = vrot.slane %v367_v29, 1  ;;  %v4057_v56 = vunpack.c.l.bf16 %v4099_v41  ;;  %v491_v60 = vrot.slane %v368_v49, 1  ;;  %v4601_v43 = vld [vmem:[%s4426_s27 + $0x28] ss:$132 sps:$4 sm:$0xff]  }
  0x34   : > { %2263 = vrot.lane.b32.xlu1 %v2219_v37, %s4375_s4  ;;  %v893_v58 = vpack.c.bf16 %v793_v54, %v791_v53  ;;  %v439_v59 = vsel %vm424_vm1, %v4459_v62, %v438_v48  ;;  %v493_v61 = vrot.slane %v369_v50, 1  ;;  %v4058_v2 = vunpack.c.h.bf16 %v4099_v41  ;;  %v4306_v37 = vld [vmem:[%s4426_s27 + $0x24] sm:$0xff]   ;;  %v645_v48 = vld [vmem:[%s4426_s27 + $0x2c] sm:$0x1] }
  0x35   : > { %v539_v1 = vpack.c.bf16 %v439_v59, %v4467_v6  ;;  %v2007_v3 = vunpack.c.l.bf16 %v3798_v51  ;;  %v2105_v5 = vrot.slane %v4057_v56, 1  ;;  %v4557_v7 = vsel %vm424_vm1, %v490_v55, %v491_v60  ;;  %v4611_v53 = vld [vmem:[%s4426_s27 + $0x28] ss:$12 sps:$4 sm:$0xff]   ;;  %v291_v54 = vld [vmem:[%s4426_s27 + $0x2c] sm:$0x1] }
  0x36   : > { %v4560_v8 = vsel %vm424_vm1, %v491_v60, %v493_v61  ;;  %v721_v9 = vunpack.c.l.bf16 %v673_v57  ;;  %v722_v62 = vunpack.c.h.bf16 %v4548_v45  ;;  %v4567_v11 = vrot.slane %v4058_v2, 1  ;;  %v4307_v55 = vld [vmem:[%s4426_s27 + $0x30] sm:$0xff]  }
  0x37   : > { %1911 = vrot.lane.b32.xlu0 %v4304_v46, %s4374_s30  ;;  %v550_v6 = vpack.c.bf16 %v4560_v8, %v4557_v7  ;;  %v2108_v12 = vrot.slane %v2007_v3, 1  ;;  %v723_v13 = vunpack.c.l.bf16 %v675_v63  ;;  %v1525_v16 = vunpack.c.l.bf16 %v3733_v0  ;;  %v324_v59 = vld [vmem:[%s4426_s27 + $0xb0] sm:$0x1] }
  0x38   : > { %1109 = vrot.lane.b32.xlu1 %v4305_v52, %s4375_s4  ;;  %v844_v14 = vrot.slane %v721_v9, 2  ;;  %v845_v15 = vrot.slane %v722_v62, 2  ;;  %v1526_v18 = vunpack.c.h.bf16 %v4526_v31  ;;  %v4575_v21 = vsel %vm424_vm1, %v2105_v5, %v4567_v11  ;;  %v3799_v9 = vld [vmem:[%s4426_s27 + $0x3c] sm:$0xff]  }
  0x39   : > { %v4579_v22 = vsel %vm424_vm1, %v4567_v11, %v2108_v12  ;;  %v847_v23 = vrot.slane %v723_v13, 2  ;;  %v1527_v24 = vunpack.c.l.bf16 %v3735_v10  ;;  %v1647_v30 = vrot.slane %v1525_v16, 2  ;;  %v4324_v62 = vld [vmem:[%s6008_s1 + $0x58] sm:$0xff]  }
  0x3a   : > { %v2209_v26 = vpack.c.bf16 %v4579_v22, %v4575_v21  ;;  %v4585_v28 = vsel %vm778_vm0, %v844_v14, %v845_v15  ;;  %v1648_v31 = vrot.slane %v1526_v18, 2  ;;  %v2038_v34 = vunpack.c.l.bf16 %v3829_v19  ;;  %v3801_v14 = vld [vmem:[%s4426_s27 + $0x44] sm:$0x1]  ;;  %4112 = vmatprep.subr.bf16.mxu0 %v4324_v62  ;;  %4275 = vmatprep.subr.bf16.mxu1 %v4324_v62 }
  0x3b   : > { %1730 = vrot.lane.b32.xlu0 %v1696_v47, %s4376_s5  ;;  %v4589_v32 = vsel %vm778_vm0, %v845_v15, %v847_v23  ;;  %v1650_v33 = vrot.slane %v1527_v24, 2  ;;  %v2039_v35 = vunpack.c.h.bf16 %v3829_v19  ;;  %v2040_v40 = vunpack.c.l.bf16 %v3831_v20  ;;  %v676_v20 = vld [vmem:[%s4426_s27 + $0xa8] sm:$0xe]  ;;  %v678_v23 = vld [vmem:[%s4426_s27 + $0xb0] sm:$0x1]  ;;  %v4326_v24 = vld [vmem:[%s6008_s1 + $0x18] sm:$0xff]  }
  0x3c   : > { %927 = vrot.lane.b32.xlu1 %v893_v58, %s4374_s30  ;;  %v904_v38 = vpack.c.bf16 %v4589_v32, %v4585_v28  ;;  %v4597_v39 = vsel %vm778_vm0, %v1647_v30, %v1648_v31  ;;  %v1495_v41 = vunpack.c.l.bf16 %v3703_v25  ;;  %v2160_v29 = vrot.slane %v2038_v34, 1  ;;  %4113 = vmatpush3.bf16.msra.mxu0 %v4326_v24  ;;  %v4328_v62 = vld [vmem:[%s6008_s1 + $0x20] sm:$0xff]  }
  0x3d   : > { %v4604_v44 = vsel %vm778_vm0, %v1648_v31, %v1650_v33  ;;  %v2161_v46 = vrot.slane %v2039_v35, 1  ;;  %v1496_v47 = vunpack.c.l.bf16 %v4548_v45  ;;  %v2163_v50 = vrot.slane %v2040_v40, 1  ;;  %v4661_v40 = vld [vmem:[%s4426_s27 + $0xb4] sm:$0xff]   ;;  %4283 = vmatpush3.bf16.msra.mxu1 %v4326_v24 }
  0x3e   : > { %v1707_v49 = vpack.c.bf16 %v4604_v44, %v4597_v39  ;;  %v1497_v51 = vunpack.c.l.bf16 %v3705_v36  ;;  %v1597_v52 = vrot.slane %v1495_v41, 2  ;;  %v691_v58 = vunpack.c.l.bf16 %v643_v42  ;;  %v3736_v42 = vld [vmem:[%s4426_s27 + $0xb4] sm:$0xe]  ;;  %v4330_v44 = vld [vmem:[%s4426_s27] sm:$0xff]  }
  0x3f   : > { %573 = vrot.lane.b32.xlu0 %v539_v1, %s4376_s5  ;;  %v4617_v56 = vsel %vm424_vm1, %v2160_v29, %v2161_v46  ;;  %v1598_v57 = vrot.slane %v1496_v47, 2  ;;  %v692_v45 = vunpack.c.l.bf16 %v4601_v43  ;;  %v4623_v60 = vsel %vm424_vm1, %v2161_v46, %v2163_v50  ;;  %v4327_v29 = vld [vmem:[%s6008_s1 + $0x60] sm:$0xff]   ;;  %264 = vst.msk [vmem:[#allocation2] sm:$0xff] %vm263_vm2, %v4330_v44 }
  0x40   : > { %1089 = vrot.lane.b32.xlu1 %v4306_v37, %s4375_s4  ;;  %v1600_v61 = vrot.slane %v1497_v51, 2  ;;  %v693_v63 = vunpack.c.l.bf16 %v645_v48  ;;  %v337_v0 = vunpack.c.l.bf16 %v4506_v4  ;;  %v2220_v1 = vpack.c.bf16 %v4623_v60, %v4617_v56  ;;  %v3738_v51 = vld [vmem:[%s4426_s27 + $0xbc] sm:$0x1]  ;;  %4114 = vmatprep.subr.bf16.mxu0 %v4327_v29 }
  0x41   : > { %v4629_v2 = vsel %vm778_vm0, %v1597_v52, %v1598_v57  ;;  %v794_v3 = vrot.slane %v691_v58, 2  ;;  %v795_v5 = vrot.slane %v692_v45, 2  ;;  %v338_v4 = vunpack.c.l.bf16 %v4611_v53  ;;  %v3706_v45 = vld [vmem:[%s4426_s27 + $0x3c] sm:$0xe]  ;;  %4276 = vmatprep.subr.bf16.mxu1 %v4327_v29  ;;  %4115 = vmatpush3.bf16.msra.mxu0 %v4328_v62  ;;  %v4750_v29 = vld [vmem:[%s4426_s27 + $0xb8] ss:$12 sps:$4 sm:$0xff]  }
  0x42   : > { %v4636_v10 = vsel %vm778_vm0, %v1598_v57, %v1600_v61  ;;  %v797_v12 = vrot.slane %v693_v63, 2  ;;  %v339_v13 = vunpack.c.l.bf16 %v291_v54  ;;  %v440_v18 = vrot.slane %v337_v0, 1  ;;  %v4308_v57 = vld [vmem:[%s4426_s27 + $0xb4] sm:$0xff]   ;;  %4284 = vmatpush3.bf16.msra.mxu1 %v4328_v62 }
  0x43   : > { %1891 = vrot.lane.b32.xlu0 %v4307_v55, %s4374_s30  ;;  %v1697_v15 = vpack.c.bf16 %v4636_v10, %v4629_v2  ;;  %v4644_v16 = vsel %vm778_vm0, %v794_v3, %v795_v5  ;;  %v372_v19 = vunpack.c.l.bf16 %v324_v59  ;;  %v441_v30 = vrot.slane %v338_v4, 1  ;;  %v3834_v55 = vld [vmem:[%s4426_s27 + $0xc8] sm:$0x1]  ;;  %v4706_v3 = vld [vmem:[%s4426_s27 + $0x3c] sm:$0xff]  }
  0x44   : > { %595 = vrot.lane.b32.xlu1 %v550_v6, %s4376_s5  ;;  %v4656_v25 = vsel %vm778_vm0, %v795_v5, %v797_v12  ;;  %v443_v31 = vrot.slane %v339_v13, 1  ;;  %v2008_v33 = vunpack.c.l.bf16 %v3799_v9  ;;  %v2009_v36 = vunpack.c.h.bf16 %v3799_v9  ;;  %v3708_v5 = vld [vmem:[%s4426_s27 + $0x44] sm:$0x1]  ;;  %v646_v9 = vld [vmem:[%s4426_s27 + $0x30] sm:$0xe] }
  0x45   : > { %v894_v34 = vpack.c.bf16 %v4656_v25, %v4644_v16  ;;  %v498_v35 = vrot.slane %v372_v19, 1  ;;  %v2010_v37 = vunpack.c.l.bf16 %v3801_v14  ;;  %v4664_v7 = vsel %vm424_vm1, %v440_v18, %v441_v30 }
  0x46   : > { %v4667_v8 = vsel %vm424_vm1, %v441_v30, %v443_v31  ;;  %v2110_v6 = vrot.slane %v2008_v33, 1  ;;  %v724_v41 = vunpack.c.l.bf16 %v676_v20  ;;  %v2111_v48 = vrot.slane %v2009_v36, 1  ;;  %v648_v33 = vld [vmem:[%s4426_s27 + $0x38] sm:$0x1]  ;;  %v4331_v36 = vld [vmem:[%s6008_s1 + $0x68] sm:$0xff]  }
  0x47   : > { %2243 = vrot.lane.b32.xlu0 %v2209_v26, %s4375_s4  ;;  %v540_v46 = vpack.c.bf16 %v4667_v8, %v4664_v7  ;;  %v4681_v47 = vsel %vm424_vm1, %v4515_v17, %v498_v35  ;;  %v2113_v50 = vrot.slane %v2010_v37, 1  ;;  %v725_v26 = vunpack.c.h.bf16 %v4601_v43  ;;  %v4105_v17 = vld [vmem:[%s4426_s27 + $0xc0] sm:$0xff]   ;;  %v4309_v43 = vld [vmem:[%s4426_s27 + $0xa8] sm:$0xff]   ;;  %v294_v35 = vld [vmem:[%s4426_s27 + $0x38] sm:$0x1]  ;;  %4116 = vmatprep.subr.bf16.mxu0 %v4331_v36 }
  0x48   : > { %949 = vrot.lane.b32.xlu1 %v904_v38, %s4374_s30  ;;  %v551_v22 = vpack.c.bf16 %v4681_v47, %v4523_v27  ;;  %v726_v52 = vunpack.c.l.bf16 %v678_v23  ;;  %v849_v54 = vrot.slane %v724_v41, 2  ;;  %v4695_v58 = vsel %vm424_vm1, %v2110_v6, %v2111_v48  ;;  %4277 = vmatprep.subr.bf16.mxu1 %v4331_v36  ;;  %v3741_v36 = vld [vmem:[%s4426_s27 + $0xc8] sm:$0x1] }
  0x49   : > { %v4698_v28 = vsel %vm424_vm1, %v2111_v48, %v2113_v50  ;;  %v1528_v32 = vunpack.c.l.bf16 %v3736_v42  ;;  %v1529_v38 = vunpack.c.h.bf16 %v4661_v40  ;;  %v850_v61 = vrot.slane %v725_v26, 2 }
  0x4a   : > { %v2210_v59 = vpack.c.bf16 %v4698_v28, %v4695_v58  ;;  %v852_v63 = vrot.slane %v726_v52, 2  ;;  %v1530_v0 = vunpack.c.l.bf16 %v3738_v51  ;;  %v4081_v13 = vunpack.c.l.bf16 %v4105_v17  ;;  %v327_v52 = vld [vmem:[%s4426_s27 + $0xbc] sm:$0x1] }
  0x4b   : > { %1752 = vrot.lane.b32.xlu0 %v1707_v49, %s4376_s5  ;;  %v1652_v12 = vrot.slane %v1528_v32, 2  ;;  %v1653_v4 = vrot.slane %v1529_v38, 2  ;;  %v4082_v14 = vunpack.c.h.bf16 %v4105_v17  ;;  %v4722_v18 = vsel %vm778_vm0, %v849_v54, %v850_v61  ;;  %v4100_v54 = vld [vmem:[%s4426_s27 + $0x48] sm:$0xff]  }
  0x4c   : > { %2265 = vrot.lane.b32.xlu1 %v2220_v1, %s4375_s4  ;;  %v4725_v19 = vsel %vm778_vm0, %v850_v61, %v852_v63  ;;  %v1655_v20 = vrot.slane %v1530_v0, 2  ;;  %v2043_v39 = vunpack.c.l.bf16 %v3834_v55  ;;  %v2165_v56 = vrot.slane %v4081_v13, 1  ;;  %v4332_v17 = vld [vmem:[%s6008_s1 + $0x28] sm:$0xff]   ;;  %v679_v13 = vld [vmem:[%s4426_s27 + $0xb4] sm:$0xe] }
  0x4d   : > { %v905_v49 = vpack.c.bf16 %v4725_v19, %v4722_v18  ;;  %v4731_v23 = vsel %vm778_vm0, %v1652_v12, %v1653_v4  ;;  %v2166_v60 = vrot.slane %v4082_v14, 1  ;;  %v1498_v30 = vunpack.c.l.bf16 %v3706_v45  ;;  %v4333_v55 = vld [vmem:[%s4426_s27 + $0xc] sm:$0xff]   ;;  %4117 = vmatpush3.bf16.msra.mxu0 %v4332_v17  ;;  %4285 = vmatpush3.bf16.msra.mxu1 %v4332_v17 }
  0x4e   : > { %v4734_v1 = vsel %vm778_vm0, %v1653_v4, %v1655_v20  ;;  %v2168_v24 = vrot.slane %v2043_v39, 1  ;;  %v1499_v31 = vunpack.c.h.bf16 %v4706_v3  ;;  %v1500_v41 = vunpack.c.l.bf16 %v3708_v5  ;;  %265 = vst.msk [vmem:[#allocation2 + $0x18] sm:$0xff] %vm263_vm2, %v4333_v55  ;;  %v4334_v5 = vld [vmem:[%s6008_s1 + $0x70] sm:$0xff]   ;;  %v4794_v20 = vld [vmem:[%s4426_s27 + $0x4c] ss:$108 sps:$4 sm:$0xff]   ;;  %v4311_v39 = vld [vmem:[%s4426_s27 + $0x3c] sm:$0xff]  }
  0x4f   : > { %1913 = vrot.lane.b32.xlu0 %v4308_v57, %s4374_s30  ;;  %v1708_v37 = vpack.c.bf16 %v4734_v1, %v4731_v23  ;;  %v4747_v6 = vsel %vm424_vm1, %v2165_v56, %v2166_v60  ;;  %v694_v42 = vunpack.c.l.bf16 %v646_v9  ;;  %v1602_v50 = vrot.slane %v1498_v30, 2  ;;  %v4310_v9 = vld [vmem:[%s4426_s27 + $0x30] sm:$0xff]   ;;  %4118 = vmatprep.subr.bf16.mxu0 %v4334_v5 }
  0x50   : > { %1111 = vrot.lane.b32.xlu1 %v4309_v43, %s4375_s4  ;;  %v4754_v48 = vsel %vm424_vm1, %v2166_v60, %v2168_v24  ;;  %v1603_v51 = vrot.slane %v1499_v31, 2  ;;  %v695_v26 = vunpack.c.h.bf16 %v4611_v53  ;;  %v1605_v32 = vrot.slane %v1500_v41, 2  ;;  %v3804_v43 = vld [vmem:[%s4426_s27 + $0x50] sm:$0x1]  ;;  %4278 = vmatprep.subr.bf16.mxu1 %v4334_v5  ;;  %v3709_v5 = vld [vmem:[%s4426_s27 + $0x48] sm:$0xe] }
  0x51   : > { %v2221_v57 = vpack.c.bf16 %v4754_v48, %v4747_v6  ;;  %v696_v38 = vunpack.c.l.bf16 %v648_v33  ;;  %v799_v45 = vrot.slane %v694_v42, 2  ;;  %v342_v63 = vunpack.c.l.bf16 %v294_v35  ;;  %v4336_v60 = vld [vmem:[%s6008_s1 + $0x30] sm:$0xff]   ;;  %v3739_v35 = vld [vmem:[%s4426_s27 + $0xc0] sm:$0xe] }
  0x52   : > { %v4767_v53 = vsel %vm778_vm0, %v1602_v50, %v1603_v51  ;;  %v800_v61 = vrot.slane %v695_v26, 2  ;;  %v373_v0 = vunpack.c.l.bf16 %v4661_v40  ;;  %v4780_v62 = vsel %vm778_vm0, %v1603_v51, %v1605_v32  ;;  %v3835_v51 = vld [vmem:[%s4426_s27 + $0xcc] sm:$0xff]   ;;  %4119 = vmatpush3.bf16.msra.mxu0 %v4336_v60  ;;  %v4337_v26 = vld [vmem:[%s6008_s1 + $0x78] sm:$0xff]   ;;  %4286 = vmatpush3.bf16.msra.mxu1 %v4336_v60 }
  0x53   : > { %1732 = vrot.lane.b32.xlu0 %v1697_v15, %s4376_s5  ;;  %v802_v40 = vrot.slane %v696_v38, 2  ;;  %v374_v12 = vunpack.c.l.bf16 %v4750_v29  ;;  %v375_v4 = vunpack.c.l.bf16 %v327_v52  ;;  %v1698_v14 = vpack.c.bf16 %v4780_v62, %v4767_v53  ;;  %4120 = vmatprep.subr.bf16.mxu0 %v4337_v26 }
  0x54   : > { %929 = vrot.lane.b32.xlu1 %v894_v34, %s4374_s30  ;;  %v4791_v2 = vsel %vm778_vm0, %v799_v45, %v800_v61  ;;  %v448_v10 = vrot.slane %v342_v63, 1  ;;  %v500_v15 = vrot.slane %v373_v0, 1  ;;  %v4061_v25 = vunpack.c.l.bf16 %v4100_v54  ;;  %v681_v34 = vld [vmem:[%s4426_s27 + $0xbc] sm:$0x1]  ;;  %4279 = vmatprep.subr.bf16.mxu1 %v4337_v26 }
  0x55   : > { %v4798_v44 = vsel %vm778_vm0, %v800_v61, %v802_v40  ;;  %v501_v56 = vrot.slane %v374_v12, 1  ;;  %v503_v16 = vrot.slane %v375_v4, 1  ;;  %v4062_v31 = vunpack.c.h.bf16 %v4100_v54  ;;  %v3837_v54 = vld [vmem:[%s4426_s27 + $0xd4] sm:$0x1]  ;;  %v4338_v45 = vld [vmem:[%s6008_s1 + $0x38] sm:$0xff]  }
  0x56   : > { %v895_v24 = vpack.c.bf16 %v4798_v44, %v4791_v2  ;;  %v4808_v30 = vsel %vm424_vm1, %v4567_v11, %v448_v10  ;;  %v2013_v33 = vunpack.c.l.bf16 %v3804_v43  ;;  %v2115_v11 = vrot.slane %v4061_v25, 1  ;;  %4121 = vmatpush3.bf16.msra.mxu0 %v4338_v45  ;;  %v4340_v4 = vld [vmem:[%s4426_s27 + $0x90] sm:$0xff]   ;;  %4287 = vmatpush3.bf16.msra.mxu1 %v4338_v45 }
  0x57   : > { %575 = vrot.lane.b32.xlu0 %v540_v46, %s4376_s5  ;;  %v541_v41 = vpack.c.bf16 %v4808_v30, %v4575_v21  ;;  %v4819_v42 = vsel %vm424_vm1, %v500_v15, %v501_v56  ;;  %v4822_v50 = vsel %vm424_vm1, %v501_v56, %v503_v16  ;;  %v4831_v8 = vrot.slane %v4062_v31, 1  ;;  %v3711_v16 = vld [vmem:[%s4426_s27 + $0x50] sm:$0x1]  ;;  %276 = vst.msk [vmem:[#allocation2 + $0x120] sm:$0xff] %vm263_vm2, %v4340_v4  ;;  %v3648_v4 = vld [vmem:[%s4426_s27 + $0x14] sm:$0x1] }
  0x58   : > { %1091 = vrot.lane.b32.xlu1 %v4310_v9, %s4375_s4  ;;  %v552_v7 = vpack.c.bf16 %v4822_v50, %v4819_v42  ;;  %v2118_v46 = vrot.slane %v2013_v33, 1  ;;  %v727_v52 = vunpack.c.l.bf16 %v679_v13  ;;  %v728_v17 = vunpack.c.h.bf16 %v4794_v20 }
  0x59   : > { %v729_v55 = vunpack.c.l.bf16 %v681_v34  ;;  %v1531_v32 = vunpack.c.l.bf16 %v3739_v35  ;;  %v1532_v38 = vunpack.c.h.bf16 %v4750_v29  ;;  %v4841_v43 = vsel %vm424_vm1, %v2115_v11, %v4831_v8  ;;  %v297_v35 = vld [vmem:[%s4426_s27 + $0x44] sm:$0x1] }
  0x5a   : > { %v4845_v61 = vsel %vm424_vm1, %v4831_v8, %v2118_v46  ;;  %v854_v63 = vrot.slane %v727_v52, 2  ;;  %v1533_v0 = vunpack.c.l.bf16 %v3741_v36  ;;  %v855_v9 = vrot.slane %v728_v17, 2 }
  0x5b   : > { %1893 = vrot.lane.b32.xlu0 %v4311_v39, %s4374_s30  ;;  %v2211_v29 = vpack.c.bf16 %v4845_v61, %v4841_v43  ;;  %v857_v40 = vrot.slane %v729_v55, 2  ;;  %v1657_v12 = vrot.slane %v1531_v32, 2  ;;  %v1658_v13 = vrot.slane %v1532_v38, 2  ;;  %v4858_v39 = vld [vmem:[%s4426_s27 + $0x40] ss:$12 sps:$4 sm:$0xff]  }
  0x5c   : > { %597 = vrot.lane.b32.xlu1 %v551_v22, %s4376_s5  ;;  %v1660_v10 = vrot.slane %v1533_v0, 2  ;;  %v2044_v15 = vunpack.c.l.bf16 %v3835_v51  ;;  %v2045_v56 = vunpack.c.h.bf16 %v3835_v51  ;;  %v4861_v25 = vsel %vm778_vm0, %v854_v63, %v855_v9  ;;  %v3646_v55 = vld [vmem:[%s4426_s27 + $0xc] sm:$0xff]   ;;  %v4312_v63 = vld [vmem:[%s4426_s27 + $0xc0] sm:$0xff]   ;;  %v4313_v0 = vld [vmem:[%s4426_s27 + $0xb4] sm:$0xff]  }
  0x5d   : > { %v4864_v34 = vsel %vm778_vm0, %v855_v9, %v857_v40  ;;  %v2046_v60 = vunpack.c.l.bf16 %v3837_v54  ;;  %v1501_v31 = vunpack.c.l.bf16 %v3709_v5  ;;  %v4870_v47 = vsel %vm778_vm0, %v1657_v12, %v1658_v13  ;;  %v4891_v54 = vld [vmem:[%s4426_s27 + $0x40] ss:$36 sps:$4 sm:$0xff]  }
  0x5e   : > { %v906_v27 = vpack.c.bf16 %v4864_v34, %v4861_v25  ;;  %v4873_v22 = vsel %vm778_vm0, %v1658_v13, %v1660_v10  ;;  %v2170_v33 = vrot.slane %v2044_v15, 1  ;;  %v2171_v11 = vrot.slane %v2045_v56, 1  ;;  %v3805_v10 = vld [vmem:[%s4426_s27 + $0x54] sm:$0xff]   ;;  %v3807_v15 = vld [vmem:[%s4426_s27 + $0x5c] sm:$0x1]  ;;  %v4352_v34 = vld [vmem:[%s4426_s27 + $0xa8] sm:$0xff]  }
  0x5f   : > { %2245 = vrot.lane.b32.xlu0 %v2210_v59, %s4375_s4  ;;  %v1709_v36 = vpack.c.bf16 %v4873_v22, %v4870_v47  ;;  %v2173_v51 = vrot.slane %v2046_v60, 1  ;;  %v1502_v26 = vunpack.c.l.bf16 %v4794_v20  ;;  %v1503_v46 = vunpack.c.l.bf16 %v3711_v16  ;;  %v649_v59 = vld [vmem:[%s4426_s27 + $0x3c] sm:$0xe]  ;;  %v3813_v25 = vld [vmem:[%s4426_s27 + $0x74] sm:$0x1]  ;;  %278 = vst.msk [vmem:[#allocation2 + $0x150] sm:$0xff] %vm263_vm2, %v4352_v34 }
  0x60   : > { %951 = vrot.lane.b32.xlu1 %v905_v49, %s4374_s30  ;;  %v1607_v52 = vrot.slane %v1501_v31, 2  ;;  %v343_v58 = vunpack.c.l.bf16 %v4706_v3  ;;  %v344_v28 = vunpack.c.l.bf16 %v4858_v39  ;;  %v4894_v17 = vsel %vm424_vm1, %v2170_v33, %v2171_v11  ;;  %v651_v49 = vld [vmem:[%s4426_s27 + $0x44] sm:$0x1] }
  0x61   : > { %v4897_v20 = vsel %vm424_vm1, %v2171_v11, %v2173_v51  ;;  %v1608_v18 = vrot.slane %v1502_v26, 2  ;;  %v345_v19 = vunpack.c.l.bf16 %v297_v35  ;;  %v1610_v32 = vrot.slane %v1503_v46, 2  ;;  %v3712_v11 = vld [vmem:[%s4426_s27 + $0x54] sm:$0xe]  ;;  %v3714_v51 = vld [vmem:[%s4426_s27 + $0x5c] sm:$0x1] }
  0x62   : > { %v2222_v3 = vpack.c.bf16 %v4897_v20, %v4894_v17  ;;  %v450_v38 = vrot.slane %v343_v58, 1  ;;  %v451_v45 = vrot.slane %v344_v28, 1  ;;  %v697_v40 = vunpack.c.l.bf16 %v649_v59  ;;  %v4941_v28 = vld [vmem:[%s4426_s27 + $0x54] sm:$0xff]  }
  0x63   : > { %1754 = vrot.lane.b32.xlu0 %v1708_v37, %s4376_s5  ;;  %v4910_v5 = vsel %vm778_vm0, %v1607_v52, %v1608_v18  ;;  %v453_v9 = vrot.slane %v345_v19, 1  ;;  %v698_v12 = vunpack.c.l.bf16 %v4891_v54  ;;  %v4919_v23 = vsel %vm778_vm0, %v1608_v18, %v1610_v32 }
  0x64   : > { %2267 = vrot.lane.b32.xlu1 %v2221_v57, %s4375_s4  ;;  %v4922_v1 = vsel %vm424_vm1, %v450_v38, %v451_v45  ;;  %v699_v37 = vunpack.c.l.bf16 %v651_v49  ;;  %v1198_v13 = vunpack.c.l.bf16 %v3646_v55  ;;  %v1699_v56 = vpack.c.bf16 %v4919_v23, %v4910_v5  ;;  %v4344_v57 = vld [vmem:[%s4426_s27 + $0x18] sm:$0xff]  }
  0x65   : > { %v4929_v16 = vsel %vm424_vm1, %v451_v45, %v453_v9  ;;  %v804_v6 = vrot.slane %v697_v40, 2  ;;  %v805_v48 = vrot.slane %v698_v12, 2  ;;  %v1199_v33 = vunpack.c.h.bf16 %v3646_v55  ;;  %266 = vst.msk [vmem:[#allocation2 + $0x30] sm:$0xff] %vm263_vm2, %v4344_v57  ;;  %v300_v55 = vld [vmem:[%s4426_s27 + $0x50] sm:$0x1]  ;;  %v4090_v57 = vld [vmem:[%s4426_s27 + $0x18] sm:$0xff]  }
  0x66   : > { %v542_v60 = vpack.c.bf16 %v4929_v16, %v4922_v1  ;;  %v807_v31 = vrot.slane %v699_v37, 2  ;;  %v1200_v35 = vunpack.c.l.bf16 %v3648_v4  ;;  %v1294_v46 = vrot.slane %v1198_v13, 1  ;;  %v652_v9 = vld [vmem:[%s4426_s27 + $0x48] sm:$0xe]  ;;  %v654_v37 = vld [vmem:[%s4426_s27 + $0x50] sm:$0x1] }
  0x67   : > { %1915 = vrot.lane.b32.xlu0 %v4312_v63, %s4374_s30  ;;  %v4938_v26 = vsel %vm778_vm0, %v804_v6, %v805_v48  ;;  %v2014_v52 = vunpack.c.l.bf16 %v3805_v10  ;;  %v2015_v58 = vunpack.c.h.bf16 %v3805_v10  ;;  %v1295_v18 = vrot.slane %v1199_v33, 1  ;;  %v4346_v13 = vld [vmem:[%s4426_s27 + $0x9c] sm:$0xff]  }
  0x68   : > { %1113 = vrot.lane.b32.xlu1 %v4313_v0, %s4375_s4  ;;  %v4946_v59 = vsel %vm778_vm0, %v805_v48, %v807_v31  ;;  %v1297_v19 = vrot.slane %v1200_v35, 1  ;;  %v2016_v49 = vunpack.c.l.bf16 %v3807_v15  ;;  %v1504_v63 = vunpack.c.l.bf16 %v3712_v11  ;;  %v4314_v31 = vld [vmem:[%s4426_s27 + $0x3c] sm:$0xff]   ;;  %277 = vst.msk [vmem:[#allocation2 + $0x138] sm:$0xff] %vm263_vm2, %v4346_v13 }
  0x69   : > { %v896_v32 = vpack.c.bf16 %v4946_v59, %v4938_v26  ;;  %v2120_v38 = vrot.slane %v2014_v52, 1  ;;  %v2121_v45 = vrot.slane %v2015_v58, 1  ;;  %v1296_v40 = vsel %vm424_vm1, %v1294_v46, %v1295_v18 }
  0x6a   : > { %v1298_v0 = vsel %vm424_vm1, %v1295_v18, %v1297_v19  ;;  %v2123_v12 = vrot.slane %v2016_v49, 1  ;;  %v1505_v4 = vunpack.c.h.bf16 %v4941_v28  ;;  %v1506_v6 = vunpack.c.l.bf16 %v3714_v51  ;;  %v4315_v51 = vld [vmem:[%s4426_s27 + $0x48] sm:$0xff]   ;;  %v4101_v19 = vld [vmem:[%s4426_s27 + $0x60] sm:$0xff]  }
  0x6b   : > { %1734 = vrot.lane.b32.xlu0 %v1698_v14, %s4376_s5  ;;  %v1406_v10 = vpack.c.bf16 %v1298_v0, %v1296_v40  ;;  %v4962_v15 = vsel %vm424_vm1, %v2120_v38, %v2121_v45  ;;  %v1612_v48 = vrot.slane %v1504_v63, 2  ;;  %v348_v62 = vunpack.c.l.bf16 %v300_v55  ;;  %v3715_v63 = vld [vmem:[%s4426_s27 + $0x60] sm:$0xe] }
  0x6c   : > { %931 = vrot.lane.b32.xlu1 %v895_v24, %s4374_s30  ;;  %v4971_v33 = vsel %vm424_vm1, %v2121_v45, %v2123_v12  ;;  %v1613_v53 = vrot.slane %v1505_v4, 2  ;;  %v700_v14 = vunpack.c.l.bf16 %v652_v9  ;;  %v1615_v11 = vrot.slane %v1506_v6, 2  ;;  %v3651_v24 = vld [vmem:[%s4426_s27 + $0x20] sm:$0x1]  ;;  %v3810_v45 = vld [vmem:[%s4426_s27 + $0x68] sm:$0x1] }
  0x6d   : > { %1422 = vst.msk [vmem:[#allocation2 + $0x8] sm:$0xff] %vm263_vm2, %v1406_v10  ;;  %v2212_v35 = vpack.c.bf16 %v4971_v33, %v4962_v15  ;;  %v701_v2 = vunpack.c.h.bf16 %v4858_v39  ;;  %v702_v44 = vunpack.c.l.bf16 %v654_v37  ;;  %v458_v52 = vrot.slane %v348_v62, 1  ;;  %v3717_v37 = vld [vmem:[%s4426_s27 + $0x68] sm:$0x1] }
  0x6e   : > { %v4981_v46 = vsel %vm778_vm0, %v1612_v48, %v1613_v53  ;;  %v809_v58 = vrot.slane %v700_v14, 2  ;;  %v4021_v18 = vunpack.c.l.bf16 %v4090_v57  ;;  %v4989_v49 = vsel %vm778_vm0, %v1613_v53, %v1615_v11  ;;  %v5012_v48 = vld [vmem:[%s4426_s27 + $0x58] ss:$12 sps:$4 sm:$0xff]   ;;  %v303_v14 = vld [vmem:[%s4426_s27 + $0x5c] sm:$0x1] }
  0x6f   : > { %577 = vrot.lane.b32.xlu0 %v541_v41, %s4376_s5  ;;  %v810_v39 = vrot.slane %v701_v2, 2  ;;  %v812_v55 = vrot.slane %v702_v44, 2  ;;  %v4022_v38 = vunpack.c.h.bf16 %v4090_v57  ;;  %v1700_v9 = vpack.c.bf16 %v4989_v49, %v4981_v46 }
  0x70   : > { %1093 = vrot.lane.b32.xlu1 %v4314_v31, %s4375_s4  ;;  %v4998_v40 = vsel %vm424_vm1, %v4831_v8, %v458_v52  ;;  %v1203_v21 = vunpack.c.l.bf16 %v3651_v24  ;;  %v1299_v30 = vrot.slane %v4021_v18, 1  ;;  %v4065_v10 = vunpack.c.l.bf16 %v4101_v19  ;;  %v5027_v52 = vld [vmem:[%s4426_s27 + $0x58] ss:$36 sps:$4 sm:$0xff]  }
  0x71   : > { %v543_v41 = vpack.c.bf16 %v4998_v40, %v4841_v43  ;;  %v5003_v0 = vsel %vm778_vm0, %v809_v58, %v810_v39  ;;  %v5006_v12 = vsel %vm778_vm0, %v810_v39, %v812_v55  ;;  %v1300_v4 = vrot.slane %v4022_v38, 1  ;;  %v4350_v39 = vld [vmem:[%s4426_s27 + $0x24] sm:$0xff]   ;;  %v657_v38 = vld [vmem:[%s4426_s27 + $0x5c] sm:$0x1] }
  0x72   : > { %v897_v13 = vpack.c.bf16 %v5006_v12, %v5003_v0  ;;  %v1302_v8 = vrot.slane %v1203_v21, 1  ;;  %v4066_v6 = vunpack.c.h.bf16 %v4101_v19  ;;  %v2019_v31 = vunpack.c.l.bf16 %v3810_v45  ;;  %267 = vst.msk [vmem:[#allocation2 + $0x48] sm:$0xff] %vm263_vm2, %v4350_v39  ;;  %v3718_v39 = vld [vmem:[%s4426_s27 + $0x6c] sm:$0xe] }
  0x73   : > { %1895 = vrot.lane.b32.xlu0 %v4315_v51, %s4374_s30  ;;  %v1301_v57 = vsel %vm424_vm1, %v1299_v30, %v1300_v4  ;;  %v1507_v53 = vunpack.c.l.bf16 %v3715_v63  ;;  %v1508_v62 = vunpack.c.h.bf16 %v4891_v54  ;;  %v2125_v2 = vrot.slane %v4065_v10, 1  ;;  %v655_v51 = vld [vmem:[%s4426_s27 + $0x54] sm:$0xe]  ;;  %v3682_v30 = vld [vmem:[%s4426_s27 + $0x9c] sm:$0xff]  }
  0x74   : > { %599 = vrot.lane.b32.xlu1 %v552_v7, %s4376_s5  ;;  %v1303_v11 = vsel %vm424_vm1, %v1300_v4, %v1302_v8  ;;  %v5023_v44 = vrot.slane %v4066_v6, 1  ;;  %v1509_v24 = vunpack.c.l.bf16 %v3717_v37  ;;  %v2128_v18 = vrot.slane %v2019_v31, 1  ;;  %v3684_v8 = vld [vmem:[%s4426_s27 + $0xa4] sm:$0x1] }
  0x75   : > { %v1407_v58 = vpack.c.bf16 %v1303_v11, %v1301_v57  ;;  %v1617_v54 = vrot.slane %v1507_v53, 2  ;;  %v1618_v19 = vrot.slane %v1508_v62, 2  ;;  %v349_v7 = vunpack.c.l.bf16 %v4941_v28  ;;  %v3811_v53 = vld [vmem:[%s4426_s27 + $0x6c] sm:$0xff]  }
  0x76   : > { %v5032_v42 = vsel %vm424_vm1, %v2125_v2, %v5023_v44  ;;  %v1620_v50 = vrot.slane %v1509_v24, 2  ;;  %v350_v55 = vunpack.c.l.bf16 %v5012_v48  ;;  %v5044_v45 = vsel %vm424_vm1, %v5023_v44, %v2128_v18 }
  0x77   : > { %2247 = vrot.lane.b32.xlu0 %v2211_v29, %s4375_s4  ;;  %1423 = vst.msk [vmem:[#allocation2 + $0x20] sm:$0xff] %vm263_vm2, %v1407_v58  ;;  %v5047_v63 = vsel %vm778_vm0, %v1617_v54, %v1618_v19  ;;  %v351_v28 = vunpack.c.l.bf16 %v303_v14  ;;  %v703_v21 = vunpack.c.l.bf16 %v655_v51  ;;  %v2213_v61 = vpack.c.bf16 %v5044_v45, %v5032_v42  ;;  %v4319_v54 = vld [vmem:[%s4426_s27 + $0xc0] sm:$0xff]  }
  0x78   : > { %953 = vrot.lane.b32.xlu1 %v906_v27, %s4374_s30  ;;  %v5058_v29 = vsel %vm778_vm0, %v1618_v19, %v1620_v50  ;;  %v460_v4 = vrot.slane %v349_v7, 1  ;;  %v461_v37 = vrot.slane %v350_v55, 1  ;;  %v704_v57 = vunpack.c.l.bf16 %v5027_v52  ;;  %v4317_v27 = vld [vmem:[%s4426_s27 + $0xcc] sm:$0xff]  }
  0x79   : > { %v1701_v10 = vpack.c.bf16 %v5058_v29, %v5047_v63  ;;  %v463_v6 = vrot.slane %v351_v28, 1  ;;  %v705_v31 = vunpack.c.l.bf16 %v657_v38  ;;  %v814_v14 = vrot.slane %v703_v21, 2  ;;  %v5088_v50 = vld [vmem:[%s4426_s27 + $0x6c] sm:$0xff]   ;;  %v306_v38 = vld [vmem:[%s4426_s27 + $0x68] sm:$0x1] }
  0x7a   : > { %v5069_v62 = vsel %vm424_vm1, %v460_v4, %v461_v37  ;;  %v1234_v11 = vunpack.c.l.bf16 %v3682_v30  ;;  %v1235_v2 = vunpack.c.h.bf16 %v3682_v30  ;;  %v815_v51 = vrot.slane %v704_v57, 2 }
  0x7b   : > { %1756 = vrot.lane.b32.xlu0 %v1709_v36, %s4376_s5  ;;  %v5076_v24 = vsel %vm424_vm1, %v461_v37, %v463_v6  ;;  %v817_v58 = vrot.slane %v705_v31, 2  ;;  %v1236_v18 = vunpack.c.l.bf16 %v3684_v8  ;;  %v2020_v19 = vunpack.c.l.bf16 %v3811_v53  ;;  %v3652_v37 = vld [vmem:[%s4426_s27 + $0x24] sm:$0xff]  }
  0x7c   : > { %2269 = vrot.lane.b32.xlu1 %v2222_v3, %s4375_s4  ;;  %v544_v47 = vpack.c.bf16 %v5076_v24, %v5069_v62  ;;  %v1354_v22 = vrot.slane %v1234_v11, 1  ;;  %v1355_v36 = vrot.slane %v1235_v2, 1  ;;  %v5091_v7 = vsel %vm778_vm0, %v814_v14, %v815_v51  ;;  %v3720_v3 = vld [vmem:[%s4426_s27 + $0x74] sm:$0x1] }
  0x7d   : > { %v5094_v55 = vsel %vm778_vm0, %v815_v51, %v817_v58  ;;  %v1357_v17 = vrot.slane %v1236_v18, 1  ;;  %v2021_v20 = vunpack.c.h.bf16 %v3811_v53  ;;  %v2022_v30 = vunpack.c.l.bf16 %v3813_v25  ;;  %v3654_v53 = vld [vmem:[%s4426_s27 + $0x2c] sm:$0x1]  ;;  %v658_v25 = vld [vmem:[%s4426_s27 + $0x60] sm:$0xe]  ;;  %v4355_v51 = vld [vmem:[%s4426_s27 + $0x30] sm:$0xff]  }
  0x7e   : > { %v898_v28 = vpack.c.bf16 %v5094_v55, %v5091_v7  ;;  %v1356_v21 = vsel %vm424_vm1, %v1354_v22, %v1355_v36  ;;  %v2130_v4 = vrot.slane %v2020_v19, 1  ;;  %v1510_v57 = vunpack.c.l.bf16 %v3718_v39  ;;  %v4329_v19 = vld [vmem:[%s4426_s27 + $0x48] sm:$0xff]   ;;  %268 = vst.msk [vmem:[#allocation2 + $0x60] sm:$0xff] %vm263_vm2, %v4355_v51 }
  0x7f   : > { %1917 = vrot.lane.b32.xlu0 %v4317_v27, %s4374_s30  ;;  %v1358_v8 = vsel %vm424_vm1, %v1355_v36, %v1357_v17  ;;  %v2131_v6 = vrot.slane %v2021_v20, 1  ;;  %v1511_v31 = vunpack.c.h.bf16 %v5088_v50  ;;  %v2133_v14 = vrot.slane %v2022_v30, 1  ;;  %v660_v36 = vld [vmem:[%s4426_s27 + $0x68] sm:$0x1] }
  0x80   : > { %1115 = vrot.lane.b32.xlu1 %v4319_v54, %s4375_s4  ;;  %v1418_v34 = vpack.c.bf16 %v1358_v8, %v1356_v21  ;;  %v1512_v11 = vunpack.c.l.bf16 %v3720_v3  ;;  %v354_v2 = vunpack.c.l.bf16 %v306_v38  ;;  %v1622_v58 = vrot.slane %v1510_v57, 2  ;;  %v4356_v3 = vld [vmem:[%s4426_s27 + $0xb4] sm:$0xff]  }
  0x81   : > { %v5110_v27 = vsel %vm424_vm1, %v2130_v4, %v2131_v6  ;;  %v1623_v18 = vrot.slane %v1511_v31, 2  ;;  %v1204_v22 = vunpack.c.l.bf16 %v3652_v37  ;;  %v5116_v54 = vsel %vm424_vm1, %v2131_v6, %v2133_v14  ;;  %v4102_v8 = vld [vmem:[%s4426_s27 + $0x78] sm:$0xff]   ;;  %279 = vst.msk [vmem:[#allocation2 + $0x168] sm:$0xff] %vm263_vm2, %v4356_v3  ;;  %v309_v3 = vld [vmem:[%s4426_s27 + $0x74] sm:$0x1] }
  0x82   : > { %1434 = vst.msk [vmem:[#allocation2 + $0x128] sm:$0xff] %vm263_vm2, %v1418_v34  ;;  %v1625_v39 = vrot.slane %v1512_v11, 2  ;;  %v468_v17 = vrot.slane %v354_v2, 1  ;;  %v1205_v20 = vunpack.c.h.bf16 %v3652_v37  ;;  %v2214_v38 = vpack.c.bf16 %v5116_v54, %v5110_v27  ;;  %v3816_v37 = vld [vmem:[%s4426_s27 + $0x80] sm:$0x1] }
  0x83   : > { %1736 = vrot.lane.b32.xlu0 %v1699_v56, %s4376_s5  ;;  %v5127_v21 = vsel %vm778_vm0, %v1622_v58, %v1623_v18  ;;  %v1206_v30 = vunpack.c.l.bf16 %v3654_v53  ;;  %v1304_v4 = vrot.slane %v1204_v22, 1  ;;  %v3721_v6 = vld [vmem:[%s4426_s27 + $0x78] sm:$0xe]  ;;  %v706_v31 = vunpack.c.l.bf16 %v658_v25  ;;  %v4357_v53 = vld [vmem:[%s4426_s27 + $0x3c] sm:$0xff]  }
  0x84   : > { %v5132_v57 = vpop.permute.xlu1 %1887  ;;  %933 = vrot.lane.b32.xlu1 %v896_v32, %s4374_s30  ;;  %v5139_v5 = vsel %vm778_vm0, %v1623_v18, %v1625_v39  ;;  %v5143_v23 = vsel %vm424_vm1, %v5023_v44, %v468_v17  ;;  %v1305_v56 = vrot.slane %v1205_v20, 1  ;;  %v707_v32 = vunpack.c.h.bf16 %v5012_v48  ;;  %v5155_v44 = vld [vmem:[%s6008_s1 + $0x80] sm:$0xff]   ;;  %269 = vst.msk [vmem:[#allocation2 + $0x78] sm:$0xff] %vm263_vm2, %v4357_v53  ;;  %v4325_v48 = vld [vmem:[%s4426_s27 + $0x54] sm:$0xff]   ;;  %v5171_v20 = vld [vmem:[%s4426_s27 + $0x70] ss:$12 sps:$4 sm:$0xff]  }
  0x85   : > { %v1702_v34 = vpack.c.bf16 %v5139_v5, %v5127_v21  ;;  %v545_v26 = vpack.c.bf16 %v5143_v23, %v5032_v42  ;;  %v1307_v59 = vrot.slane %v1206_v30, 1  ;;  %v708_v11 = vunpack.c.l.bf16 %v660_v36  ;;  %v3723_v39 = vld [vmem:[%s4426_s27 + $0x80] sm:$0x1]  ;;  %4236 = vmatprep.subr.bf16.mxu1 %v5155_v44  ;;  %v3825_v42 = vld [vmem:[%s4426_s27 + $0xa4] sm:$0x1] }
  0x86   : > { %v1306_v14 = vsel %vm424_vm1, %v1304_v4, %v1305_v56  ;;  %v819_v2 = vrot.slane %v706_v31, 2  ;;  %v4069_v25 = vunpack.c.l.bf16 %v4102_v8  ;;  %v820_v58 = vrot.slane %v707_v32, 2  ;;  %v4360_v32 = vld [vmem:[%s4426_s27 + $0x48] sm:$0xff]   ;;  %v3658_v23 = vld [vmem:[%s4426_s27 + $0x3c] sm:$0xff]   ;;  %v3663_v5 = vld [vmem:[%s4426_s27 + $0x50] sm:$0x1] }
  0x87   : > { %579 = vrot.lane.b32.xlu0 %v542_v60, %s4376_s5  ;;  %v1308_v51 = vsel %vm424_vm1, %v1305_v56, %v1307_v59  ;;  %v4070_v18 = vunpack.c.h.bf16 %v4102_v8  ;;  %v2025_v22 = vunpack.c.l.bf16 %v3816_v37  ;;  %v822_v16 = vrot.slane %v708_v11, 2  ;;  %v661_v56 = vld [vmem:[%s4426_s27 + $0x6c] sm:$0xe]  ;;  %270 = vst.msk [vmem:[#allocation2 + $0x90] sm:$0xff] %vm263_vm2, %v4360_v32 }
  0x88   : > { %v5167_v36 = vpop.permute.xlu1 %1085  ;;  %1095 = vrot.lane.b32.xlu1 %v4329_v19, %s4375_s4  ;;  %v1408_v1 = vpack.c.bf16 %v1308_v51, %v1306_v14  ;;  %v2135_v60 = vrot.slane %v4069_v25, 1  ;;  %v1513_v17 = vunpack.c.l.bf16 %v3721_v6  ;;  %v5175_v30 = vsel %vm778_vm0, %v819_v2, %v820_v58  ;;  %v5182_v19 = vld [vmem:[%s4426_s27 + $0x70] ss:$36 sps:$4 sm:$0xff]  }
  0x89   : > { %v5177_v4 = vrot.slane %v4070_v18, 1  ;;  %v2138_v8 = vrot.slane %v2025_v22, 1  ;;  %v1514_v37 = vunpack.c.h.bf16 %v5027_v52  ;;  %v5186_v31 = vsel %vm778_vm0, %v820_v58, %v822_v16  ;;  %v663_v25 = vld [vmem:[%s4426_s27 + $0x74] sm:$0x1]  ;;  %v4096_v22 = vld [vmem:[%s4426_s27 + $0xa8] sm:$0xff]  }
  0x8a   : > { %1424 = vst.msk [vmem:[#allocation2 + $0x38] sm:$0xff] %vm263_vm2, %v1408_v1  ;;  %v1515_v6 = vunpack.c.l.bf16 %v3723_v39  ;;  %v1627_v53 = vrot.slane %v1513_v17, 2  ;;  %v355_v59 = vunpack.c.l.bf16 %v5088_v50  ;;  %v899_v14 = vpack.c.bf16 %v5186_v31, %v5175_v30 }
  0x8b   : > { %1897 = vrot.lane.b32.xlu0 %v4325_v48, %s4374_s30  ;;  %v5195_v52 = vsel %vm424_vm1, %v2135_v60, %v5177_v4  ;;  %v5199_v11 = vsel %vm424_vm1, %v5177_v4, %v2138_v8  ;;  %v1628_v2 = vrot.slane %v1514_v37, 2  ;;  %v356_v58 = vunpack.c.l.bf16 %v5171_v20  ;;  %v3687_v8 = vld [vmem:[%s4426_s27 + $0xb0] sm:$0x1]  ;;  %v4339_v37 = vld [vmem:[%s4426_s27 + $0x54] sm:$0xff]  }
  0x8c   : > { %581 = vrot.lane.b32.xlu1 %v543_v41, %s4376_s5  ;;  %v2215_v50 = vpack.c.bf16 %v5199_v11, %v5195_v52  ;;  %v1630_v48 = vrot.slane %v1515_v6, 2  ;;  %v357_v18 = vunpack.c.l.bf16 %v309_v3  ;;  %v470_v43 = vrot.slane %v355_v59, 1  ;;  %v3817_v59 = vld [vmem:[%s4426_s27 + $0x84] sm:$0xff]   ;;  %v4348_v11 = vld [vmem:[%s4426_s27 + $0x78] sm:$0xff]  }
  0x8d   : > { %v1727_v51 = vpop.permute.xlu0 %1726  ;;  %v924_v39 = vpop.permute.xlu1 %923  ;;  %v5213_v1 = vsel %vm778_vm0, %v1627_v53, %v1628_v2  ;;  %v709_v40 = vunpack.c.l.bf16 %v661_v56  ;;  %v710_v41 = vunpack.c.l.bf16 %v5182_v19  ;;  %v471_v60 = vrot.slane %v356_v58, 1 }
  0x8e   : > { %1774 = vst.msk [vmem:[#allocation2 + $0x8] sm:$0xff] %vm617_vm3, %v1727_v51  ;;  %v5219_v16 = vsel %vm778_vm0, %v1628_v2, %v1630_v48  ;;  %v473_v17 = vrot.slane %v357_v18, 1  ;;  %v711_v3 = vunpack.c.l.bf16 %v663_v25  ;;  %v4045_v53 = vunpack.c.l.bf16 %v4096_v22  ;;  %v3819_v25 = vld [vmem:[%s4426_s27 + $0x8c] sm:$0x1]  ;;  %v3724_v51 = vld [vmem:[%s4426_s27 + $0x84] sm:$0xe] }
  0x8f   : > { %1935 = vst.msk [vmem:[#allocation2 + $0x8] sm:$0xff] %vm971_vm4, %v5132_v57  ;;  %2249 = vrot.lane.b32.xlu0 %v2212_v35, %s4375_s4  ;;  %v1703_v56 = vpack.c.bf16 %v5219_v16, %v5213_v1  ;;  %v824_v57 = vrot.slane %v709_v40, 2  ;;  %v825_v6 = vrot.slane %v710_v41, 2  ;;  %v5235_v2 = vsel %vm424_vm1, %v470_v43, %v471_v60  ;;  %v4361_v48 = vld [vmem:[%s4426_s27 + $0x54] sm:$0xff]   ;;  %v5250_v18 = vld [vmem:[%s4426_s27 + $0x84] sm:$0xff]  }
  0x90   : > { %935 = vrot.lane.b32.xlu1 %v897_v13, %s4374_s30  ;;  %v5238_v15 = vsel %vm424_vm1, %v471_v60, %v473_v17  ;;  %v827_v33 = vrot.slane %v711_v3, 2  ;;  %v4046_v35 = vunpack.c.h.bf16 %v4096_v22  ;;  %v1239_v12 = vunpack.c.l.bf16 %v3687_v8  ;;  %v3726_v17 = vld [vmem:[%s4426_s27 + $0x8c] sm:$0x1]  ;;  %271 = vst.msk [vmem:[#allocation2 + $0xa8] sm:$0xff] %vm263_vm2, %v4361_v48  ;;  %v3657_v48 = vld [vmem:[%s4426_s27 + $0x38] sm:$0x1] }
  0x91   : > { %v570_v32 = vpop.permute.xlu0 %569  ;;  %v546_v58 = vpack.c.bf16 %v5238_v15, %v5235_v2  ;;  %v5247_v0 = vsel %vm778_vm0, %v824_v57, %v825_v6  ;;  %v1359_v13 = vrot.slane %v4045_v53, 1  ;;  %v572_v22 = vpop.permute.xlu1 %571  ;;  %v2026_v41 = vunpack.c.l.bf16 %v3817_v59  ;;  %v312_v53 = vld [vmem:[%s4426_s27 + $0x80] sm:$0x1] }
  0x92   : > { %618 = vst.msk [vmem:[#allocation2] sm:$0xff] %vm617_vm3, %v570_v32  ;;  %v5254_v43 = vsel %vm778_vm0, %v825_v6, %v827_v33  ;;  %v1360_v40 = vrot.slane %v4046_v35, 1  ;;  %v2027_v60 = vunpack.c.h.bf16 %v3817_v59  ;;  %619 = vst.msk [vmem:[#allocation2 + $0x18] sm:$0xff] %vm617_vm3, %v572_v22  ;;  %v1362_v8 = vrot.slane %v1239_v12, 1 }
  0x93   : > { %972 = vst.msk [vmem:[#allocation2] sm:$0xff] %vm971_vm4, %v924_v39  ;;  %1738 = vrot.lane.b32.xlu0 %v1700_v9, %s4376_s5  ;;  %v4335_v39 = vld [vmem:[%s4426_s27 + $0x60] sm:$0xff]   ;;  %v900_v3 = vpack.c.bf16 %v5254_v43, %v5247_v0  ;;  %v2028_v57 = vunpack.c.l.bf16 %v3819_v25  ;;  %v1516_v6 = vunpack.c.l.bf16 %v3724_v51  ;;  %v2140_v32 = vrot.slane %v2026_v41, 1  ;;  %v4091_v9 = vld [vmem:[%s4426_s27 + $0x30] sm:$0xff]   ;;  %v3846_v43 = vld [vmem:[%s4426_s27 + $0x38] sm:$0x1] }
  0x94   : > { %1134 = vst.msk [vmem:[#allocation2] sm:$0xff] %vm1133_vm5, %v5167_v36  ;;  %1097 = vrot.lane.b32.xlu1 %v4339_v37, %s4375_s4  ;;  %v1361_v36 = vsel %vm424_vm1, %v1359_v13, %v1360_v40  ;;  %v2141_v46 = vrot.slane %v2027_v60, 1  ;;  %v1517_v49 = vunpack.c.h.bf16 %v5250_v18  ;;  %v1363_v33 = vsel %vm424_vm1, %v1360_v40, %v1362_v8  ;;  %v664_v60 = vld [vmem:[%s4426_s27 + $0x78] sm:$0xe] }
  0x95   : > { %v2240_v59 = vpop.permute.xlu0 %2239  ;;  %v2143_v35 = vrot.slane %v2028_v57, 1  ;;  %v1518_v25 = vunpack.c.l.bf16 %v3726_v17  ;;  %v1632_v51 = vrot.slane %v1516_v6, 2  ;;  %v1419_v22 = vpack.c.bf16 %v1363_v33, %v1361_v36  ;;  %v666_v6 = vld [vmem:[%s4426_s27 + $0x80] sm:$0x1] }
  0x96   : > { %2287 = vst.msk [vmem:[#allocation2 + $0x8] sm:$0xff] %vm1133_vm5, %v2240_v59  ;;  %v926_v12 = vpop.permute.xlu1 %925  ;;  %v5277_v37 = vsel %vm424_vm1, %v2140_v32, %v2141_v46  ;;  %v1633_v13 = vrot.slane %v1517_v49, 2  ;;  %v360_v41 = vunpack.c.l.bf16 %v312_v53  ;;  %v4025_v8 = vunpack.c.l.bf16 %v4091_v9  ;;  %v4103_v32 = vld [vmem:[%s4426_s27 + $0x90] sm:$0xff]  }
  0x97   : > { %1899 = vrot.lane.b32.xlu0 %v4335_v39, %s4374_s30  ;;  %973 = vst.msk [vmem:[#allocation2 + $0x18] sm:$0xff] %vm971_vm4, %v926_v12  ;;  %v5283_v40 = vsel %vm424_vm1, %v2141_v46, %v2143_v35  ;;  %v1635_v17 = vrot.slane %v1518_v25, 2  ;;  %v4026_v57 = vunpack.c.h.bf16 %v4091_v9  ;;  %v1209_v36 = vunpack.c.l.bf16 %v3657_v48  ;;  %v3822_v46 = vld [vmem:[%s4426_s27 + $0x98] sm:$0x1]  ;;  %v3727_v49 = vld [vmem:[%s4426_s27 + $0x90] sm:$0xe] }
  0x98   : > { %583 = vrot.lane.b32.xlu1 %v544_v47, %s4376_s5  ;;  %1435 = vst.msk [vmem:[#allocation2 + $0x140] sm:$0xff] %vm263_vm2, %v1419_v22  ;;  %v2216_v53 = vpack.c.bf16 %v5283_v40, %v5277_v37  ;;  %v5294_v39 = vsel %vm778_vm0, %v1632_v51, %v1633_v13  ;;  %v478_v59 = vrot.slane %v360_v41, 1  ;;  %v1309_v62 = vrot.slane %v4025_v8, 1  ;;  %v4342_v22 = vld [vmem:[%s4426_s27 + $0x60] sm:$0xff]  }
  0x99   : > { %v1729_v9 = vpop.permute.xlu0 %1728  ;;  %v5300_v33 = vsel %vm778_vm0, %v1633_v13, %v1635_v17  ;;  %v1310_v24 = vrot.slane %v4026_v57, 1  ;;  %v712_v47 = vunpack.c.l.bf16 %v664_v60  ;;  %v1312_v48 = vrot.slane %v1209_v36, 1  ;;  %v3729_v57 = vld [vmem:[%s4426_s27 + $0x98] sm:$0x1] }
  0x9a   : > { %1775 = vst.msk [vmem:[#allocation2 + $0x20] sm:$0xff] %vm617_vm3, %v1729_v9  ;;  %v1088_v35 = vpop.permute.xlu1 %1087  ;;  %v1704_v25 = vpack.c.bf16 %v5300_v33, %v5294_v39  ;;  %v5307_v51 = vsel %vm424_vm1, %v5177_v4, %v478_v59  ;;  %v713_v12 = vunpack.c.h.bf16 %v5171_v20  ;;  %v714_v4 = vunpack.c.l.bf16 %v666_v6  ;;  %v4362_v59 = vld [vmem:[%s4426_s27 + $0x60] sm:$0xff]  }
  0x9b   : > { %2251 = vrot.lane.b32.xlu0 %v2213_v61, %s4375_s4  ;;  %1135 = vst.msk [vmem:[#allocation2 + $0x18] sm:$0xff] %vm1133_vm5, %v1088_v35  ;;  %v547_v13 = vpack.c.bf16 %v5307_v51, %v5195_v52  ;;  %v1311_v41 = vsel %vm424_vm1, %v1309_v62, %v1310_v24  ;;  %v829_v60 = vrot.slane %v712_v47, 2  ;;  %v1313_v20 = vsel %vm424_vm1, %v1310_v24, %v1312_v48  ;;  %v2591_v9 = vld [vmem:[#allocation2] sm:$0xff]  ;;  %v5332_v48 = vld [vmem:[%s4426_s27 + $0x1c] ss:$108 sps:$4 sm:$0xff]  }
  0x9c   : > { %937 = vrot.lane.b32.xlu1 %v898_v28, %s4374_s30  ;;  %v830_v45 = vrot.slane %v713_v12, 2  ;;  %v4073_v61 = vunpack.c.l.bf16 %v4103_v32  ;;  %v4074_v8 = vunpack.c.h.bf16 %v4103_v32  ;;  %v1409_v6 = vpack.c.bf16 %v1313_v20, %v1311_v41  ;;  %v315_v12 = vld [vmem:[%s4426_s27 + $0x8c] sm:$0x1]  ;;  %272 = vst.msk [vmem:[#allocation2 + $0xc0] sm:$0xff] %vm263_vm2, %v4362_v59  ;;  %v5355_v20 = vld [vmem:[%s4426_s27 + $0x34] ss:$84 sps:$4 sm:$0xff]  }
  0x9d   : > { %v2592_v17 = vld [vmem:[#allocation2 + $0x8] sm:$0xff]  ;;  %v1890_v36 = vpop.permute.xlu0 %1889  ;;  %v832_v62 = vrot.slane %v714_v4, 2  ;;  %v2031_v47 = vunpack.c.l.bf16 %v3822_v46  ;;  %v1519_v35 = vunpack.c.l.bf16 %v3727_v49  ;;  %v1520_v24 = vunpack.c.h.bf16 %v5182_v19 }
  0x9e   : > { %2863 = vmatprep.mubr.bf16.mxu0 %v2592_v17  ;;  %1936 = vst.msk [vmem:[#allocation2 + $0x20] sm:$0xff] %vm971_vm4, %v1890_v36  ;;  %v594_v7 = vpop.permute.xlu1 %593  ;;  %v5328_v55 = vsel %vm778_vm0, %v829_v60, %v830_v45  ;;  %v2145_v28 = vrot.slane %v4073_v61, 1  ;;  %v2146_v32 = vrot.slane %v4074_v8, 1  ;;  %v4341_v46 = vld [vmem:[%s4426_s27 + $0x6c] sm:$0xff]   ;;  %v1521_v41 = vunpack.c.l.bf16 %v3729_v57  ;;  %v667_v60 = vld [vmem:[%s4426_s27 + $0x84] sm:$0xe] }
  0x9f   : > { %2864 = vmatmul.mubr.bf16.vlgmr.msra.gmra.mrb[0].mxu0 %v2591_v9  ;;  %1740 = vrot.lane.b32.xlu0 %v1701_v10, %s4376_s5  ;;  %630 = vst.msk [vmem:[#allocation2 + $0x120] sm:$0xff] %vm617_vm3, %v594_v7  ;;  %v5344_v49 = vsel %vm778_vm0, %v830_v45, %v832_v62  ;;  %v2148_v19 = vrot.slane %v2031_v47, 1  ;;  %v1637_v4 = vrot.slane %v1519_v35, 2  ;;  %v1638_v10 = vrot.slane %v1520_v24, 2  ;;  %v669_v59 = vld [vmem:[%s4426_s27 + $0x8c] sm:$0x1] }
  0xa0   : > { %1425 = vst.msk [vmem:[#allocation2 + $0x50] sm:$0xff] %vm263_vm2, %v1409_v6  ;;  %1099 = vrot.lane.b32.xlu1 %v4342_v22, %s4375_s4  ;;  %v901_v63 = vpack.c.bf16 %v5344_v49, %v5328_v55  ;;  %v5351_v29 = vsel %vm424_vm1, %v2145_v28, %v2146_v32  ;;  %v361_v17 = vunpack.c.l.bf16 %v5250_v18  ;;  %v1640_v8 = vrot.slane %v1521_v41, 2  ;;  %v3688_v36 = vld [vmem:[%s4426_s27 + $0xb4] sm:$0xff]   ;;  %v3690_v24 = vld [vmem:[%s4426_s27 + $0xbc] sm:$0x1] }
  0xa1   : > { %v2242_v45 = vpop.permute.xlu0 %2241  ;;  %v5358_v61 = vsel %vm424_vm1, %v2146_v32, %v2148_v19  ;;  %v362_v57 = vunpack.c.h.bf16 %v5332_v48  ;;  %v363_v22 = vunpack.c.l.bf16 %v315_v12  ;;  %v5367_v18 = vsel %vm778_vm0, %v1637_v4, %v1638_v10  ;;  %v3823_v4 = vld [vmem:[%s4426_s27 + $0x9c] sm:$0xff]  }
  0xa2   : > { %2288 = vst.msk [vmem:[#allocation2 + $0x20] sm:$0xff] %vm1133_vm5, %v2242_v45  ;;  %v948_v9 = vpop.permute.xlu1 %947  ;;  %v480_v62 = vrot.slane %v361_v17, 1  ;;  %v715_v47 = vunpack.c.l.bf16 %v667_v60  ;;  %v5372_v35 = vsel %vm778_vm0, %v1638_v10, %v1640_v8  ;;  %v716_v32 = vunpack.c.h.bf16 %v5355_v20 }
  0xa3   : > { %1901 = vrot.lane.b32.xlu0 %v4341_v46, %s4374_s30  ;;  %984 = vst.msk [vmem:[#allocation2 + $0x120] sm:$0xff] %vm971_vm4, %v948_v9  ;;  %v481_v7 = vrot.slane %v362_v57, 1  ;;  %v483_v28 = vrot.slane %v363_v22, 1  ;;  %v717_v46 = vunpack.c.l.bf16 %v669_v59  ;;  %v1240_v41 = vunpack.c.l.bf16 %v3688_v36  ;;  %v4092_v57 = vld [vmem:[%s4426_s27 + $0x48] sm:$0xff]  }
  0xa4   : > { %585 = vrot.lane.b32.xlu1 %v545_v26, %s4376_s5  ;;  %v834_v19 = vrot.slane %v715_v47, 2  ;;  %v835_v45 = vrot.slane %v716_v32, 2  ;;  %v1241_v8 = vunpack.c.h.bf16 %v3688_v36  ;;  %v1242_v59 = vunpack.c.l.bf16 %v3690_v24  ;;  %v3660_v32 = vld [vmem:[%s4426_s27 + $0x44] sm:$0x1] }
  0xa5   : > { %v1751_v60 = vpop.permute.xlu0 %1750  ;;  %v5384_v10 = vsel %vm424_vm1, %v480_v62, %v481_v7  ;;  %v5387_v17 = vsel %vm424_vm1, %v481_v7, %v483_v28  ;;  %v837_v22 = vrot.slane %v717_v46, 2  ;;  %v1364_v9 = vrot.slane %v1240_v41, 1  ;;  %v4345_v62 = vld [vmem:[%s4426_s27 + $0x6c] sm:$0xff]  }
  0xa6   : > { %1786 = vst.msk [vmem:[#allocation2 + $0x128] sm:$0xff] %vm617_vm3, %v1751_v60  ;;  %v2264_v26 = vpop.permute.xlu1 %2263  ;;  %v5400_v36 = vsel %vm778_vm0, %v834_v19, %v835_v45  ;;  %v1365_v47 = vrot.slane %v1241_v8, 1  ;;  %v2032_v7 = vunpack.c.l.bf16 %v3823_v4  ;;  %v2033_v28 = vunpack.c.h.bf16 %v3823_v4  ;;  %v2594_v60 = vld [vmem:[#allocation2 + $0x18] sm:$0xff]  ;;  %v4363_v19 = vld [vmem:[%s4426_s27 + $0x6c] sm:$0xff]  }
  0xa7   : > { %2253 = vrot.lane.b32.xlu0 %v2214_v38, %s4375_s4  ;;  %v5408_v24 = vsel %vm778_vm0, %v835_v45, %v837_v22  ;;  %v1367_v46 = vrot.slane %v1242_v59, 1  ;;  %v2034_v27 = vunpack.c.l.bf16 %v3825_v42  ;;  %v1210_v54 = vunpack.c.l.bf16 %v3658_v23  ;;  %v4097_v38 = vld [vmem:[%s4426_s27 + $0xc0] sm:$0xff]   ;;  %v3693_v59 = vld [vmem:[%s4426_s27 + $0xc8] sm:$0x1]  ;;  %273 = vst.msk [vmem:[#allocation2 + $0xd8] sm:$0xff] %vm263_vm2, %v4363_v19 }
  0xa8   : > { %939 = vrot.lane.b32.xlu1 %v899_v14, %s4374_s30  ;;  %v902_v4 = vpack.c.bf16 %v5408_v24, %v5400_v36  ;;  %v1366_v12 = vsel %vm424_vm1, %v1364_v9, %v1365_v47  ;;  %v2150_v6 = vrot.slane %v2032_v7, 1  ;;  %v2151_v30 = vrot.slane %v2033_v28, 1  ;;  %v4343_v9 = vld [vmem:[%s4426_s27 + $0x78] sm:$0xff]  }
  0xa9   : > { %v1912_v41 = vpop.permute.xlu0 %1911  ;;  %v2595_v8 = vld [vmem:[#allocation2 + $0x20] sm:$0xff]  ;;  %v1368_v14 = vsel %vm424_vm1, %v1365_v47, %v1367_v46  ;;  %v2153_v45 = vrot.slane %v2034_v27, 1  ;;  %v1211_v42 = vunpack.c.h.bf16 %v3658_v23  ;;  %v1212_v22 = vunpack.c.l.bf16 %v3660_v32 }
  0xaa   : > { %1947 = vst.msk [vmem:[#allocation2 + $0x128] sm:$0xff] %vm971_vm4, %v1912_v41  ;;  %2871 = vmatprep.mubr.bf16.mxu0 %v2595_v8  ;;  %v1110_v31 = vpop.permute.xlu1 %1109  ;;  %v1420_v47 = vpack.c.bf16 %v1368_v14, %v1366_v12  ;;  %v5428_v23 = vsel %vm424_vm1, %v2150_v6, %v2151_v30  ;;  %v1314_v7 = vrot.slane %v1210_v54, 1  ;;  %v4049_v28 = vunpack.c.l.bf16 %v4097_v38  ;;  %v3838_v54 = vld [vmem:[%s4426_s27 + $0x18] sm:$0xe] }
  0xab   : > { %2299 = vst.msk [vmem:[#allocation2 + $0x128] sm:$0xff] %vm1133_vm5, %v2264_v26  ;;  %1742 = vrot.lane.b32.xlu0 %v1702_v34, %s4376_s5  ;;  %2872 = vmatmul.mubr.bf16.gmra.mrb[4].mxu0 %v2594_v60  ;;  %1146 = vst.msk [vmem:[#allocation2 + $0x120] sm:$0xff] %vm1133_vm5, %v1110_v31  ;;  %v5432_v26 = vsel %vm424_vm1, %v2151_v30, %v2153_v45  ;;  %v1315_v32 = vrot.slane %v1211_v42, 1  ;;  %v1317_v46 = vrot.slane %v1212_v22, 1  ;;  %v4050_v21 = vunpack.c.h.bf16 %v4097_v38  ;;  %v3840_v30 = vld [vmem:[%s4426_s27 + $0x20] sm:$0x1] }
  0xac   : > { %1101 = vrot.lane.b32.xlu1 %v4345_v62, %s4375_s4  ;;  %1436 = vst.msk [vmem:[#allocation2 + $0x158] sm:$0xff] %vm263_vm2, %v1420_v47  ;;  %v2218_v6 = vpack.c.bf16 %v5432_v26, %v5428_v23  ;;  %v1245_v12 = vunpack.c.l.bf16 %v3693_v59  ;;  %v1369_v60 = vrot.slane %v4049_v28, 1  ;;  %v4029_v27 = vunpack.c.l.bf16 %v4092_v57  ;;  %v3664_v31 = vld [vmem:[%s4426_s27 + $0x54] sm:$0xff]   ;;  %v3666_v28 = vld [vmem:[%s4426_s27 + $0x5c] sm:$0x1] }
  0xad   : > { %v1731_v34 = vpop.permute.xlu0 %1730  ;;  %v1316_v19 = vsel %vm424_vm1, %v1314_v7, %v1315_v32  ;;  %v1318_v38 = vsel %vm424_vm1, %v1315_v32, %v1317_v46  ;;  %v1370_v41 = vrot.slane %v4050_v21, 1  ;;  %v4030_v8 = vunpack.c.h.bf16 %v4092_v57  ;;  %v5457_v21 = vld [vmem:[%s6008_s1 + $0x88] sm:$0xff]  }
  0xae   : > { %1776 = vst.msk [vmem:[#allocation2 + $0x38] sm:$0xff] %vm617_vm3, %v1731_v34  ;;  %v928_v62 = vpop.permute.xlu1 %927  ;;  %v1410_v14 = vpack.c.bf16 %v1318_v38, %v1316_v19  ;;  %v1372_v45 = vrot.slane %v1245_v12, 1  ;;  %v1215_v42 = vunpack.c.l.bf16 %v3663_v5  ;;  %v1319_v22 = vrot.slane %v4029_v27, 1  ;;  %v5463_v19 = vld [vmem:[%s4426_s27 + $0x28] ss:$24 sps:$4 sm:$0xff]  }
  0xaf   : > { %1903 = vrot.lane.b32.xlu0 %v4343_v9, %s4374_s30  ;;  %v1371_v59 = vsel %vm424_vm1, %v1369_v60, %v1370_v41  ;;  %v1320_v47 = vrot.slane %v4030_v8, 1  ;;  %v2351_v7 = vunpack.c.l.bf16 %v3838_v54  ;;  %v2352_v57 = vunpack.c.l.bf16 %v5332_v48 }
  0xb0   : > { %587 = vrot.lane.b32.xlu1 %v546_v58, %s4376_s5  ;;  %1426 = vst.msk [vmem:[#allocation2 + $0x68] sm:$0xff] %vm263_vm2, %v1410_v14  ;;  %v1373_v9 = vsel %vm424_vm1, %v1370_v41, %v1372_v45  ;;  %v1322_v46 = vrot.slane %v1215_v42, 1  ;;  %v2353_v2 = vunpack.c.l.bf16 %v3840_v30  ;;  %v1216_v15 = vunpack.c.l.bf16 %v3664_v31  ;;  %v3841_v58 = vld [vmem:[%s4426_s27 + $0x24] sm:$0xe]  ;;  %v3843_v14 = vld [vmem:[%s4426_s27 + $0x2c] sm:$0x1] }
  0xb1   : > { %v574_v32 = vpop.permute.xlu0 %573  ;;  %v1421_v12 = vpack.c.bf16 %v1373_v9, %v1371_v59  ;;  %v1321_v60 = vsel %vm424_vm1, %v1319_v22, %v1320_v47  ;;  %v2447_v27 = vrot.slane %v2351_v7, 2  ;;  %v2448_v54 = vrot.slane %v2352_v57, 2  ;;  %v3844_v45 = vld [vmem:[%s4426_s27 + $0x30] sm:$0xe]  ;;  %v4364_v22 = vld [vmem:[%s4426_s27 + $0x78] sm:$0xff]  }
  0xb2   : > { %620 = vst.msk [vmem:[#allocation2 + $0x30] sm:$0xff] %vm617_vm3, %v574_v32  ;;  %v1090_v48 = vpop.permute.xlu1 %1089  ;;  %v2628_v5 = vld [vmem:[#allocation2 + $0x128] sm:$0xff]  ;;  %v2627_v34 = vld [vmem:[#allocation2 + $0x120] sm:$0xff]  ;;  %v1323_v38 = vsel %vm424_vm1, %v1320_v47, %v1322_v46  ;;  %v2450_v41 = vrot.slane %v2353_v2, 2  ;;  %v1217_v8 = vunpack.c.h.bf16 %v3664_v31  ;;  %v1218_v30 = vunpack.c.l.bf16 %v3666_v28  ;;  %v3847_v46 = vld [vmem:[%s4426_s27 + $0x3c] sm:$0xe] }
  0xb3   : > { %974 = vst.msk [vmem:[#allocation2 + $0x30] sm:$0xff] %vm971_vm4, %v928_v62  ;;  %2255 = vrot.lane.b32.xlu0 %v2215_v50, %s4375_s4  ;;  %2959 = vmatprep.mubr.bf16.mxu1 %v2628_v5  ;;  %v1411_v50 = vpack.c.bf16 %v1323_v38, %v1321_v60  ;;  %v2449_v62 = vsel %vm778_vm0, %v2447_v27, %v2448_v54  ;;  %v1324_v42 = vrot.slane %v1216_v15, 1  ;;  %v2354_v31 = vunpack.c.l.bf16 %v3841_v58  ;;  %v4347_v2 = vld [vmem:[%s4426_s27 + $0x84] sm:$0xff]  }
  0xb4   : > { %1136 = vst.msk [vmem:[#allocation2 + $0x30] sm:$0xff] %vm1133_vm5, %v1090_v48  ;;  %2960 = vmatmul.mubr.bf16.vlgmr.msra.gmra.mrb[0].mxu1 %v2627_v34  ;;  %941 = vrot.lane.b32.xlu1 %v900_v3, %s4374_s30  ;;  %v2451_v47 = vsel %vm778_vm0, %v2448_v54, %v2450_v41  ;;  %v1325_v7 = vrot.slane %v1217_v8, 1  ;;  %v1327_v57 = vrot.slane %v1218_v30, 1  ;;  %v2355_v0 = vunpack.c.l.bf16 %v5463_v19  ;;  %v3849_v34 = vld [vmem:[%s4426_s27 + $0x44] sm:$0x1] }
  0xb5   : > { %1437 = vst.msk [vmem:[#allocation2 + $0x170] sm:$0xff] %vm263_vm2, %v1421_v12  ;;  %v1892_v59 = vpop.permute.xlu0 %1891  ;;  %4237 = vmatpush3.bf16.msra.mxu1 %v5155_v44  ;;  %1427 = vst.msk [vmem:[#allocation2 + $0x80] sm:$0xff] %vm263_vm2, %v1411_v50  ;;  %v2559_v28 = vpack.c.bf16 %v2451_v47, %v2449_v62  ;;  %v2356_v32 = vunpack.c.l.bf16 %v3843_v14  ;;  %v2452_v44 = vrot.slane %v2354_v31, 2  ;;  %v2357_v9 = vunpack.c.l.bf16 %v3844_v45  ;;  %v4093_v12 = vld [vmem:[%s4426_s27 + $0x60] sm:$0xff]   ;;  %v3669_v8 = vld [vmem:[%s4426_s27 + $0x68] sm:$0x1] }
  0xb6   : > { %1937 = vst.msk [vmem:[#allocation2 + $0x38] sm:$0xff] %vm971_vm4, %v1892_v59  ;;  %v596_v3 = vpop.permute.xlu1 %595  ;;  %4238 = vmatprep.subr.bf16.mxu1 %v5457_v21  ;;  %v1326_v15 = vsel %vm424_vm1, %v1324_v42, %v1325_v7  ;;  %v1328_v58 = vsel %vm424_vm1, %v1325_v7, %v1327_v57  ;;  %v2453_v48 = vrot.slane %v2355_v0, 2  ;;  %v2358_v5 = vunpack.c.l.bf16 %v5355_v20  ;;  %v3850_v50 = vld [vmem:[%s4426_s27 + $0x48] sm:$0xe]  ;;  %v3852_v0 = vld [vmem:[%s4426_s27 + $0x50] sm:$0x1] }
  0xb7   : > { %274 = vst.msk [vmem:[#allocation2 + $0xf0] sm:$0xff] %vm263_vm2, %v4364_v22  ;;  %1744 = vrot.lane.b32.xlu0 %v1703_v56, %s4376_s5  ;;  %2575 = vst.msk [vmem:[#allocation2 + $0x10] sm:$0xff] %vm263_vm2, %v2559_v28  ;;  %v1412_v60 = vpack.c.bf16 %v1328_v58, %v1326_v15  ;;  %v2455_v1 = vrot.slane %v2356_v32, 2  ;;  %v2359_v16 = vunpack.c.l.bf16 %v3846_v43  ;;  %v2457_v56 = vrot.slane %v2357_v9, 2  ;;  %v3851_v22 = vld [vmem:[%s4426_s27 + $0x4c] ss:$12 sps:$4 sm:$0xff]  }
  0xb8   : > { %631 = vst.msk [vmem:[#allocation2 + $0x138] sm:$0xff] %vm617_vm3, %v596_v3  ;;  %1103 = vrot.lane.b32.xlu1 %v4348_v11, %s4375_s4  ;;  %v2454_v54 = vsel %vm778_vm0, %v2452_v44, %v2453_v48  ;;  %v2458_v38 = vrot.slane %v2358_v5, 2  ;;  %v2360_v41 = vunpack.c.l.bf16 %v3847_v46  ;;  %v2361_v20 = vunpack.c.h.bf16 %v5463_v19  ;;  %v3853_v43 = vld [vmem:[%s4426_s27 + $0x54] sm:$0xe]  ;;  %v3855_v15 = vld [vmem:[%s4426_s27 + $0x5c] sm:$0x1] }
  0xb9   : > { %v2244_v27 = vpop.permute.xlu0 %2243  ;;  %4239 = vmatpush3.bf16.msra.mxu1 %v5457_v21  ;;  %1428 = vst.msk [vmem:[#allocation2 + $0x98] sm:$0xff] %vm263_vm2, %v1412_v60  ;;  %v2456_v14 = vsel %vm778_vm0, %v2453_v48, %v2455_v1  ;;  %v2460_v45 = vrot.slane %v2359_v16, 2  ;;  %v2362_v11 = vunpack.c.l.bf16 %v3849_v34  ;;  %v4033_v21 = vunpack.c.l.bf16 %v4093_v12  ;;  %v3856_v58 = vld [vmem:[%s4426_s27 + $0x60] sm:$0xe]  ;;  %v4351_v48 = vld [vmem:[%s4426_s27 + $0x84] sm:$0xff]  }
  0xba   : > { %2289 = vst.msk [vmem:[#allocation2 + $0x38] sm:$0xff] %vm1133_vm5, %v2244_v27  ;;  %v950_v30 = vpop.permute.xlu1 %949  ;;  %v2560_v19 = vpack.c.bf16 %v2456_v14, %v2454_v54  ;;  %v2459_v62 = vsel %vm778_vm0, %v2457_v56, %v2458_v38  ;;  %v2462_v42 = vrot.slane %v2360_v41, 2  ;;  %v2463_v31 = vrot.slane %v2361_v20, 2  ;;  %v5536_v1 = vld [vmem:[%s4426_s27 + $0x64] ss:$12 sps:$4 sm:$0xff]  }
  0xbb   : > { %1905 = vrot.lane.b32.xlu0 %v4347_v2, %s4374_s30  ;;  %985 = vst.msk [vmem:[#allocation2 + $0x138] sm:$0xff] %vm971_vm4, %v950_v30  ;;  %v2461_v59 = vsel %vm778_vm0, %v2458_v38, %v2460_v45  ;;  %v2465_v47 = vrot.slane %v2362_v11, 2  ;;  %v4034_v7 = vunpack.c.h.bf16 %v4093_v12  ;;  %v1221_v57 = vunpack.c.l.bf16 %v3669_v8  ;;  %v3858_v16 = vld [vmem:[%s4426_s27 + $0x68] sm:$0x1]  ;;  %v2597_v56 = vld [vmem:[#allocation2 + $0x30] sm:$0xff] }
  0xbc   : > { %589 = vrot.lane.b32.xlu1 %v547_v13, %s4376_s5  ;;  %2576 = vst.msk [vmem:[#allocation2 + $0x28] sm:$0xff] %vm263_vm2, %v2560_v19  ;;  %v2561_v28 = vpack.c.bf16 %v2461_v59, %v2459_v62  ;;  %v2464_v32 = vsel %vm778_vm0, %v2462_v42, %v2463_v31  ;;  %v1329_v44 = vrot.slane %v4033_v21, 1  ;;  %v2363_v9 = vunpack.c.l.bf16 %v3850_v50  ;;  %v3670_v54 = vld [vmem:[%s4426_s27 + $0x6c] sm:$0xff]   ;;  %v4365_v38 = vld [vmem:[%s4426_s27 + $0x84] sm:$0xff]   ;;  %v3672_v50 = vld [vmem:[%s4426_s27 + $0x74] sm:$0x1] }
  0xbd   : > { %v1753_v3 = vpop.permute.xlu0 %1752  ;;  %v2466_v51 = vsel %vm778_vm0, %v2463_v31, %v2465_v47  ;;  %v1330_v13 = vrot.slane %v4034_v7, 1  ;;  %v1332_v46 = vrot.slane %v1221_v57, 1  ;;  %v2364_v2 = vunpack.c.l.bf16 %v3851_v22  ;;  %275 = vst.msk [vmem:[#allocation2 + $0x108] sm:$0xff] %vm263_vm2, %v4365_v38  ;;  %v4349_v19 = vld [vmem:[%s4426_s27 + $0x90] sm:$0xff]   ;;  %v3859_v59 = vld [vmem:[%s4426_s27 + $0x6c] sm:$0xe] }
  0xbe   : > { %1787 = vst.msk [vmem:[#allocation2 + $0x140] sm:$0xff] %vm617_vm3, %v1753_v3  ;;  %v2266_v52 = vpop.permute.xlu1 %2265  ;;  %v2562_v5 = vpack.c.bf16 %v2466_v51, %v2464_v32  ;;  %v2365_v34 = vunpack.c.l.bf16 %v3852_v0  ;;  %v2467_v12 = vrot.slane %v2363_v9, 2  ;;  %v2366_v60 = vunpack.c.l.bf16 %v3853_v43  ;;  %v3862_v32 = vld [vmem:[%s4426_s27 + $0x78] sm:$0xe] }
  0xbf   : > { %2257 = vrot.lane.b32.xlu0 %v2216_v53, %s4375_s4  ;;  %2577 = vst.msk [vmem:[#allocation2 + $0x40] sm:$0xff] %vm263_vm2, %v2561_v28  ;;  %v1331_v37 = vsel %vm424_vm1, %v1329_v44, %v1330_v13  ;;  %v1333_v40 = vsel %vm424_vm1, %v1330_v13, %v1332_v46  ;;  %v2468_v53 = vrot.slane %v2364_v2, 2  ;;  %v2367_v27 = vunpack.c.h.bf16 %v3851_v22  ;;  %v3861_v28 = vld [vmem:[%s4426_s27 + $0x74] sm:$0x1] }
  0xc0   : > { %943 = vrot.lane.b32.xlu1 %v901_v63, %s4374_s30  ;;  %2578 = vst.msk [vmem:[#allocation2 + $0x58] sm:$0xff] %vm263_vm2, %v2562_v5  ;;  %v1413_v8 = vpack.c.bf16 %v1333_v40, %v1331_v37  ;;  %v2470_v30 = vrot.slane %v2365_v34, 2  ;;  %v2368_v14 = vunpack.c.l.bf16 %v3855_v15  ;;  %v2472_v45 = vrot.slane %v2366_v60, 2  ;;  %v5572_v46 = vld [vmem:[%s4426_s27 + $0x7c] ss:$24 sps:$4 sm:$0xff]   ;;  %v5585_v40 = vld [vmem:[%s4426_s27 + $0x84] sm:$0xff]  }
  0xc1   : > { %v1914_v41 = vpop.permute.xlu0 %1913  ;;  %v2598_v20 = vld [vmem:[#allocation2 + $0x38] sm:$0xff]  ;;  %v2469_v49 = vsel %vm778_vm0, %v2467_v12, %v2468_v53  ;;  %v2473_v63 = vrot.slane %v2367_v27, 2  ;;  %v2369_v11 = vunpack.c.l.bf16 %v3856_v58  ;;  %v2370_v21 = vunpack.c.l.bf16 %v5536_v1  ;;  %v3864_v5 = vld [vmem:[%s4426_s27 + $0x80] sm:$0x1]  ;;  %v3865_v37 = vld [vmem:[%s4426_s27 + $0x84] sm:$0xe] }
  0xc2   : > { %1948 = vst.msk [vmem:[#allocation2 + $0x140] sm:$0xff] %vm971_vm4, %v1914_v41  ;;  %2879 = vmatprep.mubr.bf16.mxu0 %v2598_v20  ;;  %v1112_v55 = vpop.permute.xlu1 %1111  ;;  %v2471_v62 = vsel %vm778_vm0, %v2468_v53, %v2470_v30  ;;  %v2475_v42 = vrot.slane %v2368_v14, 2  ;;  %v2371_v31 = vunpack.c.l.bf16 %v3858_v16  ;;  %v1222_v22 = vunpack.c.l.bf16 %v3670_v54  ;;  %v3867_v41 = vld [vmem:[%s4426_s27 + $0x8c] sm:$0x1] }
  0xc3   : > { %2300 = vst.msk [vmem:[#allocation2 + $0x140] sm:$0xff] %vm1133_vm5, %v2266_v52  ;;  %1746 = vrot.lane.b32.xlu0 %v1704_v25, %s4376_s5  ;;  %2880 = vmatmul.mubr.bf16.gmra.mrb[8].mxu0 %v2597_v56  ;;  %1147 = vst.msk [vmem:[#allocation2 + $0x138] sm:$0xff] %vm1133_vm5, %v1112_v55  ;;  %v2563_v47 = vpack.c.bf16 %v2471_v62, %v2469_v49  ;;  %v2474_v39 = vsel %vm778_vm0, %v2472_v45, %v2473_v63  ;;  %v2477_v33 = vrot.slane %v2369_v11, 2  ;;  %v4354_v62 = vld [vmem:[%s4426_s27 + $0x90] sm:$0xff]  }
  0xc4   : > { %1429 = vst.msk [vmem:[#allocation2 + $0xb0] sm:$0xff] %vm263_vm2, %v1413_v8  ;;  %1105 = vrot.lane.b32.xlu1 %v4351_v48, %s4375_s4  ;;  %v2478_v25 = vrot.slane %v2370_v21, 2  ;;  %v2476_v57 = vsel %vm778_vm0, %v2473_v63, %v2475_v42  ;;  %v2480_v0 = vrot.slane %v2371_v31, 2  ;;  %v1223_v43 = vunpack.c.h.bf16 %v3670_v54 }
  0xc5   : > { %v1733_v7 = vpop.permute.xlu0 %1732  ;;  %v1224_v3 = vunpack.c.l.bf16 %v3672_v50  ;;  %2579 = vst.msk [vmem:[#allocation2 + $0x70] sm:$0xff] %vm263_vm2, %v2563_v47  ;;  %v2564_v9 = vpack.c.bf16 %v2476_v57, %v2474_v39  ;;  %v1334_v51 = vrot.slane %v1222_v22, 1  ;;  %v2372_v13 = vunpack.c.l.bf16 %v3859_v59  ;;  %v3868_v22 = vld [vmem:[%s4426_s27 + $0x90] sm:$0xe] }
  0xc6   : > { %1777 = vst.msk [vmem:[#allocation2 + $0x50] sm:$0xff] %vm617_vm3, %v1733_v7  ;;  %v930_v44 = vpop.permute.xlu1 %929  ;;  %v2479_v52 = vsel %vm778_vm0, %v2477_v33, %v2478_v25  ;;  %v2481_v2 = vsel %vm778_vm0, %v2478_v25, %v2480_v0  ;;  %v1335_v15 = vrot.slane %v1223_v43, 1  ;;  %v2373_v48 = vunpack.c.h.bf16 %v5536_v1  ;;  %v3870_v0 = vld [vmem:[%s4426_s27 + $0x98] sm:$0x1]  ;;  %v3871_v43 = vld [vmem:[%s4426_s27 + $0x9c] sm:$0xe] }
  0xc7   : > { %1907 = vrot.lane.b32.xlu0 %v4349_v19, %s4374_s30  ;;  %v1337_v58 = vrot.slane %v1224_v3, 1  ;;  %v6011_v34 = vpack.c.bf16 %v5387_v17, %v5384_v10  ;;  %2580 = vst.msk [vmem:[#allocation2 + $0x88] sm:$0xff] %vm263_vm2, %v2564_v9  ;;  %v2565_v12 = vpack.c.bf16 %v2481_v2, %v2479_v52  ;;  %v2374_v60 = vunpack.c.l.bf16 %v3861_v28  ;;  %v4094_v10 = vld [vmem:[%s4426_s27 + $0x78] sm:$0xff]   ;;  %v3675_v19 = vld [vmem:[%s4426_s27 + $0x80] sm:$0x1] }
  0xc8   : > { %v2482_v16 = vrot.slane %v2372_v13, 2  ;;  %v2375_v56 = vunpack.c.l.bf16 %v3862_v32  ;;  %v1336_v27 = vsel %vm424_vm1, %v1334_v51, %v1335_v15  ;;  %v2483_v54 = vrot.slane %v2373_v48, 2  ;;  %v4353_v28 = vld [vmem:[%s4426_s27 + $0x9c] sm:$0xff]  }
  0xc9   : > { %591 = vrot.lane.b32.xlu1 %v6011_v34, %s4376_s5  ;;  %v576_v53 = vpop.permute.xlu0 %575  ;;  %v1338_v1 = vsel %vm424_vm1, %v1335_v15, %v1337_v58  ;;  %v2376_v38 = vunpack.c.l.bf16 %v5572_v46  ;;  %2581 = vst.msk [vmem:[#allocation2 + $0xa0] sm:$0xff] %vm263_vm2, %v2565_v12  ;;  %v2485_v14 = vrot.slane %v2374_v60, 2  ;;  %v2377_v45 = vunpack.c.l.bf16 %v3864_v5  ;;  %v3872_v51 = vld [vmem:[%s4426_s27 + $0xa0] ss:$12 sps:$4 sm:$0xff]   ;;  %v3874_v60 = vld [vmem:[%s4426_s27 + $0xa8] sm:$0xe] }
  0xca   : > { %621 = vst.msk [vmem:[#allocation2 + $0x48] sm:$0xff] %vm617_vm3, %v576_v53  ;;  %v1092_v17 = vpop.permute.xlu1 %1091  ;;  %v2631_v20 = vld [vmem:[#allocation2 + $0x140] sm:$0xff]  ;;  %v2630_v8 = vld [vmem:[#allocation2 + $0x138] sm:$0xff]  ;;  %v1414_v30 = vpack.c.bf16 %v1338_v1, %v1336_v27  ;;  %v2487_v55 = vrot.slane %v2375_v56, 2  ;;  %v6012_v49 = vpack.c.bf16 %v5358_v61, %v5351_v29  ;;  %v2484_v63 = vsel %vm778_vm0, %v2482_v16, %v2483_v54 }
  0xcb   : > { %975 = vst.msk [vmem:[#allocation2 + $0x48] sm:$0xff] %vm971_vm4, %v930_v44  ;;  %2967 = vmatprep.mubr.bf16.mxu1 %v2631_v20  ;;  %v2488_v11 = vrot.slane %v2376_v38, 2  ;;  %v2378_v21 = vunpack.c.l.bf16 %v3865_v37  ;;  %v2379_v50 = vunpack.c.h.bf16 %v5585_v40  ;;  %v2486_v29 = vsel %vm778_vm0, %v2483_v54, %v2485_v14 }
  0xcc   : > { %2259 = vrot.lane.b32.xlu0 %v6012_v49, %s4375_s4  ;;  %1137 = vst.msk [vmem:[#allocation2 + $0x48] sm:$0xff] %vm1133_vm5, %v1092_v17  ;;  %2968 = vmatmul.mubr.bf16.gmra.mrb[4].mxu1 %v2630_v8  ;;  %v2490_v61 = vrot.slane %v2377_v45, 2  ;;  %v2380_v42 = vunpack.c.l.bf16 %v3867_v41  ;;  %v4037_v31 = vunpack.c.l.bf16 %v4094_v10  ;;  %v2566_v47 = vpack.c.bf16 %v2486_v29, %v2484_v63 }
  0xcd   : > { %945 = vrot.lane.b32.xlu1 %v902_v4, %s4374_s30  ;;  %1430 = vst.msk [vmem:[#allocation2 + $0xc8] sm:$0xff] %vm263_vm2, %v1414_v30  ;;  %v1894_v59 = vpop.permute.xlu0 %1893  ;;  %v2489_v39 = vsel %vm778_vm0, %v2487_v55, %v2488_v11  ;;  %v2492_v33 = vrot.slane %v2378_v21, 2  ;;  %v2493_v25 = vrot.slane %v2379_v50, 2  ;;  %v4038_v7 = vunpack.c.h.bf16 %v4094_v10  ;;  %v3678_v30 = vld [vmem:[%s4426_s27 + $0x8c] sm:$0x1] }
  0xce   : > { %1938 = vst.msk [vmem:[#allocation2 + $0x50] sm:$0xff] %vm971_vm4, %v1894_v59  ;;  %v598_v36 = vpop.permute.xlu1 %597  ;;  %v2491_v24 = vsel %vm778_vm0, %v2488_v11, %v2490_v61  ;;  %v2495_v4 = vrot.slane %v2380_v42, 2  ;;  %v1227_v57 = vunpack.c.l.bf16 %v3675_v19  ;;  %v6013_v3 = vpack.c.bf16 %v5372_v35, %v5367_v18  ;;  %v3873_v35 = vld [vmem:[%s4426_s27 + $0xa4] sm:$0x1]  ;;  %v3877_v11 = vld [vmem:[%s4426_s27 + $0xb4] sm:$0xe] }
  0xcf   : > { %632 = vst.msk [vmem:[#allocation2 + $0x150] sm:$0xff] %vm617_vm3, %v598_v36  ;;  %v2567_v32 = vpack.c.bf16 %v2491_v24, %v2489_v39  ;;  %v2494_v44 = vsel %vm778_vm0, %v2492_v33, %v2493_v25  ;;  %v1339_v9 = vrot.slane %v4037_v31, 1  ;;  %v2381_v52 = vunpack.c.l.bf16 %v3868_v22  ;;  %v3677_v61 = vld [vmem:[%s4426_s27 + $0x88] ss:$48 sps:$4 sm:$0xff]   ;;  %v3879_v59 = vld [vmem:[%s4426_s27 + $0xbc] sm:$0x1] }
  0xd0   : > { %1748 = vrot.lane.b32.xlu0 %v6013_v3, %s4376_s5  ;;  %2582 = vst.msk [vmem:[#allocation2 + $0xb8] sm:$0xff] %vm263_vm2, %v2566_v47  ;;  %v2496_v13 = vsel %vm778_vm0, %v2493_v25, %v2495_v4  ;;  %v1340_v2 = vrot.slane %v4038_v7, 1  ;;  %v1342_v15 = vrot.slane %v1227_v57, 1  ;;  %v2382_v18 = vunpack.c.h.bf16 %v5572_v46  ;;  %v3876_v46 = vld [vmem:[%s4426_s27 + $0xb0] sm:$0x1] }
  0xd1   : > { %1107 = vrot.lane.b32.xlu1 %v4354_v62, %s4375_s4  ;;  %v2246_v58 = vpop.permute.xlu0 %2245  ;;  %2583 = vst.msk [vmem:[#allocation2 + $0xd0] sm:$0xff] %vm263_vm2, %v2567_v32  ;;  %v2568_v48 = vpack.c.bf16 %v2496_v13, %v2494_v44  ;;  %v2383_v5 = vunpack.c.l.bf16 %v3870_v0  ;;  %v2497_v34 = vrot.slane %v2381_v52, 2  ;;  %v2384_v12 = vunpack.c.l.bf16 %v3871_v43  ;;  %v3880_v47 = vld [vmem:[%s4426_s27 + $0xc0] sm:$0xe]  ;;  %v3881_v4 = vld [vmem:[%s4426_s27 + $0xc4] ss:$12 sps:$4 sm:$0xff]  }
  0xd2   : > { %2290 = vst.msk [vmem:[#allocation2 + $0x50] sm:$0xff] %vm1133_vm5, %v2246_v58  ;;  %v952_v16 = vpop.permute.xlu1 %951  ;;  %v1341_v56 = vsel %vm424_vm1, %v1339_v9, %v1340_v2  ;;  %v1343_v37 = vsel %vm424_vm1, %v1340_v2, %v1342_v15  ;;  %v2498_v53 = vrot.slane %v2382_v18, 2  ;;  %v2385_v27 = vunpack.c.l.bf16 %v3872_v51  ;;  %v3882_v43 = vld [vmem:[%s4426_s27 + $0xc8] sm:$0x1]  ;;  %v3883_v52 = vld [vmem:[%s4426_s27 + $0xcc] sm:$0xe] }
  0xd3   : > { %986 = vst.msk [vmem:[#allocation2 + $0x150] sm:$0xff] %vm971_vm4, %v952_v16  ;;  %v1415_v1 = vpack.c.bf16 %v1343_v37, %v1341_v56  ;;  %v2500_v54 = vrot.slane %v2383_v5, 2  ;;  %v2386_v38 = vunpack.c.l.bf16 %v3873_v35  ;;  %v2502_v41 = vrot.slane %v2384_v12, 2  ;;  %v2600_v39 = vld [vmem:[#allocation2 + $0x48] sm:$0xff]  ;;  %v3885_v18 = vld [vmem:[%s4426_s27 + $0xd4] sm:$0x1] }
  0xd4   : > { %1909 = vrot.lane.b32.xlu0 %v4353_v28, %s4374_s30  ;;  %2584 = vst.msk [vmem:[#allocation2 + $0xe8] sm:$0xff] %vm263_vm2, %v2568_v48  ;;  %v2499_v10 = vsel %vm778_vm0, %v2497_v34, %v2498_v53  ;;  %v2503_v17 = vrot.slane %v2385_v27, 2  ;;  %v2387_v20 = vunpack.c.l.bf16 %v3874_v60  ;;  %v2388_v8 = vunpack.c.h.bf16 %v3872_v51  ;;  %v4095_v35 = vld [vmem:[%s4426_s27 + $0x90] sm:$0xff]  }
  0xd5   : > { %v1755_v14 = vpop.permute.xlu0 %1754  ;;  %1431 = vst.msk [vmem:[#allocation2 + $0xe0] sm:$0xff] %vm263_vm2, %v1415_v1  ;;  %v2501_v45 = vsel %vm778_vm0, %v2498_v53, %v2500_v54  ;;  %v2505_v55 = vrot.slane %v2386_v38, 2  ;;  %v2389_v49 = vunpack.c.l.bf16 %v3876_v46  ;;  %v1228_v63 = vunpack.c.l.bf16 %v5585_v40  ;;  %v3681_v53 = vld [vmem:[%s4426_s27 + $0x98] sm:$0x1]  ;;  %s3954_s27 = sshll.u32 %s6015_s13, 7 }
  0xd6   : > { %1788 = vst.msk [vmem:[#allocation2 + $0x158] sm:$0xff] %vm617_vm3, %v1755_v14  ;;  %v2268_v21 = vpop.permute.xlu1 %2267  ;;  %v2569_v50 = vpack.c.bf16 %v2501_v45, %v2499_v10  ;;  %v2504_v19 = vsel %vm778_vm0, %v2502_v41, %v2503_v17  ;;  %v2507_v62 = vrot.slane %v2387_v20, 2  ;;  %v2508_v29 = vrot.slane %v2388_v8, 2  ;;  %s5783_s5 = scalar_lea.vmem %s6009_s2, %s3954_s27 }
  0xd7   : > { %v2506_v42 = vsel %vm778_vm0, %v2503_v17, %v2505_v55  ;;  %v2510_v31 = vrot.slane %v2389_v49, 2  ;;  %v1229_v40 = vunpack.c.l.bf16 %v3677_v61  ;;  %v1230_v22 = vunpack.c.l.bf16 %v3678_v30 }
  0xd8   : > { %2261 = vrot.lane.b32.xlu0 %v2218_v6, %s4375_s4  ;;  %2585 = vst.msk [vmem:[#allocation2 + $0x100] sm:$0xff] %vm263_vm2, %v2569_v50  ;;  %v2570_v33 = vpack.c.bf16 %v2506_v42, %v2504_v19  ;;  %v2509_v25 = vsel %vm778_vm0, %v2507_v62, %v2508_v29  ;;  %v1344_v36 = vrot.slane %v1228_v63, 1  ;;  %v2390_v24 = vunpack.c.l.bf16 %v3877_v11 }
  0xd9   : > { %v1916_v23 = vpop.permute.xlu0 %1915  ;;  %v2601_v26 = vld [vmem:[#allocation2 + $0x50] sm:$0xff]  ;;  %v2511_v6 = vsel %vm778_vm0, %v2508_v29, %v2510_v31  ;;  %v1345_v7 = vrot.slane %v1229_v40, 1  ;;  %v1347_v57 = vrot.slane %v1230_v22, 1  ;;  %v2391_v0 = vunpack.c.h.bf16 %v3677_v61 }
  0xda   : > { %1949 = vst.msk [vmem:[#allocation2 + $0x158] sm:$0xff] %vm971_vm4, %v1916_v23  ;;  %2887 = vmatprep.mubr.bf16.mxu0 %v2601_v26  ;;  %v1114_v3 = vpop.permute.xlu1 %1113  ;;  %v2571_v28 = vpack.c.bf16 %v2511_v6, %v2509_v25  ;;  %v2392_v32 = vunpack.c.l.bf16 %v3879_v59  ;;  %v2512_v44 = vrot.slane %v2390_v24, 2  ;;  %v2393_v9 = vunpack.c.l.bf16 %v3880_v47 }
  0xdb   : > { %2586 = vst.msk [vmem:[#allocation2 + $0x118] sm:$0xff] %vm263_vm2, %v2570_v33  ;;  %2888 = vmatmul.mubr.bf16.gmra.mrb[12].mxu0 %v2600_v39  ;;  %v1346_v51 = vsel %vm424_vm1, %v1344_v36, %v1345_v7  ;;  %v1348_v13 = vsel %vm424_vm1, %v1345_v7, %v1347_v57  ;;  %v2513_v2 = vrot.slane %v2391_v0, 2  ;;  %v2394_v15 = vunpack.c.l.bf16 %v3881_v4 }
  0xdc   : > { %2301 = vst.msk [vmem:[#allocation2 + $0x158] sm:$0xff] %vm1133_vm5, %v2268_v21  ;;  %1148 = vst.msk [vmem:[#allocation2 + $0x150] sm:$0xff] %vm1133_vm5, %v1114_v3  ;;  %v1416_v58 = vpack.c.bf16 %v1348_v13, %v1346_v51  ;;  %v2515_v48 = vrot.slane %v2392_v32, 2  ;;  %v2395_v5 = vunpack.c.l.bf16 %v3882_v43  ;;  %v2517_v34 = vrot.slane %v2393_v9, 2  ;;  %v2599_v13 = vld [vmem:[#allocation2 + $0x40] sm:$0xff] }
  0xdd   : > { %2587 = vst.msk [vmem:[#allocation2 + $0x130] sm:$0xff] %vm263_vm2, %v2571_v28  ;;  %v1735_v12 = vpop.permute.xlu0 %1734  ;;  %v2514_v60 = vsel %vm778_vm0, %v2512_v44, %v2513_v2  ;;  %v2518_v16 = vrot.slane %v2394_v15, 2  ;;  %v2396_v56 = vunpack.c.l.bf16 %v3883_v52  ;;  %v2397_v37 = vunpack.c.h.bf16 %v3881_v4  ;;  %v2593_v28 = vld [vmem:[#allocation2 + $0x10] sm:$0xff]  ;;  %v2596_v52 = vld [vmem:[#allocation2 + $0x28] sm:$0xff] }
  0xde   : > { %1778 = vst.msk [vmem:[#allocation2 + $0x68] sm:$0xff] %vm617_vm3, %v1735_v12  ;;  %v932_v27 = vpop.permute.xlu1 %931  ;;  %v2516_v46 = vsel %vm778_vm0, %v2513_v2, %v2515_v48  ;;  %v2520_v1 = vrot.slane %v2395_v5, 2  ;;  %v2398_v54 = vunpack.c.l.bf16 %v3885_v18  ;;  %v4041_v38 = vunpack.c.l.bf16 %v4095_v35  ;;  %v2602_v48 = vld [vmem:[#allocation2 + $0x58] sm:$0xff] }
  0xdf   : > { %1432 = vst.msk [vmem:[#allocation2 + $0xf8] sm:$0xff] %vm263_vm2, %v1416_v58  ;;  %v2572_v41 = vpack.c.bf16 %v2516_v46, %v2514_v60  ;;  %v2519_v10 = vsel %vm778_vm0, %v2517_v34, %v2518_v16  ;;  %v2522_v17 = vrot.slane %v2396_v56, 2  ;;  %v2523_v20 = vrot.slane %v2397_v37, 2  ;;  %v2605_v34 = vld [vmem:[#allocation2 + $0x70] sm:$0xff]  ;;  %v2608_v56 = vld [vmem:[#allocation2 + $0x88] sm:$0xff] }
  0xe0   : > { %v2521_v8 = vsel %vm778_vm0, %v2518_v16, %v2520_v1  ;;  %v2525_v30 = vrot.slane %v2398_v54, 2  ;;  %v4042_v14 = vunpack.c.h.bf16 %v4095_v35  ;;  %v1233_v45 = vunpack.c.l.bf16 %v3681_v53  ;;  %v2611_v53 = vld [vmem:[#allocation2 + $0xa0] sm:$0xff] }
  0xe1   : > { %v578_v55 = vpop.permute.xlu0 %577  ;;  %2588 = vst.msk [vmem:[#allocation2 + $0x148] sm:$0xff] %vm263_vm2, %v2572_v41  ;;  %v2573_v49 = vpack.c.bf16 %v2521_v8, %v2519_v10  ;;  %v2524_v63 = vsel %vm778_vm0, %v2522_v17, %v2523_v20  ;;  %v1349_v11 = vrot.slane %v4041_v38, 1  ;;  %v2614_v41 = vld [vmem:[#allocation2 + $0xb8] sm:$0xff]  ;;  %v2617_v17 = vld [vmem:[#allocation2 + $0xd0] sm:$0xff] }
  0xe2   : > { %622 = vst.msk [vmem:[#allocation2 + $0x60] sm:$0xff] %vm617_vm3, %v578_v55  ;;  %v1094_v21 = vpop.permute.xlu1 %1093  ;;  %v2526_v62 = vsel %vm778_vm0, %v2523_v20, %v2525_v30  ;;  %v1350_v29 = vrot.slane %v4042_v14, 1  ;;  %v1352_v61 = vrot.slane %v1233_v45, 1  ;;  %v2620_v55 = vld [vmem:[#allocation2 + $0xe8] sm:$0xff] }
  0xe3   : > { %v2634_v50 = vld [vmem:[#allocation2 + $0x158] sm:$0xff]  ;;  %v2633_v19 = vld [vmem:[#allocation2 + $0x150] sm:$0xff]  ;;  %976 = vst.msk [vmem:[#allocation2 + $0x60] sm:$0xff] %vm971_vm4, %v932_v27  ;;  %v2574_v42 = vpack.c.bf16 %v2526_v62, %v2524_v63  ;;  %v2623_v63 = vld [vmem:[#allocation2 + $0x100] sm:$0xff] }
  0xe4   : > { %2975 = vmatprep.mubr.bf16.mxu1 %v2634_v50  ;;  %2589 = vst.msk [vmem:[#allocation2 + $0x160] sm:$0xff] %vm263_vm2, %v2573_v49  ;;  %v1351_v31 = vsel %vm424_vm1, %v1349_v11, %v1350_v29  ;;  %v1353_v40 = vsel %vm424_vm1, %v1350_v29, %v1352_v61  ;;  %v2629_v29 = vld [vmem:[#allocation2 + $0x130] sm:$0xff] }
  0xe5   : > { %1138 = vst.msk [vmem:[#allocation2 + $0x60] sm:$0xff] %vm1133_vm5, %v1094_v21  ;;  %2976 = vmatmul.mubr.bf16.gmra.mrb[8].mxu1 %v2633_v19  ;;  %v1896_v22 = vpop.permute.xlu0 %1895  ;;  %v1417_v59 = vpack.c.bf16 %v1353_v40, %v1351_v31  ;;  %v2626_v19 = vld [vmem:[#allocation2 + $0x118] sm:$0xff] }
  0xe6   : > { %2590 = vst.msk [vmem:[#allocation2 + $0x178] sm:$0xff] %vm263_vm2, %v2574_v42  ;;  %v600_v47 = vpop.permute.xlu1 %599 }
  0xe7   : > { %1939 = vst.msk [vmem:[#allocation2 + $0x68] sm:$0xff] %vm971_vm4, %v1896_v22 }
  0xe8   : > { %633 = vst.msk [vmem:[#allocation2 + $0x168] sm:$0xff] %vm617_vm3, %v600_v47 }
  0xe9   : > { %1433 = vst.msk [vmem:[#allocation2 + $0x110] sm:$0xff] %vm263_vm2, %v1417_v59  ;;  %v2248_v39 = vpop.permute.xlu0 %2247  ;;  %v2632_v59 = vld [vmem:[#allocation2 + $0x148] sm:$0xff] }
  0xea   : > { %2291 = vst.msk [vmem:[#allocation2 + $0x68] sm:$0xff] %vm1133_vm5, %v2248_v39  ;;  %v954_v33 = vpop.permute.xlu1 %953 }
  0xeb   : > { %987 = vst.msk [vmem:[#allocation2 + $0x168] sm:$0xff] %vm971_vm4, %v954_v33  ;;  %v2635_v39 = vld [vmem:[#allocation2 + $0x160] sm:$0xff] }
  0xec   : > { %v2603_v24 = vld [vmem:[#allocation2 + $0x60] sm:$0xff] }
  0xed   : > { %v1757_v25 = vpop.permute.xlu0 %1756 }
  0xee   : > { %1789 = vst.msk [vmem:[#allocation2 + $0x170] sm:$0xff] %vm617_vm3, %v1757_v25  ;;  %v2270_v36 = vpop.permute.xlu1 %2269 }
  0xf1   : > { %v1918_v4 = vpop.permute.xlu0 %1917  ;;  %v2604_v23 = vld [vmem:[#allocation2 + $0x68] sm:$0xff] }
  0xf2   : > { %1950 = vst.msk [vmem:[#allocation2 + $0x170] sm:$0xff] %vm971_vm4, %v1918_v4  ;;  %2895 = vmatprep.mubr.bf16.mxu0 %v2604_v23  ;;  %v1116_v26 = vpop.permute.xlu1 %1115  ;;  %v2638_v23 = vld [vmem:[#allocation2 + $0x178] sm:$0xff] }
  0xf3   : > { %2302 = vst.msk [vmem:[#allocation2 + $0x170] sm:$0xff] %vm1133_vm5, %v2270_v36  ;;  %2896 = vmatmul.mubr.bf16.gmra.mrb[16].mxu0 %v2603_v24  ;;  %1149 = vst.msk [vmem:[#allocation2 + $0x168] sm:$0xff] %vm1133_vm5, %v1116_v26 }
  0xf5   : > { %v1737_v6 = vpop.permute.xlu0 %1736 }
  0xf6   : > { %1779 = vst.msk [vmem:[#allocation2 + $0x80] sm:$0xff] %vm617_vm3, %v1737_v6  ;;  %v934_v7 = vpop.permute.xlu1 %933 }
  0xf9   : > { %v580_v57 = vpop.permute.xlu0 %579 }
  0xfa   : > { %623 = vst.msk [vmem:[#allocation2 + $0x78] sm:$0xff] %vm617_vm3, %v580_v57  ;;  %v2637_v0 = vld [vmem:[#allocation2 + $0x170] sm:$0xff]  ;;  %v2636_v43 = vld [vmem:[#allocation2 + $0x168] sm:$0xff]  ;;  %v1096_v3 = vpop.permute.xlu1 %1095 }
  0xfb   : > { %2983 = vmatprep.mubr.bf16.mxu1 %v2637_v0  ;;  %977 = vst.msk [vmem:[#allocation2 + $0x78] sm:$0xff] %vm971_vm4, %v934_v7 }
  0xfc   : > { %2984 = vmatmul.mubr.bf16.gmra.mrb[12].mxu1 %v2636_v43  ;;  %1139 = vst.msk [vmem:[#allocation2 + $0x78] sm:$0xff] %vm1133_vm5, %v1096_v3 }
  0xfd   : > { %v1898_v32 = vpop.permute.xlu0 %1897  ;;  %4240 = vmatprep.mubr.msk.bf16.mxu1 %vm263_vm2, %v2593_v28 }
  0xfe   : > { %1940 = vst.msk [vmem:[#allocation2 + $0x80] sm:$0xff] %vm971_vm4, %v1898_v32  ;;  %v582_v44 = vpop.permute.xlu1 %581 }
  0xff   : > { %624 = vst.msk [vmem:[#allocation2 + $0x90] sm:$0xff] %vm617_vm3, %v582_v44 }
 0x101   : > { %v2250_v9 = vpop.permute.xlu0 %2249 }
 0x102   : > { %2292 = vst.msk [vmem:[#allocation2 + $0x80] sm:$0xff] %vm1133_vm5, %v2250_v9  ;;  %v936_v51 = vpop.permute.xlu1 %935 }
 0x103   : > { %978 = vst.msk [vmem:[#allocation2 + $0x90] sm:$0xff] %vm971_vm4, %v936_v51  ;;  %v2606_v18 = vld [vmem:[#allocation2 + $0x78] sm:$0xff] }
 0x104   : > { %4241 = vmatmul.mubr.msk.bf16.vlgmr.msra.gmra.mrb[16].mxu1 %vm263_vm2, %v2596_v52 }
 0x105   : > { %v1739_v2 = vpop.permute.xlu0 %1738  ;;  %4244 = vmatprep.mubr.msk.bf16.mxu1 %vm263_vm2, %v2599_v13 }
 0x106   : > { %1780 = vst.msk [vmem:[#allocation2 + $0x98] sm:$0xff] %vm617_vm3, %v1739_v2  ;;  %v1098_v15 = vpop.permute.xlu1 %1097 }
 0x107   : > { %1140 = vst.msk [vmem:[#allocation2 + $0x90] sm:$0xff] %vm1133_vm5, %v1098_v15 }
 0x109   : > { %v1900_v35 = vpop.permute.xlu0 %1899  ;;  %v2607_v58 = vld [vmem:[#allocation2 + $0x80] sm:$0xff] }
 0x10a   : > { %1941 = vst.msk [vmem:[#allocation2 + $0x98] sm:$0xff] %vm971_vm4, %v1900_v35  ;;  %2903 = vmatprep.mubr.bf16.mxu0 %v2607_v58  ;;  %v584_v5 = vpop.permute.xlu1 %583 }
 0x10b   : > { %2904 = vmatmul.mubr.bf16.gmra.mrb[20].mxu0 %v2606_v18  ;;  %625 = vst.msk [vmem:[#allocation2 + $0xa8] sm:$0xff] %vm617_vm3, %v584_v5 }
 0x10c   : > { %4245 = vmatmul.mubr.msk.bf16.gmra.mrb[20].mxu1 %vm263_vm2, %v2602_v48 }
 0x10d   : > { %v2252_v12 = vpop.permute.xlu0 %2251  ;;  %4248 = vmatprep.mubr.msk.bf16.mxu1 %vm263_vm2, %v2605_v34 }
 0x10e   : > { %2293 = vst.msk [vmem:[#allocation2 + $0x98] sm:$0xff] %vm1133_vm5, %v2252_v12  ;;  %v938_v60 = vpop.permute.xlu1 %937  ;;  %v2609_v27 = vld [vmem:[#allocation2 + $0x90] sm:$0xff] }
 0x10f   : > { %979 = vst.msk [vmem:[#allocation2 + $0xa8] sm:$0xff] %vm971_vm4, %v938_v60 }
 0x111   : > { %v1741_v16 = vpop.permute.xlu0 %1740 }
 0x112   : > { %1781 = vst.msk [vmem:[#allocation2 + $0xb0] sm:$0xff] %vm617_vm3, %v1741_v16  ;;  %v1100_v37 = vpop.permute.xlu1 %1099 }
 0x113   : > { %1141 = vst.msk [vmem:[#allocation2 + $0xa8] sm:$0xff] %vm1133_vm5, %v1100_v37 }
 0x114   : > { %4249 = vmatmul.mubr.msk.bf16.gmra.mrb[24].mxu1 %vm263_vm2, %v2608_v56 }
 0x115   : > { %v1902_v46 = vpop.permute.xlu0 %1901  ;;  %v2610_v1 = vld [vmem:[#allocation2 + $0x98] sm:$0xff]  ;;  %4252 = vmatprep.mubr.msk.bf16.mxu1 %vm263_vm2, %v2611_v53 }
 0x116   : > { %1942 = vst.msk [vmem:[#allocation2 + $0xb0] sm:$0xff] %vm971_vm4, %v1902_v46  ;;  %2911 = vmatprep.mubr.bf16.mxu0 %v2610_v1  ;;  %v586_v54 = vpop.permute.xlu1 %585 }
 0x117   : > { %2912 = vmatmul.mubr.bf16.gmra.mrb[24].mxu0 %v2609_v27  ;;  %626 = vst.msk [vmem:[#allocation2 + $0xc0] sm:$0xff] %vm617_vm3, %v586_v54 }
 0x119   : > { %v2254_v38 = vpop.permute.xlu0 %2253 }
 0x11a   : > { %2294 = vst.msk [vmem:[#allocation2 + $0xb0] sm:$0xff] %vm1133_vm5, %v2254_v38  ;;  %v940_v10 = vpop.permute.xlu1 %939  ;;  %v2612_v30 = vld [vmem:[#allocation2 + $0xa8] sm:$0xff] }
 0x11b   : > { %980 = vst.msk [vmem:[#allocation2 + $0xc0] sm:$0xff] %vm971_vm4, %v940_v10 }
 0x11c   : > { %4253 = vmatmul.mubr.msk.bf16.gmra.mrb[28].mxu1 %vm263_vm2, %v2614_v41 }
 0x11d   : > { %v1743_v20 = vpop.permute.xlu0 %1742  ;;  %4256 = vmatprep.mubr.msk.bf16.mxu1 %vm263_vm2, %v2617_v17 }
 0x11e   : > { %1782 = vst.msk [vmem:[#allocation2 + $0xc8] sm:$0xff] %vm617_vm3, %v1743_v20  ;;  %v1102_v8 = vpop.permute.xlu1 %1101 }
 0x11f   : > { %1142 = vst.msk [vmem:[#allocation2 + $0xc0] sm:$0xff] %vm1133_vm5, %v1102_v8 }
 0x121   : > { %v1904_v14 = vpop.permute.xlu0 %1903  ;;  %v2613_v45 = vld [vmem:[#allocation2 + $0xb0] sm:$0xff] }
 0x122   : > { %1943 = vst.msk [vmem:[#allocation2 + $0xc8] sm:$0xff] %vm971_vm4, %v1904_v14  ;;  %2919 = vmatprep.mubr.bf16.mxu0 %v2613_v45  ;;  %v588_v49 = vpop.permute.xlu1 %587 }
 0x123   : > { %2920 = vmatmul.mubr.bf16.gmra.mrb[28].mxu0 %v2612_v30  ;;  %627 = vst.msk [vmem:[#allocation2 + $0xd8] sm:$0xff] %vm617_vm3, %v588_v49 }
 0x124   : > { %4257 = vmatmul.mubr.msk.bf16.gmra.mrb[32].mxu1 %vm263_vm2, %v2620_v55 }
 0x125   : > { %v2256_v11 = vpop.permute.xlu0 %2255  ;;  %4260 = vmatprep.mubr.msk.bf16.mxu1 %vm263_vm2, %v2623_v63 }
 0x126   : > { %2295 = vst.msk [vmem:[#allocation2 + $0xc8] sm:$0xff] %vm1133_vm5, %v2256_v11  ;;  %v942_v21 = vpop.permute.xlu1 %941  ;;  %v2615_v61 = vld [vmem:[#allocation2 + $0xc0] sm:$0xff] }
 0x127   : > { %981 = vst.msk [vmem:[#allocation2 + $0xd8] sm:$0xff] %vm971_vm4, %v942_v21 }
 0x129   : > { %v1745_v50 = vpop.permute.xlu0 %1744 }
 0x12a   : > { %1783 = vst.msk [vmem:[#allocation2 + $0xe0] sm:$0xff] %vm617_vm3, %v1745_v50  ;;  %v1104_v62 = vpop.permute.xlu1 %1103 }
 0x12b   : > { %1143 = vst.msk [vmem:[#allocation2 + $0xd8] sm:$0xff] %vm1133_vm5, %v1104_v62 }
 0x12c   : > { %4261 = vmatmul.mubr.msk.bf16.gmra.mrb[36].mxu1 %vm263_vm2, %v2626_v19 }
 0x12d   : > { %v1906_v42 = vpop.permute.xlu0 %1905  ;;  %v2616_v31 = vld [vmem:[#allocation2 + $0xc8] sm:$0xff]  ;;  %4264 = vmatprep.mubr.msk.bf16.mxu1 %vm263_vm2, %v2629_v29 }
 0x12e   : > { %1944 = vst.msk [vmem:[#allocation2 + $0xe0] sm:$0xff] %vm971_vm4, %v1906_v42  ;;  %2927 = vmatprep.mubr.bf16.mxu0 %v2616_v31  ;;  %v590_v40 = vpop.permute.xlu1 %589 }
 0x12f   : > { %2928 = vmatmul.mubr.bf16.gmra.mrb[32].mxu0 %v2615_v61  ;;  %628 = vst.msk [vmem:[#allocation2 + $0xf0] sm:$0xff] %vm617_vm3, %v590_v40 }
 0x131   : > { %v2258_v22 = vpop.permute.xlu0 %2257 }
 0x132   : > { %2296 = vst.msk [vmem:[#allocation2 + $0xe0] sm:$0xff] %vm1133_vm5, %v2258_v22  ;;  %v944_v47 = vpop.permute.xlu1 %943  ;;  %v2618_v36 = vld [vmem:[#allocation2 + $0xd8] sm:$0xff] }
 0x133   : > { %982 = vst.msk [vmem:[#allocation2 + $0xf0] sm:$0xff] %vm971_vm4, %v944_v47 }
 0x134   : > { %4265 = vmatmul.mubr.msk.bf16.gmra.mrb[40].mxu1 %vm263_vm2, %v2632_v59 }
 0x135   : > { %v1747_v33 = vpop.permute.xlu0 %1746  ;;  %4268 = vmatprep.mubr.msk.bf16.mxu1 %vm263_vm2, %v2635_v39 }
 0x136   : > { %1784 = vst.msk [vmem:[#allocation2 + $0xf8] sm:$0xff] %vm617_vm3, %v1747_v33  ;;  %v1106_v25 = vpop.permute.xlu1 %1105 }
 0x137   : > { %1144 = vst.msk [vmem:[#allocation2 + $0xf0] sm:$0xff] %vm1133_vm5, %v1106_v25 }
 0x139   : > { %v1908_v24 = vpop.permute.xlu0 %1907  ;;  %v2619_v4 = vld [vmem:[#allocation2 + $0xe0] sm:$0xff] }
 0x13a   : > { %1945 = vst.msk [vmem:[#allocation2 + $0xf8] sm:$0xff] %vm971_vm4, %v1908_v24  ;;  %2935 = vmatprep.mubr.bf16.mxu0 %v2619_v4 }
 0x13b   : > { %v592_v26 = vpop.permute.xlu1 %591  ;;  %2936 = vmatmul.mubr.bf16.gmra.mrb[36].mxu0 %v2618_v36 }
 0x13c   : > { %629 = vst.msk [vmem:[#allocation2 + $0x108] sm:$0xff] %vm617_vm3, %v592_v26  ;;  %4269 = vmatmul.mubr.msk.bf16.gmra.mrb[44].mxu1 %vm263_vm2, %v2638_v23 }
 0x13e   : > { %v2260_v6 = vpop.permute.xlu0 %2259  ;;  %v2621_v43 = vld [vmem:[#allocation2 + $0xf0] sm:$0xff] }
 0x13f   : > { %2297 = vst.msk [vmem:[#allocation2 + $0xf8] sm:$0xff] %vm1133_vm5, %v2260_v6  ;;  %v946_v7 = vpop.permute.xlu1 %945 }
 0x140   : > { %983 = vst.msk [vmem:[#allocation2 + $0x108] sm:$0xff] %vm971_vm4, %v946_v7 }
 0x142   : > { %v1749_v57 = vpop.permute.xlu0 %1748 }
 0x143   : > { %1785 = vst.msk [vmem:[#allocation2 + $0x110] sm:$0xff] %vm617_vm3, %v1749_v57  ;;  %v1108_v0 = vpop.permute.xlu1 %1107 }
 0x144   : > { %1145 = vst.msk [vmem:[#allocation2 + $0x108] sm:$0xff] %vm1133_vm5, %v1108_v0 }
 0x146   : > { %v1910_v3 = vpop.permute.xlu0 %1909  ;;  %v2622_v28 = vld [vmem:[#allocation2 + $0xf8] sm:$0xff] }
 0x147   : > { %1946 = vst.msk [vmem:[#allocation2 + $0x110] sm:$0xff] %vm971_vm4, %v1910_v3  ;;  %2943 = vmatprep.mubr.bf16.mxu0 %v2622_v28 }
 0x148   : > { %2944 = vmatmul.mubr.bf16.gmra.mrb[40].mxu0 %v2621_v43 }
 0x14a   : > { %v2262_v32 = vpop.permute.xlu0 %2261 }
 0x14b   : > { %2298 = vst.msk [vmem:[#allocation2 + $0x110] sm:$0xff] %vm1133_vm5, %v2262_v32  ;;  %v2624_v44 = vld [vmem:[#allocation2 + $0x108] sm:$0xff] }
 0x152   : > { %v2625_v9 = vld [vmem:[#allocation2 + $0x110] sm:$0xff] }
 0x153   : > { %2951 = vmatprep.mubr.bf16.mxu0 %v2625_v9 }
 0x154   : > { %2952 = vmatmul.mubr.bf16.gmra.mrb[44].mxu0 %v2624_v44 }
 0x172   : > { %v4122_v52 = vpop.f32.mrb[0].mxu0 }
 0x173   : > { %v4123_v51 = vpop.f32.mrb[1].mxu0 }
 0x174   : > { %v4124_v13 = vadd.f32 %v4123_v51, %v4122_v52  ;;  %v4125_v2 = vpop.f32.mrb[2].mxu0 }
 0x175   : > { %v4126_v15 = vpop.f32.mrb[3].mxu0 }
 0x176   : > { %v4127_v18 = vadd.f32 %v4126_v15, %v4125_v2 }
 0x17e   : > { %v4128_v35 = vpop.f32.mrb[4].mxu0 }
 0x17f   : > { %v4129_v58 = vpop.f32.mrb[5].mxu0 }
 0x180   : > { %v4130_v48 = vadd.f32 %v4129_v58, %v4128_v35  ;;  %v4131_v5 = vpop.f32.mrb[6].mxu0 }
 0x181   : > { %v4132_v34 = vpop.f32.mrb[7].mxu0 }
 0x182   : > { %v4133_v12 = vadd.f32 %v4132_v34, %v4131_v5 }
 0x187   : > { %v4194_v60 = vpop.f32.mrb[0].mxu1 }
 0x188   : > { %v4195_v16 = vpop.f32.mrb[1].mxu1 }
 0x189   : > { %v5753_v56 = vadd.f32 %v4195_v16, %v4194_v60  ;;  %v4197_v37 = vpop.f32.mrb[2].mxu1 }
 0x18a   : > { %v4198_v53 = vpop.f32.mrb[3].mxu1 }
 0x18b   : > { %v5755_v27 = vadd.f32 %v4198_v53, %v4197_v37 }
 0x196   : > { %v4134_v46 = vpop.f32.mrb[8].mxu0 }
 0x197   : > { %v4135_v1 = vpop.f32.mrb[9].mxu0 }
 0x198   : > { %v5757_v54 = vadd.f32 %v4135_v1, %v4134_v46  ;;  %v4137_v38 = vpop.f32.mrb[10].mxu0 }
 0x199   : > { %v4138_v41 = vpop.f32.mrb[11].mxu0 }
 0x19a   : > { %v5759_v10 = vadd.f32 %v4138_v41, %v4137_v38 }
 0x19f   : > { %v4200_v17 = vpop.f32.mrb[4].mxu1 }
 0x1a0   : > { %v4201_v20 = vpop.f32.mrb[5].mxu1 }
 0x1a1   : > { %v5761_v8 = vadd.f32 %v4201_v20, %v4200_v17  ;;  %v4203_v30 = vpop.f32.mrb[6].mxu1 }
 0x1a2   : > { %v4204_v14 = vpop.f32.mrb[7].mxu1 }
 0x1a3   : > { %v5763_v45 = vadd.f32 %v4204_v14, %v4203_v30 }
 0x1ae   : > { %v4140_v55 = vpop.f32.mrb[12].mxu0 }
 0x1af   : > { %v4141_v49 = vpop.f32.mrb[13].mxu0 }
 0x1b0   : > { %v4142_v63 = vadd.f32 %v4141_v49, %v4140_v55  ;;  %v4143_v11 = vpop.f32.mrb[14].mxu0 }
 0x1b1   : > { %v4144_v21 = vpop.f32.mrb[15].mxu0 }
 0x1b2   : > { %v5765_v50 = vadd.f32 %v4144_v21, %v4143_v11 }
 0x1b8   : > { %v4206_v19 = vpop.f32.mrb[8].mxu1 }
 0x1b9   : > { %v4207_v62 = vpop.f32.mrb[9].mxu1 }
 0x1ba   : > { %v5767_v29 = vadd.f32 %v4207_v62, %v4206_v19  ;;  %v4209_v61 = vpop.f32.mrb[10].mxu1 }
 0x1bb   : > { %v4210_v42 = vpop.f32.mrb[11].mxu1 }
 0x1bc   : > { %v5769_v31 = vadd.f32 %v4210_v42, %v4209_v61 }
 0x1c6   : > { %v4146_v40 = vpop.f32.mrb[16].mxu0 }
 0x1c7   : > { %v4147_v22 = vpop.f32.mrb[17].mxu0 }
 0x1c8   : > { %v5771_v59 = vadd.f32 %v4147_v22, %v4146_v40  ;;  %v4149_v47 = vpop.f32.mrb[18].mxu0 }
 0x1c9   : > { %v4150_v39 = vpop.f32.mrb[19].mxu0 }
 0x1ca   : > { %v5773_v33 = vadd.f32 %v4150_v39, %v4149_v47 }
 0x1cf   : > { %v4212_v25 = vpop.f32.mrb[12].mxu1 }
 0x1d0   : > { %v4213_v36 = vpop.f32.mrb[13].mxu1 }
 0x1d1   : > { %v5775_v24 = vadd.f32 %v4213_v36, %v4212_v25  ;;  %v4215_v4 = vpop.f32.mrb[14].mxu1 }
 0x1d2   : > { %v4216_v23 = vpop.f32.mrb[15].mxu1 }
 0x1d3   : > { %v5777_v26 = vadd.f32 %v4216_v23, %v4215_v4 }
 0x1d7   : > { %v4242_v6 = vpop.f32.mrb[16].mxu1 }
 0x1d8   : > { %v3035_v7 = vadd.f32 %v4242_v6, %v4130_v48  ;;  %v3026_v57 = vpop.f32.mrb[17].mxu1 }
 0x1d9   : > { %v3027_v0 = vadd.f32 %v4124_v13, %v3026_v57  ;;  %v4243_v43 = vpop.f32.mrb[18].mxu1 }
 0x1da   : > { %v3957_v3 = vpack.c.bf16 %v3035_v7, %v3035_v7  ;;  %v3038_v28 = vadd.f32 %v4243_v43, %v4133_v12  ;;  %v3029_v32 = vpop.f32.mrb[19].mxu1  ;;  %v3387_v51 = vmul.f32 %v3035_v7, %v3035_v7  ;;  %v3317_v12 = vsel %vm263_vm2, %v3035_v7, 0.0 }
 0x1db   : > { %v3955_v44 = vpack.c.bf16 %v3027_v0, %v3027_v0  ;;  %v3385_v9 = vmul.f32 %v3027_v0, %v3027_v0  ;;  %v3030_v52 = vadd.f32 %v4127_v18, %v3029_v32  ;;  %v3314_v15 = vsel %vm263_vm2, %v3027_v0, 0.0 }
 0x1dc   : > { %3284 = vst.msk [vmem:[%s5783_s5 + $0x8] sm:$0xf] %vm3281_vm6, %v3957_v3  ;;  %v3958_v2 = vpack.c.bf16 %v3038_v28, %v3038_v28  ;;  %v3388_v48 = vmul.f32 %v3038_v28, %v3038_v28  ;;  %v3420_v20 = vsel %vm263_vm2, %v3387_v51, 0.0  ;;  %v3319_v49 = vsel %vm263_vm2, %v3038_v28, 0.0 }
 0x1dd   : > { %3282 = vst.msk [vmem:[%s5783_s5] sm:$0xf] %vm3281_vm6, %v3955_v44  ;;  %v3956_v35 = vpack.c.bf16 %v3030_v52, %v3030_v52  ;;  %v3315_v13 = vsel %vm263_vm2, %v3030_v52, 0.0  ;;  %v3386_v58 = vmul.f32 %v3030_v52, %v3030_v52  ;;  %v3417_v18 = vsel %vm263_vm2, %v3385_v9, 0.0 }
 0x1de   : > { %3285 = vst.msk [vmem:[%s5783_s5 + $0xc] sm:$0xf] %vm3281_vm6, %v3958_v2  ;;  %v3316_v5 = vadd.f32 %v3315_v13, %v3314_v15  ;;  %v4152_v34 = vpop.f32.mrb[20].mxu0  ;;  %v3422_v11 = vsel %vm263_vm2, %v3388_v48, 0.0 }
 0x1df   : > { %3283 = vst.msk [vmem:[%s5783_s5 + $0x4] sm:$0xf] %vm3281_vm6, %v3956_v35  ;;  %v3418_v60 = vsel %vm263_vm2, %v3386_v58, 0.0  ;;  %v4153_v16 = vpop.f32.mrb[21].mxu0  ;;  %v4246_v37 = vpop.f32.mrb[20].mxu1 }
 0x1e0   : > { %v3318_v53 = vadd.f32 %v3317_v12, %v3316_v5  ;;  %v3419_v46 = vadd.f32 %v3418_v60, %v3417_v18  ;;  %v4154_v1 = vadd.f32 %v4153_v16, %v4152_v34  ;;  %v4155_v38 = vpop.f32.mrb[22].mxu0  ;;  %v3051_v41 = vadd.f32 %v4246_v37, %v4142_v63  ;;  %v3042_v17 = vpop.f32.mrb[21].mxu1 }
 0x1e1   : > { %v4156_v30 = vpop.f32.mrb[23].mxu0  ;;  %v3043_v14 = vadd.f32 %v5757_v54, %v3042_v17  ;;  %v4247_v55 = vpop.f32.mrb[22].mxu1 }
 0x1e2   : > { %v3421_v21 = vadd.f32 %v3420_v20, %v3419_v46  ;;  %v3961_v19 = vpack.c.bf16 %v3051_v41, %v3051_v41  ;;  %v3045_v62 = vpop.f32.mrb[23].mxu1  ;;  %v4157_v61 = vadd.f32 %v4156_v30, %v4155_v38  ;;  %v3320_v40 = vadd.f32 %v3319_v49, %v3318_v53 }
 0x1e3   : > { %v3959_v42 = vpack.c.bf16 %v3043_v14, %v3043_v14  ;;  %v3321_v63 = vsel %vm263_vm2, %v3043_v14, 0.0  ;;  %v3389_v22 = vmul.f32 %v3043_v14, %v3043_v14  ;;  %v3054_v54 = vadd.f32 %v4247_v55, %v5765_v50 }
 0x1e4   : > { %3288 = vst.msk [vmem:[%s5783_s5 + $0x18] sm:$0xf] %vm3281_vm6, %v3961_v19  ;;  %v3423_v47 = vadd.f32 %v3422_v11, %v3421_v21  ;;  %v3322_v39 = vadd.f32 %v3321_v63, %v3320_v40  ;;  %v3046_v25 = vadd.f32 %v5759_v10, %v3045_v62  ;;  %v3391_v36 = vmul.f32 %v3051_v41, %v3051_v41 }
 0x1e5   : > { %3286 = vst.msk [vmem:[%s5783_s5 + $0x10] sm:$0xf] %vm3281_vm6, %v3959_v42  ;;  %v3424_v4 = vsel %vm263_vm2, %v3389_v22, 0.0  ;;  %v3962_v23 = vpack.c.bf16 %v3054_v54, %v3054_v54  ;;  %v3325_v32 = vsel %vm263_vm2, %v3051_v41, 0.0  ;;  %v3392_v44 = vmul.f32 %v3054_v54, %v3054_v54 }
 0x1e6   : > { %v3425_v6 = vadd.f32 %v3424_v4, %v3423_v47  ;;  %v3960_v7 = vpack.c.bf16 %v3046_v25, %v3046_v25  ;;  %v3323_v57 = vsel %vm263_vm2, %v3046_v25, 0.0  ;;  %v3390_v0 = vmul.f32 %v3046_v25, %v3046_v25 }
 0x1e7   : > { %v4250_v43 = vpop.f32.mrb[24].mxu1  ;;  %3289 = vst.msk [vmem:[%s5783_s5 + $0x1c] sm:$0xf] %vm3281_vm6, %v3962_v23  ;;  %v3324_v3 = vadd.f32 %v3323_v57, %v3322_v39  ;;  %v3428_v51 = vsel %vm263_vm2, %v3391_v36, 0.0  ;;  %v3327_v48 = vsel %vm263_vm2, %v3054_v54, 0.0  ;;  %v3430_v46 = vsel %vm263_vm2, %v3392_v44, 0.0 }
 0x1e8   : > { %v3067_v50 = vadd.f32 %v4250_v43, %v4154_v1  ;;  %v3058_v28 = vpop.f32.mrb[25].mxu1  ;;  %3287 = vst.msk [vmem:[%s5783_s5 + $0x14] sm:$0xf] %vm3281_vm6, %v3960_v7  ;;  %v3426_v10 = vsel %vm263_vm2, %v3390_v0, 0.0 }
 0x1e9   : > { %v3059_v9 = vadd.f32 %v5771_v59, %v3058_v28  ;;  %v4251_v52 = vpop.f32.mrb[26].mxu1  ;;  %v3326_v2 = vadd.f32 %v3325_v32, %v3324_v3  ;;  %v3427_v15 = vadd.f32 %v3426_v10, %v3425_v6 }
 0x1ea   : > { %v3965_v35 = vpack.c.bf16 %v3067_v50, %v3067_v50  ;;  %v4158_v13 = vpop.f32.mrb[24].mxu0  ;;  %v3061_v58 = vpop.f32.mrb[27].mxu1  ;;  %v3070_v16 = vadd.f32 %v4251_v52, %v4157_v61  ;;  %v3395_v17 = vmul.f32 %v3067_v50, %v3067_v50 }
 0x1eb   : > { %v3963_v5 = vpack.c.bf16 %v3059_v9, %v3059_v9  ;;  %v3329_v34 = vsel %vm263_vm2, %v3059_v9, 0.0  ;;  %v3393_v12 = vmul.f32 %v3059_v9, %v3059_v9  ;;  %v4159_v18 = vpop.f32.mrb[25].mxu0  ;;  %v3429_v60 = vadd.f32 %v3428_v51, %v3427_v15 }
 0x1ec   : > { %3292 = vst.msk [vmem:[%s5783_s5 + $0x28] sm:$0xf] %vm3281_vm6, %v3965_v35  ;;  %v3328_v59 = vadd.f32 %v3327_v48, %v3326_v2  ;;  %v4160_v37 = vadd.f32 %v4159_v18, %v4158_v13  ;;  %v4161_v53 = vpop.f32.mrb[26].mxu0  ;;  %v3062_v38 = vadd.f32 %v5773_v33, %v3061_v58  ;;  %v3966_v14 = vpack.c.bf16 %v3070_v16, %v3070_v16 }
 0x1ed   : > { %3290 = vst.msk [vmem:[%s5783_s5 + $0x20] sm:$0xf] %vm3281_vm6, %v3963_v5  ;;  %v3432_v1 = vsel %vm263_vm2, %v3393_v12, 0.0  ;;  %v4162_v41 = vpop.f32.mrb[27].mxu0  ;;  %v3431_v30 = vadd.f32 %v3430_v46, %v3429_v60  ;;  %v3396_v62 = vmul.f32 %v3070_v16, %v3070_v16  ;;  %v3333_v33 = vsel %vm263_vm2, %v3067_v50, 0.0 }
 0x1ee   : > { %v3330_v20 = vadd.f32 %v3329_v34, %v3328_v59  ;;  %v3964_v55 = vpack.c.bf16 %v3062_v38, %v3062_v38  ;;  %v3331_v49 = vsel %vm263_vm2, %v3062_v38, 0.0  ;;  %v3394_v11 = vmul.f32 %v3062_v38, %v3062_v38  ;;  %3293 = vst.msk [vmem:[%s5783_s5 + $0x2c] sm:$0xf] %vm3281_vm6, %v3966_v14 }
 0x1ef   : > { %v4254_v21 = vpop.f32.mrb[28].mxu1  ;;  %v3433_v19 = vadd.f32 %v3432_v1, %v3431_v30  ;;  %v4163_v42 = vadd.f32 %v4162_v41, %v4161_v53  ;;  %v3436_v54 = vsel %vm263_vm2, %v3395_v17, 0.0  ;;  %v3335_v39 = vsel %vm263_vm2, %v3070_v16, 0.0 }
 0x1f0   : > { %v3332_v61 = vadd.f32 %v3331_v49, %v3330_v20  ;;  %v3074_v40 = vpop.f32.mrb[29].mxu1  ;;  %3291 = vst.msk [vmem:[%s5783_s5 + $0x24] sm:$0xf] %vm3281_vm6, %v3964_v55  ;;  %v3434_v63 = vsel %vm263_vm2, %v3394_v11, 0.0  ;;  %v3438_v0 = vsel %vm263_vm2, %v3396_v62, 0.0 }
 0x1f1   : > { %v3075_v22 = vadd.f32 %v4160_v37, %v3074_v40  ;;  %v4255_v47 = vpop.f32.mrb[30].mxu1  ;;  %v3435_v36 = vadd.f32 %v3434_v63, %v3433_v19 }
 0x1f2   : > { %v3334_v25 = vadd.f32 %v3333_v33, %v3332_v61  ;;  %v3077_v4 = vpop.f32.mrb[31].mxu1 }
 0x1f3   : > { %v3967_v23 = vpack.c.bf16 %v3075_v22, %v3075_v22  ;;  %v3337_v6 = vsel %vm263_vm2, %v3075_v22, 0.0  ;;  %v3397_v7 = vmul.f32 %v3075_v22, %v3075_v22  ;;  %v3078_v57 = vadd.f32 %v4163_v42, %v3077_v4 }
 0x1f4   : > { %v3437_v43 = vadd.f32 %v3436_v54, %v3435_v36  ;;  %v3336_v3 = vadd.f32 %v3335_v39, %v3334_v25 }
 0x1f5   : > { %3294 = vst.msk [vmem:[%s5783_s5 + $0x30] sm:$0xf] %vm3281_vm6, %v3967_v23  ;;  %v3440_v50 = vsel %vm263_vm2, %v3397_v7, 0.0  ;;  %v3968_v28 = vpack.c.bf16 %v3078_v57, %v3078_v57  ;;  %v3339_v32 = vsel %vm263_vm2, %v3078_v57, 0.0  ;;  %v3398_v44 = vmul.f32 %v3078_v57, %v3078_v57 }
 0x1f6   : > { %v3338_v10 = vadd.f32 %v3337_v6, %v3336_v3  ;;  %v3439_v9 = vadd.f32 %v3438_v0, %v3437_v43  ;;  %v4164_v52 = vpop.f32.mrb[28].mxu0 }
 0x1f7   : > { %3295 = vst.msk [vmem:[%s5783_s5 + $0x34] sm:$0xf] %vm3281_vm6, %v3968_v28  ;;  %v3442_v51 = vsel %vm263_vm2, %v3398_v44, 0.0  ;;  %v4165_v2 = vpop.f32.mrb[29].mxu0  ;;  %v5846_v15 = vpop.f32.mrb[32].mxu1 }
 0x1f8   : > { %v3441_v35 = vadd.f32 %v3440_v50, %v3439_v9  ;;  %v3340_v13 = vadd.f32 %v3339_v32, %v3338_v10  ;;  %v4166_v58 = vadd.f32 %v4165_v2, %v4164_v52  ;;  %v4167_v48 = vpop.f32.mrb[30].mxu0  ;;  %v3090_v5 = vpop.f32.mrb[33].mxu1 }
 0x1f9   : > { %v4168_v34 = vpop.f32.mrb[31].mxu0  ;;  %v5848_v12 = vpop.f32.mrb[34].mxu1 }
 0x1fa   : > { %v3443_v18 = vadd.f32 %v3442_v51, %v3441_v35  ;;  %v3083_v60 = vadd.f32 %v4254_v21, %v4166_v58  ;;  %v4169_v59 = vadd.f32 %v4168_v34, %v4167_v48  ;;  %v3093_v16 = vpop.f32.mrb[35].mxu1 }
 0x1fc   : > { %v3969_v37 = vpack.c.bf16 %v3083_v60, %v3083_v60  ;;  %v3341_v53 = vsel %vm263_vm2, %v3083_v60, 0.0  ;;  %v3399_v46 = vmul.f32 %v3083_v60, %v3083_v60  ;;  %v3086_v1 = vadd.f32 %v4255_v47, %v4169_v59 }
 0x1fd   : > { %v3342_v38 = vadd.f32 %v3341_v53, %v3340_v13 }
 0x1fe   : > { %3296 = vst.msk [vmem:[%s5783_s5 + $0x38] sm:$0xf] %vm3281_vm6, %v3969_v37  ;;  %v3444_v41 = vsel %vm263_vm2, %v3399_v46, 0.0  ;;  %v3970_v17 = vpack.c.bf16 %v3086_v1, %v3086_v1  ;;  %v3343_v20 = vsel %vm263_vm2, %v3086_v1, 0.0  ;;  %v3400_v30 = vmul.f32 %v3086_v1, %v3086_v1 }
 0x1ff   : > { %v3445_v14 = vadd.f32 %v3444_v41, %v3443_v18  ;;  %v3344_v55 = vadd.f32 %v3343_v20, %v3342_v38  ;;  %v5855_v49 = vpop.f32.mrb[36].mxu1 }
 0x200   : > { %3297 = vst.msk [vmem:[%s5783_s5 + $0x3c] sm:$0xf] %vm3281_vm6, %v3970_v17  ;;  %v3446_v11 = vsel %vm263_vm2, %v3400_v30, 0.0  ;;  %v5860_v21 = vpop.f32.mrb[37].mxu1 }
 0x201   : > { %v3447_v19 = vadd.f32 %v3446_v11, %v3445_v14  ;;  %v5862_v62 = vpop.f32.mrb[38].mxu1 }
 0x202   : > { %v4170_v61 = vpop.f32.mrb[32].mxu0  ;;  %v5864_v42 = vpop.f32.mrb[39].mxu1 }
 0x203   : > { %v4171_v40 = vpop.f32.mrb[33].mxu0 }
 0x204   : > { %v4172_v33 = vadd.f32 %v4171_v40, %v4170_v61  ;;  %v4173_v63 = vpop.f32.mrb[34].mxu0 }
 0x205   : > { %v4174_v22 = vpop.f32.mrb[35].mxu0 }
 0x206   : > { %v3091_v47 = vadd.f32 %v4172_v33, %v3090_v5  ;;  %v4175_v54 = vadd.f32 %v4174_v22, %v4173_v63 }
 0x207   : > { %v4266_v39 = vpop.f32.mrb[40].mxu1 }
 0x208   : > { %v3971_v25 = vpack.c.bf16 %v3091_v47, %v3091_v47  ;;  %v3345_v36 = vsel %vm263_vm2, %v3091_v47, 0.0  ;;  %v3401_v4 = vmul.f32 %v3091_v47, %v3091_v47  ;;  %v3094_v23 = vadd.f32 %v4175_v54, %v3093_v16  ;;  %v3122_v6 = vpop.f32.mrb[41].mxu1 }
 0x209   : > { %v3346_v7 = vadd.f32 %v3345_v36, %v3344_v55  ;;  %v5868_v57 = vadd.f32 %v4266_v39, %v5761_v8  ;;  %v5871_v0 = vadd.f32 %v5753_v56, %v3122_v6  ;;  %v4267_v43 = vpop.f32.mrb[42].mxu1 }
 0x20a   : > { %3298 = vst.msk [vmem:[%s5783_s5 + $0x40] sm:$0xf] %vm3281_vm6, %v3971_v25  ;;  %v3448_v3 = vsel %vm263_vm2, %v3401_v4, 0.0  ;;  %v3972_v50 = vpack.c.bf16 %v3094_v23, %v3094_v23  ;;  %v3347_v28 = vsel %vm263_vm2, %v3094_v23, 0.0  ;;  %v3402_v32 = vmul.f32 %v3094_v23, %v3094_v23  ;;  %v3125_v44 = vpop.f32.mrb[43].mxu1 }
 0x20b   : > { %v3449_v10 = vadd.f32 %v3448_v3, %v3447_v19  ;;  %v3348_v9 = vadd.f32 %v3347_v28, %v3346_v7  ;;  %v3981_v8 = vpack.c.bf16 %v5868_v57, %v5868_v57  ;;  %v3979_v52 = vpack.c.bf16 %v5871_v0, %v5871_v0 }
 0x20c   : > { %3299 = vst.msk [vmem:[%s5783_s5 + $0x44] sm:$0xf] %vm3281_vm6, %v3972_v50  ;;  %v3450_v56 = vsel %vm263_vm2, %v3402_v32, 0.0  ;;  %v5887_v2 = vadd.f32 %v4267_v43, %v5763_v45  ;;  %v5890_v35 = vadd.f32 %v5755_v27, %v3125_v44 }
 0x20d   : > { %v3451_v51 = vadd.f32 %v3450_v56, %v3449_v10  ;;  %3308 = vst.msk [vmem:[%s5783_s5 + $0x68] sm:$0xf] %vm3281_vm6, %v3981_v8  ;;  %3306 = vst.msk [vmem:[%s5783_s5 + $0x60] sm:$0xf] %vm3281_vm6, %v3979_v52 }
 0x20e   : > { %v4176_v13 = vpop.f32.mrb[36].mxu0  ;;  %v3982_v58 = vpack.c.bf16 %v5887_v2, %v5887_v2  ;;  %v3980_v34 = vpack.c.bf16 %v5890_v35, %v5890_v35 }
 0x20f   : > { %v4177_v48 = vpop.f32.mrb[37].mxu0  ;;  %v4270_v5 = vpop.f32.mrb[44].mxu1 }
 0x210   : > { %v4178_v18 = vadd.f32 %v4177_v48, %v4176_v13  ;;  %v4179_v60 = vpop.f32.mrb[38].mxu0  ;;  %v3138_v59 = vpop.f32.mrb[45].mxu1  ;;  %3309 = vst.msk [vmem:[%s5783_s5 + $0x6c] sm:$0xf] %vm3281_vm6, %v3982_v58  ;;  %v5901_v45 = vadd.f32 %v4270_v5, %v5775_v24  ;;  %3307 = vst.msk [vmem:[%s5783_s5 + $0x64] sm:$0xf] %vm3281_vm6, %v3980_v34 }
 0x211   : > { %v4180_v27 = vpop.f32.mrb[39].mxu0  ;;  %v5904_v16 = vadd.f32 %v5767_v29, %v3138_v59  ;;  %v4271_v37 = vpop.f32.mrb[46].mxu1  ;;  %v3409_v59 = vmul.f32 %v5871_v0, %v5871_v0 }
 0x212   : > { %v3099_v53 = vadd.f32 %v5846_v15, %v4178_v18  ;;  %v4181_v46 = vadd.f32 %v4180_v27, %v4179_v60  ;;  %v5910_v1 = vadd.f32 %v4271_v37, %v5777_v26  ;;  %v3141_v38 = vpop.f32.mrb[47].mxu1  ;;  %v3985_v24 = vpack.c.bf16 %v5901_v45, %v5901_v45 }
 0x213   : > { %v3983_v41 = vpack.c.bf16 %v5904_v16, %v5904_v16  ;;  %v5932_v33 = vadd.f32 %v5769_v31, %v3141_v38 }
 0x214   : > { %v3973_v29 = vpack.c.bf16 %v3099_v53, %v3099_v53  ;;  %v3349_v17 = vsel %vm263_vm2, %v3099_v53, 0.0  ;;  %v3403_v20 = vmul.f32 %v3099_v53, %v3099_v53  ;;  %v3102_v30 = vadd.f32 %v5848_v12, %v4181_v46  ;;  %3312 = vst.msk [vmem:[%s5783_s5 + $0x78] sm:$0xf] %vm3281_vm6, %v3985_v24 }
 0x215   : > { %v3350_v15 = vadd.f32 %v3349_v17, %v3348_v9  ;;  %3310 = vst.msk [vmem:[%s5783_s5 + $0x70] sm:$0xf] %vm3281_vm6, %v3983_v41  ;;  %v3986_v12 = vpack.c.bf16 %v5910_v1, %v5910_v1  ;;  %v3984_v22 = vpack.c.bf16 %v5932_v33, %v5932_v33  ;;  %v3361_v41 = vsel %vm263_vm2, %v5871_v0, 0.0 }
 0x216   : > { %3300 = vst.msk [vmem:[%s5783_s5 + $0x48] sm:$0xf] %vm3281_vm6, %v3973_v29  ;;  %v3452_v26 = vsel %vm263_vm2, %v3403_v20, 0.0  ;;  %v3974_v14 = vpack.c.bf16 %v3102_v30, %v3102_v30  ;;  %v3351_v55 = vsel %vm263_vm2, %v3102_v30, 0.0  ;;  %v3404_v11 = vmul.f32 %v3102_v30, %v3102_v30 }
 0x217   : > { %v3453_v19 = vadd.f32 %v3452_v26, %v3451_v51  ;;  %v3352_v61 = vadd.f32 %v3351_v55, %v3350_v15  ;;  %3313 = vst.msk [vmem:[%s5783_s5 + $0x7c] sm:$0xf] %vm3281_vm6, %v3986_v12  ;;  %3311 = vst.msk [vmem:[%s5783_s5 + $0x74] sm:$0xf] %vm3281_vm6, %v3984_v22  ;;  %v3411_v30 = vmul.f32 %v5868_v57, %v5868_v57  ;;  %v3464_v15 = vsel %vm263_vm2, %v3409_v59, 0.0 }
 0x218   : > { %3301 = vst.msk [vmem:[%s5783_s5 + $0x4c] sm:$0xf] %vm3281_vm6, %v3974_v14  ;;  %v3454_v40 = vsel %vm263_vm2, %v3404_v11, 0.0  ;;  %v3363_v26 = vsel %vm263_vm2, %v5890_v35, 0.0  ;;  %v3365_v0 = vsel %vm263_vm2, %v5868_v57, 0.0  ;;  %v3412_v11 = vmul.f32 %v5887_v2, %v5887_v2 }
 0x219   : > { %v3455_v63 = vadd.f32 %v3454_v40, %v3453_v19  ;;  %v3468_v40 = vsel %vm263_vm2, %v3411_v30, 0.0  ;;  %v3369_v57 = vsel %vm263_vm2, %v5904_v16, 0.0 }
 0x21b   : > { %v4182_v47 = vpop.f32.mrb[40].mxu0 }
 0x21c   : > { %v4183_v54 = vpop.f32.mrb[41].mxu0 }
 0x21d   : > { %v4184_v39 = vadd.f32 %v4183_v54, %v4182_v47  ;;  %v4185_v25 = vpop.f32.mrb[42].mxu0  ;;  %v3470_v54 = vsel %vm263_vm2, %v3412_v11, 0.0 }
 0x21e   : > { %v4186_v36 = vpop.f32.mrb[43].mxu0 }
 0x21f   : > { %v3107_v4 = vadd.f32 %v4184_v39, %v5860_v21  ;;  %v4187_v23 = vadd.f32 %v4186_v36, %v4185_v25  ;;  %v3414_v39 = vmul.f32 %v5932_v33, %v5932_v33 }
 0x221   : > { %v3975_v31 = vpack.c.bf16 %v3107_v4, %v3107_v4  ;;  %v3353_v6 = vsel %vm263_vm2, %v3107_v4, 0.0  ;;  %v3405_v7 = vmul.f32 %v3107_v4, %v3107_v4  ;;  %v3110_v43 = vadd.f32 %v4187_v23, %v5864_v42 }
 0x222   : > { %v3354_v3 = vadd.f32 %v3353_v6, %v3352_v61  ;;  %v3415_v4 = vmul.f32 %v5901_v45, %v5901_v45  ;;  %v3371_v23 = vsel %vm263_vm2, %v5932_v33, 0.0 }
 0x223   : > { %3302 = vst.msk [vmem:[%s5783_s5 + $0x50] sm:$0xf] %vm3281_vm6, %v3975_v31  ;;  %v3456_v50 = vsel %vm263_vm2, %v3405_v7, 0.0  ;;  %v3976_v28 = vpack.c.bf16 %v3110_v43, %v3110_v43  ;;  %v3355_v32 = vsel %vm263_vm2, %v3110_v43, 0.0  ;;  %v3406_v44 = vmul.f32 %v3110_v43, %v3110_v43 }
 0x224   : > { %v3457_v10 = vadd.f32 %v3456_v50, %v3455_v63  ;;  %v3356_v9 = vadd.f32 %v3355_v32, %v3354_v3  ;;  %v3367_v63 = vsel %vm263_vm2, %v5887_v2, 0.0  ;;  %v3373_v7 = vsel %vm263_vm2, %v5901_v45, 0.0 }
 0x225   : > { %3303 = vst.msk [vmem:[%s5783_s5 + $0x54] sm:$0xf] %vm3281_vm6, %v3976_v28  ;;  %v3458_v21 = vsel %vm263_vm2, %v3406_v44, 0.0  ;;  %v3474_v43 = vsel %vm263_vm2, %v3414_v39, 0.0  ;;  %v3476_v28 = vsel %vm263_vm2, %v3415_v4, 0.0  ;;  %v3375_v32 = vsel %vm263_vm2, %v5910_v1, 0.0 }
 0x226   : > { %v3459_v8 = vadd.f32 %v3458_v21, %v3457_v10 }
 0x227   : > { %v4188_v56 = vpop.f32.mrb[44].mxu0 }
 0x228   : > { %v4189_v52 = vpop.f32.mrb[45].mxu0 }
 0x229   : > { %v4190_v42 = vadd.f32 %v4189_v52, %v4188_v56  ;;  %v4191_v51 = vpop.f32.mrb[46].mxu0 }
 0x22a   : > { %v4192_v13 = vpop.f32.mrb[47].mxu0 }
 0x22b   : > { %v3115_v58 = vadd.f32 %v5855_v49, %v4190_v42  ;;  %v4193_v48 = vadd.f32 %v4192_v13, %v4191_v51 }
 0x22d   : > { %v3977_v5 = vpack.c.bf16 %v3115_v58, %v3115_v58  ;;  %v3357_v34 = vsel %vm263_vm2, %v3115_v58, 0.0  ;;  %v3407_v18 = vmul.f32 %v3115_v58, %v3115_v58  ;;  %v3118_v60 = vadd.f32 %v5862_v62, %v4193_v48 }
 0x22e   : > { %v3358_v27 = vadd.f32 %v3357_v34, %v3356_v9  ;;  %v3410_v62 = vmul.f32 %v5890_v35, %v5890_v35  ;;  %v3413_v35 = vmul.f32 %v5904_v16, %v5904_v16  ;;  %v3416_v16 = vmul.f32 %v5910_v1, %v5910_v1 }
 0x22f   : > { %3304 = vst.msk [vmem:[%s5783_s5 + $0x58] sm:$0xf] %vm3281_vm6, %v3977_v5  ;;  %v3460_v37 = vsel %vm263_vm2, %v3407_v18, 0.0  ;;  %v3978_v53 = vpack.c.bf16 %v3118_v60, %v3118_v60  ;;  %v3359_v46 = vsel %vm263_vm2, %v3118_v60, 0.0  ;;  %v3408_v49 = vmul.f32 %v3118_v60, %v3118_v60 }
 0x230   : > { %v3461_v38 = vadd.f32 %v3460_v37, %v3459_v8  ;;  %v3360_v24 = vadd.f32 %v3359_v46, %v3358_v27  ;;  %v3466_v19 = vsel %vm263_vm2, %v3410_v62, 0.0  ;;  %v3472_v2 = vsel %vm263_vm2, %v3413_v35, 0.0 }
 0x231   : > { %3305 = vst.msk [vmem:[%s5783_s5 + $0x5c] sm:$0xf] %vm3281_vm6, %v3978_v53  ;;  %v3462_v29 = vsel %vm263_vm2, %v3408_v49, 0.0  ;;  %v3478_v10 = vsel %vm263_vm2, %v3416_v16, 0.0 }
 0x232   : > { %v3362_v17 = vadd.f32 %v3361_v41, %v3360_v24  ;;  %v3463_v20 = vadd.f32 %v3462_v29, %v3461_v38 }
 0x234   : > { %v3364_v14 = vadd.f32 %v3363_v26, %v3362_v17  ;;  %v3465_v55 = vadd.f32 %v3464_v15, %v3463_v20 }
 0x236   : > { %v3366_v61 = vadd.f32 %v3365_v0, %v3364_v14  ;;  %v3467_v12 = vadd.f32 %v3466_v19, %v3465_v55 }
 0x238   : > { %v3368_v22 = vadd.f32 %v3367_v63, %v3366_v61  ;;  %v3469_v47 = vadd.f32 %v3468_v40, %v3467_v12 }
 0x23a   : > { %v3370_v25 = vadd.f32 %v3369_v57, %v3368_v22  ;;  %v3471_v36 = vadd.f32 %v3470_v54, %v3469_v47 }
 0x23c   : > { %v3372_v31 = vadd.f32 %v3371_v23, %v3370_v25  ;;  %v3473_v6 = vadd.f32 %v3472_v2, %v3471_v36 }
 0x23e   : > { %v3374_v3 = vadd.f32 %v3373_v7, %v3372_v31  ;;  %v3475_v50 = vadd.f32 %v3474_v43, %v3473_v6 }
 0x240   : > { %v3376_v44 = vadd.f32 %v3375_v32, %v3374_v3  ;;  %v3477_v33 = vadd.f32 %v3476_v28, %v3475_v50 }
 0x242   : > { %v3377_v9 = vrot.slane %v3376_v44, 4  ;;  %v3479_v21 = vadd.f32 %v3478_v10, %v3477_v33 }
 0x244   : > { %v3378_v45 = vadd.f32 %v3377_v9, %v3376_v44  ;;  %v3480_v8 = vrot.slane %v3479_v21, 4 }
 0x246   : > { %v3379_v56 = vrot.slane %v3378_v45, 2  ;;  %v3481_v52 = vadd.f32 %v3480_v8, %v3479_v21 }
 0x248   : > { %v3380_v42 = vadd.f32 %v3379_v56, %v3378_v45  ;;  %v3482_v51 = vrot.slane %v3481_v52, 2 }
 0x24a   : > { %v3381_v13 = vrot.slane %v3380_v42, 1  ;;  %v3483_v58 = vadd.f32 %v3482_v51, %v3481_v52 }
 0x24c   : > { %v3382_v1 = vadd.f32 %v3381_v13, %v3380_v42  ;;  %v3484_v48 = vrot.slane %v3483_v58, 1 }
 0x24e   : > { %3384 = vst.msk [vmem:[%s181_s14] sm:$0x1] %vm3383_vm7, %v3382_v1  ;;  %v3485_v5 = vadd.f32 %v3484_v48, %v3483_v58 }
 0x250   : > { %3486 = vst.msk [vmem:[%s181_s14 + $0x1] sm:$0x1] %vm3383_vm7, %v3485_v5 }
 0x251 PF: > { %s14_s12 = sadd.s32 1, %s4372_s12  }
 0x252   : > { %p11_p4 = scmp.ge.s32.totalorder %s14_s12, 4  }
 0x254   :  { %13 = sbr.rel (!%p11_p4) target bundleno = 1 (0x1), region = 72 }

</bundles_post_ra>
